<compile_context>
chip_gen: v6e
topology: v6e:2x2x1
jax: 0.10.0
libtpu: 0.0.40
codegen_flags: <defaults>
</compile_context>

<pallas_src>
import functools

import jax
import jax.numpy as jnp
from jax.experimental import pallas as pl
from jax.experimental.pallas import tpu as pltpu


def _bn_relu_block(x, w, gamma, beta):
    """Linear (no bias; cancels under BN) -> BatchNorm1d (batch stats) -> ReLU."""
    h = jnp.dot(x, w, preferred_element_type=jnp.float32)
    mu = jnp.mean(h, axis=0, keepdims=True)
    # One-pass variance (biased, matching PyTorch training-mode BN).
    var = jnp.maximum(jnp.mean(h * h, axis=0, keepdims=True) - mu * mu, 0.0)
    hn = (h - mu) * jax.lax.rsqrt(var + 1e-5)
    return jnp.maximum(gamma * hn + beta, 0.0)


def generator_kernel(noise_ref, w1_ref, w2_ref, w3_ref, w4_hbm, w5_hbm, vec_ref,
                     out_ref, w4_buf, w5_buf, sem, *, dims, im_pad):
    # Kick off the big-weight DMAs immediately so they overlap layers 1-3.
    cp4 = pltpu.make_async_copy(w4_hbm, w4_buf, sem.at[0])
    cp5 = pltpu.make_async_copy(w5_hbm, w5_buf, sem.at[1])
    cp4.start()
    cp5.start()

    d1, d2, d3, d4 = dims[1], dims[2], dims[3], dims[4]
    bf16 = jnp.bfloat16

    x = noise_ref[...]                                      # (B, z_dim) f32
    x = _bn_relu_block(x, w1_ref[...],
                       vec_ref[0:1, :d1], vec_ref[4:5, :d1])
    x = _bn_relu_block(x.astype(bf16), w2_ref[...],
                       vec_ref[1:2, :d2], vec_ref[5:6, :d2])
    x = _bn_relu_block(x.astype(bf16), w3_ref[...],
                       vec_ref[2:3, :d3], vec_ref[6:7, :d3])

    cp4.wait()
    x = _bn_relu_block(x.astype(bf16), w4_buf[...],
                       vec_ref[3:4, :d4], vec_ref[7:8, :d4])

    cp5.wait()
    z = jnp.dot(x.astype(bf16), w5_buf[...],
                preferred_element_type=jnp.float32) + vec_ref[8:9, :im_pad]
    # Sigmoid: exp on EUP, approximate reciprocal on EUP (VPU divide avoided).
    out_ref[...] = pl.reciprocal(1.0 + jnp.exp(-z), approx=True)


def init_params(key, z_dim=10, hidden_dim=128, im_dim=784):
    """Mirrors PyTorch Linear init (U[-1/sqrt(fan_in), +]) and BatchNorm1d
    (gamma=1, beta=0).  Linear biases b1..b4 are omitted since they cancel
    exactly under training-mode BatchNorm; only b5 is kept."""
    dims = [z_dim, hidden_dim, hidden_dim * 2, hidden_dim * 4, hidden_dim * 8, im_dim]
    im_pad = ((im_dim + 127) // 128) * 128                  # 896: lane-dense
    vec_width = max(max(dims[1:5]), im_pad)                 # 1024

    keys = jax.random.split(key, 6)
    weights = []
    for i, (din, dout) in enumerate(zip(dims[:-1], dims[1:])):
        bound = 1.0 / jnp.sqrt(float(din))
        w = jax.random.uniform(keys[i], (din, dout), jnp.float32, -bound, bound)
        if i == 4:                                          # final layer: pad + bf16
            w = jnp.pad(w, ((0, 0), (0, im_pad - dout)))
        if i > 0:
            w = w.astype(jnp.bfloat16)                      # stream big weights in bf16
        weights.append(w)

    bound5 = 1.0 / jnp.sqrt(float(dims[4]))
    b5 = jax.random.uniform(keys[5], (im_dim,), jnp.float32, -bound5, bound5)

    # Packed per-layer vector slab: rows 0-3 gamma, 4-7 beta, 8 = b5 (padded).
    vec = jnp.zeros((9, vec_width), jnp.float32)
    for i in range(4):
        vec = vec.at[i, :dims[i + 1]].set(1.0)              # gamma = 1 (beta rows stay 0)
    vec = vec.at[8, :im_dim].set(b5)

    return weights, vec, dims


def generator_forward(noise, weights, vec, dims, im_dim):
    n = noise.shape[0]
    im_pad = weights[4].shape[1]
    vmem = pl.BlockSpec(memory_space=pltpu.MemorySpace.VMEM)
    hbm = pl.BlockSpec(memory_space=pl.ANY)

    out = pl.pallas_call(
        functools.partial(generator_kernel, dims=tuple(dims), im_pad=im_pad),
        out_shape=jax.ShapeDtypeStruct((n, im_pad), jnp.float32),
        in_specs=[vmem, vmem, vmem, vmem, hbm, hbm, vmem],
        out_specs=vmem,
        scratch_shapes=[
            pltpu.VMEM((dims[3], dims[4]), jnp.bfloat16),   # w4 landing buffer
            pltpu.VMEM((dims[4], im_pad), jnp.bfloat16),    # w5 landing buffer
            pltpu.SemaphoreType.DMA((2,)),
        ],
    )(noise, weights[0], weights[1], weights[2], weights[3], weights[4], vec)
    return out[:, :im_dim]


def reference_forward(noise, weights, vec, dims, im_dim):
    """Pure-JAX reference with matching precision (bf16 weights, f32 accum)."""
    im_pad = weights[4].shape[1]
    x = noise
    for i in range(4):
        dout = dims[i + 1]
        lhs = x if i == 0 else x.astype(jnp.bfloat16)
        h = jnp.dot(lhs, weights[i], preferred_element_type=jnp.float32)
        mu = jnp.mean(h, axis=0, keepdims=True)
        var = jnp.mean((h - mu) ** 2, axis=0, keepdims=True)
        g = vec[i:i + 1, :dout]
        bt = vec[4 + i:5 + i, :dout]
        x = jnp.maximum(g * (h - mu) / jnp.sqrt(var + 1e-5) + bt, 0.0)
    z = jnp.dot(x.astype(jnp.bfloat16), weights[4],
                preferred_element_type=jnp.float32) + vec[8:9, :im_pad]
    return jax.nn.sigmoid(z)[:, :im_dim]


if __name__ == "__main__":
    key = jax.random.PRNGKey(0)
    k_params, k_noise = jax.random.split(key)

    z_dim, hidden_dim, im_dim = 10, 128, 784    # module defaults
    batch = 8                                   # small batch (BatchNorm needs >1)

    weights, vec, dims = init_params(k_params, z_dim, hidden_dim, im_dim)
    noise = jax.random.normal(k_noise, (batch, z_dim), jnp.float32)

    out = generator_forward(noise, weights, vec, dims, im_dim)
    out = jax.block_until_ready(out)

    ref = reference_forward(noise, weights, vec, dims, im_dim)
    assert out.shape == (batch, im_dim), out.shape
    assert bool(jnp.all(jnp.isfinite(out)))
    assert bool(jnp.all((out >= 0.0) & (out <= 1.0)))        # sigmoid range
    max_err = float(jnp.max(jnp.abs(out - ref)))
    assert bool(jnp.allclose(out, ref, atol=2e-3, rtol=2e-3)), max_err

    print("KERNEL_OK")
</pallas_src>

<mosaic_0001>
module attributes {stable_mosaic.version = 11 : i64} {
  func.func @generator_kernel(%arg0: memref<8x10xf32, #tpu.memory_space<vmem>>, %arg1: memref<10x128xf32, #tpu.memory_space<vmem>>, %arg2: memref<128x256xbf16, #tpu.memory_space<vmem>>, %arg3: memref<256x512xbf16, #tpu.memory_space<vmem>>, %arg4: memref<512x1024xbf16, #tpu.memory_space<any>>, %arg5: memref<1024x896xbf16, #tpu.memory_space<any>>, %arg6: memref<9x1024xf32, #tpu.memory_space<vmem>>, %arg7: memref<8x896xf32, #tpu.memory_space<vmem>>, %arg8: memref<512x1024xbf16, #tpu.memory_space<vmem>>, %arg9: memref<1024x896xbf16, #tpu.memory_space<vmem>>, %arg10: memref<2x!tpu.dma_semaphore, #tpu.memory_space<semaphore_mem>>) attributes {dimension_semantics = [], scalar_prefetch = 0 : i64, scratch_operands = 3 : i64, tpu.core_type = #tpu.core_type<tc>} {
    %c0_i32 = arith.constant 0 : i32
    %0 = tpu.memref_slice %arg10[%c0_i32] : memref<2x!tpu.dma_semaphore, #tpu.memory_space<semaphore_mem>> -> memref<1x!tpu.dma_semaphore, #tpu.memory_space<semaphore_mem>>
    %1 = tpu.memref_squeeze %0 : memref<1x!tpu.dma_semaphore, #tpu.memory_space<semaphore_mem>> -> memref<!tpu.dma_semaphore, #tpu.memory_space<semaphore_mem>>
    tpu.enqueue_dma source(%arg4 : memref<512x1024xbf16, #tpu.memory_space<any>>) target(%arg8 : memref<512x1024xbf16, #tpu.memory_space<vmem>>) target_semaphore(%1 : memref<!tpu.dma_semaphore, #tpu.memory_space<semaphore_mem>>)
    %c1_i32 = arith.constant 1 : i32
    %2 = tpu.memref_slice %arg10[%c1_i32] : memref<2x!tpu.dma_semaphore, #tpu.memory_space<semaphore_mem>> -> memref<1x!tpu.dma_semaphore, #tpu.memory_space<semaphore_mem>>
    %3 = tpu.memref_squeeze %2 : memref<1x!tpu.dma_semaphore, #tpu.memory_space<semaphore_mem>> -> memref<!tpu.dma_semaphore, #tpu.memory_space<semaphore_mem>>
    tpu.enqueue_dma source(%arg5 : memref<1024x896xbf16, #tpu.memory_space<any>>) target(%arg9 : memref<1024x896xbf16, #tpu.memory_space<vmem>>) target_semaphore(%3 : memref<!tpu.dma_semaphore, #tpu.memory_space<semaphore_mem>>)
    %c0 = arith.constant 0 : index
    %c0_0 = arith.constant 0 : index
    %4 = vector.load %arg0[%c0, %c0_0] : memref<8x10xf32, #tpu.memory_space<vmem>>, vector<8x10xf32>
    %c0_1 = arith.constant 0 : index
    %c0_2 = arith.constant 0 : index
    %5 = vector.load %arg1[%c0_1, %c0_2] : memref<10x128xf32, #tpu.memory_space<vmem>>, vector<10x128xf32>
    %c0_3 = arith.constant 0 : index
    %c0_4 = arith.constant 0 : index
    %6 = vector.load %arg6[%c0_3, %c0_4] : memref<9x1024xf32, #tpu.memory_space<vmem>>, vector<1x128xf32>
    %c4 = arith.constant 4 : index
    %c0_5 = arith.constant 0 : index
    %7 = vector.load %arg6[%c4, %c0_5] : memref<9x1024xf32, #tpu.memory_space<vmem>>, vector<1x128xf32>
    %cst = arith.constant dense<0.000000e+00> : vector<8x128xf32>
    %8 = tpu.matmul %4, %5, %cst {dimension_numbers = #tpu.dot_dimension_numbers<[1], [0], [0], [1], [0, 0, 1, 1], [], []>} : vector<8x10xf32>, vector<10x128xf32>, vector<8x128xf32> -> vector<8x128xf32>
    %cst_6 = arith.constant dense<0.000000e+00> : vector<128xf32>
    %9 = vector.multi_reduction <add>, %8, %cst_6 [0] : vector<8x128xf32> to vector<128xf32>
    %10 = vector.shape_cast %9 : vector<128xf32> to vector<1x128xf32>
    %cst_7 = arith.constant 8.000000e+00 : f32
    %11 = vector.broadcast %cst_7 : f32 to vector<1x128xf32>
    %12 = arith.divf %10, %11 : vector<1x128xf32>
    %13 = arith.mulf %8, %8 : vector<8x128xf32>
    %cst_8 = arith.constant dense<0.000000e+00> : vector<128xf32>
    %14 = vector.multi_reduction <add>, %13, %cst_8 [0] : vector<8x128xf32> to vector<128xf32>
    %15 = vector.shape_cast %14 : vector<128xf32> to vector<1x128xf32>
    %cst_9 = arith.constant 8.000000e+00 : f32
    %16 = vector.broadcast %cst_9 : f32 to vector<1x128xf32>
    %17 = arith.divf %15, %16 : vector<1x128xf32>
    %18 = arith.mulf %12, %12 : vector<1x128xf32>
    %19 = arith.subf %17, %18 : vector<1x128xf32>
    %cst_10 = arith.constant 0.000000e+00 : f32
    %20 = vector.broadcast %cst_10 : f32 to vector<1x128xf32>
    %21 = arith.maximumf %19, %20 : vector<1x128xf32>
    %22 = vector.broadcast %12 : vector<1x128xf32> to vector<8x128xf32>
    %23 = arith.subf %8, %22 : vector<8x128xf32>
    %cst_11 = arith.constant 9.99999974E-6 : f32
    %24 = vector.broadcast %cst_11 : f32 to vector<1x128xf32>
    %25 = arith.addf %21, %24 : vector<1x128xf32>
    %26 = math.rsqrt %25 : vector<1x128xf32>
    %27 = vector.broadcast %26 : vector<1x128xf32> to vector<8x128xf32>
    %28 = arith.mulf %23, %27 : vector<8x128xf32>
    %29 = vector.broadcast %6 : vector<1x128xf32> to vector<8x128xf32>
    %30 = arith.mulf %29, %28 : vector<8x128xf32>
    %31 = vector.broadcast %7 : vector<1x128xf32> to vector<8x128xf32>
    %32 = arith.addf %30, %31 : vector<8x128xf32>
    %cst_12 = arith.constant 0.000000e+00 : f32
    %33 = vector.broadcast %cst_12 : f32 to vector<8x128xf32>
    %34 = arith.maximumf %32, %33 : vector<8x128xf32>
    %35 = arith.truncf %34 : vector<8x128xf32> to vector<8x128xbf16>
    %c0_13 = arith.constant 0 : index
    %c0_14 = arith.constant 0 : index
    %36 = vector.load %arg2[%c0_13, %c0_14] : memref<128x256xbf16, #tpu.memory_space<vmem>>, vector<128x256xbf16>
    %c1 = arith.constant 1 : index
    %c0_15 = arith.constant 0 : index
    %37 = vector.load %arg6[%c1, %c0_15] : memref<9x1024xf32, #tpu.memory_space<vmem>>, vector<1x256xf32>
    %c5 = arith.constant 5 : index
    %c0_16 = arith.constant 0 : index
    %38 = vector.load %arg6[%c5, %c0_16] : memref<9x1024xf32, #tpu.memory_space<vmem>>, vector<1x256xf32>
    %cst_17 = arith.constant dense<0.000000e+00> : vector<8x256xf32>
    %39 = tpu.matmul %35, %36, %cst_17 {dimension_numbers = #tpu.dot_dimension_numbers<[1], [0], [0], [1], [0, 0, 1, 1], [], []>} : vector<8x128xbf16>, vector<128x256xbf16>, vector<8x256xf32> -> vector<8x256xf32>
    %cst_18 = arith.constant dense<0.000000e+00> : vector<256xf32>
    %40 = vector.multi_reduction <add>, %39, %cst_18 [0] : vector<8x256xf32> to vector<256xf32>
    %41 = vector.shape_cast %40 : vector<256xf32> to vector<1x256xf32>
    %cst_19 = arith.constant 8.000000e+00 : f32
    %42 = vector.broadcast %cst_19 : f32 to vector<1x256xf32>
    %43 = arith.divf %41, %42 : vector<1x256xf32>
    %44 = arith.mulf %39, %39 : vector<8x256xf32>
    %cst_20 = arith.constant dense<0.000000e+00> : vector<256xf32>
    %45 = vector.multi_reduction <add>, %44, %cst_20 [0] : vector<8x256xf32> to vector<256xf32>
    %46 = vector.shape_cast %45 : vector<256xf32> to vector<1x256xf32>
    %cst_21 = arith.constant 8.000000e+00 : f32
    %47 = vector.broadcast %cst_21 : f32 to vector<1x256xf32>
    %48 = arith.divf %46, %47 : vector<1x256xf32>
    %49 = arith.mulf %43, %43 : vector<1x256xf32>
    %50 = arith.subf %48, %49 : vector<1x256xf32>
    %cst_22 = arith.constant 0.000000e+00 : f32
    %51 = vector.broadcast %cst_22 : f32 to vector<1x256xf32>
    %52 = arith.maximumf %50, %51 : vector<1x256xf32>
    %53 = vector.broadcast %43 : vector<1x256xf32> to vector<8x256xf32>
    %54 = arith.subf %39, %53 : vector<8x256xf32>
    %cst_23 = arith.constant 9.99999974E-6 : f32
    %55 = vector.broadcast %cst_23 : f32 to vector<1x256xf32>
    %56 = arith.addf %52, %55 : vector<1x256xf32>
    %57 = math.rsqrt %56 : vector<1x256xf32>
    %58 = vector.broadcast %57 : vector<1x256xf32> to vector<8x256xf32>
    %59 = arith.mulf %54, %58 : vector<8x256xf32>
    %60 = vector.broadcast %37 : vector<1x256xf32> to vector<8x256xf32>
    %61 = arith.mulf %60, %59 : vector<8x256xf32>
    %62 = vector.broadcast %38 : vector<1x256xf32> to vector<8x256xf32>
    %63 = arith.addf %61, %62 : vector<8x256xf32>
    %cst_24 = arith.constant 0.000000e+00 : f32
    %64 = vector.broadcast %cst_24 : f32 to vector<8x256xf32>
    %65 = arith.maximumf %63, %64 : vector<8x256xf32>
    %66 = arith.truncf %65 : vector<8x256xf32> to vector<8x256xbf16>
    %c0_25 = arith.constant 0 : index
    %c0_26 = arith.constant 0 : index
    %67 = vector.load %arg3[%c0_25, %c0_26] : memref<256x512xbf16, #tpu.memory_space<vmem>>, vector<256x512xbf16>
    %c2 = arith.constant 2 : index
    %c0_27 = arith.constant 0 : index
    %68 = vector.load %arg6[%c2, %c0_27] : memref<9x1024xf32, #tpu.memory_space<vmem>>, vector<1x512xf32>
    %c6 = arith.constant 6 : index
    %c0_28 = arith.constant 0 : index
    %69 = vector.load %arg6[%c6, %c0_28] : memref<9x1024xf32, #tpu.memory_space<vmem>>, vector<1x512xf32>
    %cst_29 = arith.constant dense<0.000000e+00> : vector<8x512xf32>
    %70 = tpu.matmul %66, %67, %cst_29 {dimension_numbers = #tpu.dot_dimension_numbers<[1], [0], [0], [1], [0, 0, 1, 1], [], []>} : vector<8x256xbf16>, vector<256x512xbf16>, vector<8x512xf32> -> vector<8x512xf32>
    %cst_30 = arith.constant dense<0.000000e+00> : vector<512xf32>
    %71 = vector.multi_reduction <add>, %70, %cst_30 [0] : vector<8x512xf32> to vector<512xf32>
    %72 = vector.shape_cast %71 : vector<512xf32> to vector<1x512xf32>
    %cst_31 = arith.constant 8.000000e+00 : f32
    %73 = vector.broadcast %cst_31 : f32 to vector<1x512xf32>
    %74 = arith.divf %72, %73 : vector<1x512xf32>
    %75 = arith.mulf %70, %70 : vector<8x512xf32>
    %cst_32 = arith.constant dense<0.000000e+00> : vector<512xf32>
    %76 = vector.multi_reduction <add>, %75, %cst_32 [0] : vector<8x512xf32> to vector<512xf32>
    %77 = vector.shape_cast %76 : vector<512xf32> to vector<1x512xf32>
    %cst_33 = arith.constant 8.000000e+00 : f32
    %78 = vector.broadcast %cst_33 : f32 to vector<1x512xf32>
    %79 = arith.divf %77, %78 : vector<1x512xf32>
    %80 = arith.mulf %74, %74 : vector<1x512xf32>
    %81 = arith.subf %79, %80 : vector<1x512xf32>
    %cst_34 = arith.constant 0.000000e+00 : f32
    %82 = vector.broadcast %cst_34 : f32 to vector<1x512xf32>
    %83 = arith.maximumf %81, %82 : vector<1x512xf32>
    %84 = vector.broadcast %74 : vector<1x512xf32> to vector<8x512xf32>
    %85 = arith.subf %70, %84 : vector<8x512xf32>
    %cst_35 = arith.constant 9.99999974E-6 : f32
    %86 = vector.broadcast %cst_35 : f32 to vector<1x512xf32>
    %87 = arith.addf %83, %86 : vector<1x512xf32>
    %88 = math.rsqrt %87 : vector<1x512xf32>
    %89 = vector.broadcast %88 : vector<1x512xf32> to vector<8x512xf32>
    %90 = arith.mulf %85, %89 : vector<8x512xf32>
    %91 = vector.broadcast %68 : vector<1x512xf32> to vector<8x512xf32>
    %92 = arith.mulf %91, %90 : vector<8x512xf32>
    %93 = vector.broadcast %69 : vector<1x512xf32> to vector<8x512xf32>
    %94 = arith.addf %92, %93 : vector<8x512xf32>
    %cst_36 = arith.constant 0.000000e+00 : f32
    %95 = vector.broadcast %cst_36 : f32 to vector<8x512xf32>
    %96 = arith.maximumf %94, %95 : vector<8x512xf32>
    %c0_i32_37 = arith.constant 0 : i32
    %97 = tpu.memref_slice %arg10[%c0_i32_37] : memref<2x!tpu.dma_semaphore, #tpu.memory_space<semaphore_mem>> -> memref<1x!tpu.dma_semaphore, #tpu.memory_space<semaphore_mem>>
    %98 = tpu.memref_squeeze %97 : memref<1x!tpu.dma_semaphore, #tpu.memory_space<semaphore_mem>> -> memref<!tpu.dma_semaphore, #tpu.memory_space<semaphore_mem>>
    tpu.wait_dma2 semaphore(%98 : memref<!tpu.dma_semaphore, #tpu.memory_space<semaphore_mem>>) src(%arg4 : memref<512x1024xbf16, #tpu.memory_space<any>>) dst(%arg8 : memref<512x1024xbf16, #tpu.memory_space<vmem>>)
    %99 = arith.truncf %96 : vector<8x512xf32> to vector<8x512xbf16>
    %c0_38 = arith.constant 0 : index
    %c0_39 = arith.constant 0 : index
    %100 = vector.load %arg8[%c0_38, %c0_39] : memref<512x1024xbf16, #tpu.memory_space<vmem>>, vector<512x1024xbf16>
    %c3 = arith.constant 3 : index
    %c0_40 = arith.constant 0 : index
    %101 = vector.load %arg6[%c3, %c0_40] : memref<9x1024xf32, #tpu.memory_space<vmem>>, vector<1x1024xf32>
    %c7 = arith.constant 7 : index
    %c0_41 = arith.constant 0 : index
    %102 = vector.load %arg6[%c7, %c0_41] : memref<9x1024xf32, #tpu.memory_space<vmem>>, vector<1x1024xf32>
    %cst_42 = arith.constant dense<0.000000e+00> : vector<8x1024xf32>
    %103 = tpu.matmul %99, %100, %cst_42 {dimension_numbers = #tpu.dot_dimension_numbers<[1], [0], [0], [1], [0, 0, 1, 1], [], []>} : vector<8x512xbf16>, vector<512x1024xbf16>, vector<8x1024xf32> -> vector<8x1024xf32>
    %cst_43 = arith.constant dense<0.000000e+00> : vector<1024xf32>
    %104 = vector.multi_reduction <add>, %103, %cst_43 [0] : vector<8x1024xf32> to vector<1024xf32>
    %105 = vector.shape_cast %104 : vector<1024xf32> to vector<1x1024xf32>
    %cst_44 = arith.constant 8.000000e+00 : f32
    %106 = vector.broadcast %cst_44 : f32 to vector<1x1024xf32>
    %107 = arith.divf %105, %106 : vector<1x1024xf32>
    %108 = arith.mulf %103, %103 : vector<8x1024xf32>
    %cst_45 = arith.constant dense<0.000000e+00> : vector<1024xf32>
    %109 = vector.multi_reduction <add>, %108, %cst_45 [0] : vector<8x1024xf32> to vector<1024xf32>
    %110 = vector.shape_cast %109 : vector<1024xf32> to vector<1x1024xf32>
    %cst_46 = arith.constant 8.000000e+00 : f32
    %111 = vector.broadcast %cst_46 : f32 to vector<1x1024xf32>
    %112 = arith.divf %110, %111 : vector<1x1024xf32>
    %113 = arith.mulf %107, %107 : vector<1x1024xf32>
    %114 = arith.subf %112, %113 : vector<1x1024xf32>
    %cst_47 = arith.constant 0.000000e+00 : f32
    %115 = vector.broadcast %cst_47 : f32 to vector<1x1024xf32>
    %116 = arith.maximumf %114, %115 : vector<1x1024xf32>
    %117 = vector.broadcast %107 : vector<1x1024xf32> to vector<8x1024xf32>
    %118 = arith.subf %103, %117 : vector<8x1024xf32>
    %cst_48 = arith.constant 9.99999974E-6 : f32
    %119 = vector.broadcast %cst_48 : f32 to vector<1x1024xf32>
    %120 = arith.addf %116, %119 : vector<1x1024xf32>
    %121 = math.rsqrt %120 : vector<1x1024xf32>
    %122 = vector.broadcast %121 : vector<1x1024xf32> to vector<8x1024xf32>
    %123 = arith.mulf %118, %122 : vector<8x1024xf32>
    %124 = vector.broadcast %101 : vector<1x1024xf32> to vector<8x1024xf32>
    %125 = arith.mulf %124, %123 : vector<8x1024xf32>
    %126 = vector.broadcast %102 : vector<1x1024xf32> to vector<8x1024xf32>
    %127 = arith.addf %125, %126 : vector<8x1024xf32>
    %cst_49 = arith.constant 0.000000e+00 : f32
    %128 = vector.broadcast %cst_49 : f32 to vector<8x1024xf32>
    %129 = arith.maximumf %127, %128 : vector<8x1024xf32>
    %c1_i32_50 = arith.constant 1 : i32
    %130 = tpu.memref_slice %arg10[%c1_i32_50] : memref<2x!tpu.dma_semaphore, #tpu.memory_space<semaphore_mem>> -> memref<1x!tpu.dma_semaphore, #tpu.memory_space<semaphore_mem>>
    %131 = tpu.memref_squeeze %130 : memref<1x!tpu.dma_semaphore, #tpu.memory_space<semaphore_mem>> -> memref<!tpu.dma_semaphore, #tpu.memory_space<semaphore_mem>>
    tpu.wait_dma2 semaphore(%131 : memref<!tpu.dma_semaphore, #tpu.memory_space<semaphore_mem>>) src(%arg5 : memref<1024x896xbf16, #tpu.memory_space<any>>) dst(%arg9 : memref<1024x896xbf16, #tpu.memory_space<vmem>>)
    %132 = arith.truncf %129 : vector<8x1024xf32> to vector<8x1024xbf16>
    %c0_51 = arith.constant 0 : index
    %c0_52 = arith.constant 0 : index
    %133 = vector.load %arg9[%c0_51, %c0_52] : memref<1024x896xbf16, #tpu.memory_space<vmem>>, vector<1024x896xbf16>
    %cst_53 = arith.constant dense<0.000000e+00> : vector<8x896xf32>
    %134 = tpu.matmul %132, %133, %cst_53 {dimension_numbers = #tpu.dot_dimension_numbers<[1], [0], [0], [1], [0, 0, 1, 1], [], []>} : vector<8x1024xbf16>, vector<1024x896xbf16>, vector<8x896xf32> -> vector<8x896xf32>
    %c8 = arith.constant 8 : index
    %c0_54 = arith.constant 0 : index
    %135 = vector.load %arg6[%c8, %c0_54] : memref<9x1024xf32, #tpu.memory_space<vmem>>, vector<1x896xf32>
    %136 = vector.broadcast %135 : vector<1x896xf32> to vector<8x896xf32>
    %137 = arith.addf %134, %136 : vector<8x896xf32>
    %cst_55 = arith.constant 0.000000e+00 : f32
    %138 = vector.broadcast %cst_55 : f32 to vector<8x896xf32>
    %139 = arith.subf %138, %137 : vector<8x896xf32>
    %140 = math.exp %139 : vector<8x896xf32>
    %cst_56 = arith.constant 1.000000e+00 : f32
    %141 = vector.broadcast %cst_56 : f32 to vector<8x896xf32>
    %142 = arith.addf %141, %140 : vector<8x896xf32>
    %143 = tpu.reciprocal %142 {approx = true} : vector<8x896xf32> -> vector<8x896xf32>
    %c0_57 = arith.constant 0 : index
    %c0_58 = arith.constant 0 : index
    %144 = vector.load %arg7[%c0_57, %c0_58] : memref<8x896xf32, #tpu.memory_space<vmem>>, vector<8x896xf32>
    tpu.vector_store %arg7[%c0_57, %c0_58], %143 {strides = array<i32>} : memref<8x896xf32, #tpu.memory_space<vmem>>, vector<8x896xf32>,
    return
  }
}

</mosaic_0001>

<bundles_post_ra>
// kernel: tpu_custom_call.1
= control target key start
LH: loop header
LB: loop body
LE: loop exit
PB: predicated region body
PF: predicated region fallthrough
CT: control target
= control target key end

     0   :  { %12 = vsyncpa [#allocation6], 0  ;;  %s9054_s0 = inlined_call_operand.hbm [shape: f32[8,10], index: 0, kind: input, shape index: {}]   ;;  %s9055_s1 = inlined_call_operand.hbm [shape: f32[10,128], index: 1, kind: input, shape index: {}]   ;;  %s9056_s2 = inlined_call_operand.hbm [shape: bf16[128,256], index: 2, kind: input, shape index: {}]   ;;  %s9057_s3 = inlined_call_operand.hbm [shape: bf16[256,512], index: 3, kind: input, shape index: {}]   ;;  %s9058_s4 = inlined_call_operand.hbm [shape: bf16[512,1024], index: 4, kind: input, shape index: {}]   ;;  %s9059_s5 = inlined_call_operand.hbm [shape: bf16[1024,896], index: 5, kind: input, shape index: {}]   ;;  %s9060_s6 = inlined_call_operand.hbm [shape: f32[9,1024], index: 6, kind: input, shape index: {}]   ;;  %s9061_s7 = inlined_call_operand.hbm [shape: f32[8,896], index: 7, kind: output, shape index: {}]  }
   0x1   :  { %13 = vsyncpa [#allocation9], 0 }
   0x2   :  { %14 = vsyncpa [#allocation12], 0 }
   0x3   :  { %15 = vsyncpa [#allocation7], 0  ;;  %s8697_s24 = smov [#allocation8]  }
   0x4   :  { %s31_s25 = sshll.u32 %s8697_s24, 4  ;;  %s32_s25 = int_to_ptr.vmem [resolvable:$true] %s31_s25 }
   0x5   :  { %s8533_s26 = scalar_lea.vmem %s32_s25, 256  ;;  %p8538_p1 = scmp.lt.s32.totalorder %s32_s25, %s32_s25 }
   0x6   :  { %p8534_p0 = scmp.ne.s32.totalorder %s32_s25, %s8533_s26  ;;  %p8539_p2 = scmp.lt.s32.totalorder %s8533_s26, %s8533_s26 }
   0x8   :  { %p8540_p3 = por %p8539_p2, %p8538_p1 }
   0xa   :  { %p8541_p4 = pnand %p8540_p3, %p8534_p0 }
   0xc   :  { %8544 = shalt.err (!%p8541_p4)
}
   0xd   :  { %s8698_s27 = smov 128   ;;  %s8699_s28 = smov 8  }
   0xe   :  { %37 = dma.hbm_to_vmem [thread:$0]  %s9055_s1, 256, %s32_s25, [#allocation9], %s8698_s27, %s8698_s27, %s8699_s28  }
   0xf   :  { %s8700_s8 = smov [#allocation11]  }
  0x10   :  { %s55_s9 = sshll.u32 %s8700_s8, 4  ;;  %s56_s9 = int_to_ptr.vmem [resolvable:$true] %s55_s9 }
  0x11   :  { %s8553_s10 = scalar_lea.vmem %s56_s9, 8192  ;;  %p8558_p6 = scmp.lt.s32.totalorder %s56_s9, %s56_s9 }
  0x12   :  { %p8554_p5 = scmp.ne.s32.totalorder %s56_s9, %s8553_s10  ;;  %p8559_p7 = scmp.lt.s32.totalorder %s8553_s10, %s8553_s10 }
  0x14   :  { %p8560_p8 = por %p8559_p7, %p8558_p6 }
  0x16   :  { %p8561_p9 = pnand %p8560_p8, %p8554_p5 }
  0x18   :  { %8564 = shalt.err (!%p8561_p9)
}
  0x19   :  { %s8701_s11 = smov 256   ;;  %s8702_s12 = smov 16  }
  0x1a   :  { %61 = dma.hbm_to_vmem [thread:$0]  %s9057_s3, 8192, %s56_s9, [#allocation12], %s8701_s11, %s8701_s11, %s8702_s12  }
  0x1b   :  { %s8703_s15 = smov [#allocation5]   ;;  %s8704_s17 = smov [#allocation10]  }
  0x1c   :  { %s22_s16 = sshll.u32 %s8703_s15, 4  ;;  %s43_s1 = sshll.u32 %s8704_s17, 4  ;;  %s23_s16 = int_to_ptr.vmem [resolvable:$true] %s22_s16  ;;  %s44_s1 = int_to_ptr.vmem [resolvable:$true] %s43_s1 }
  0x1d   :  { %s8573_s18 = scalar_lea.vmem %s23_s16, 128  ;;  %p8578_p11 = scmp.lt.s32.totalorder %s23_s16, %s23_s16 }
  0x1e   :  { %p8574_p10 = scmp.ne.s32.totalorder %s23_s16, %s8573_s18  ;;  %p8579_p12 = scmp.lt.s32.totalorder %s8573_s18, %s8573_s18 }
  0x20   :  { %p8580_p13 = por %p8579_p12, %p8578_p11 }
  0x22   :  { %p8581_p0 = pnand %p8580_p13, %p8574_p10 }
  0x24   :  { %8584 = shalt.err (!%p8581_p0)
}
  0x25   :  { %25 = dma.hbm_to_vmem [thread:$0]  %s9054_s0, 128, %s23_s16, [#allocation6]  }
  0x26   :  { %s8593_s21 = scalar_lea.vmem %s44_s1, 2048  ;;  %p8598_p2 = scmp.lt.s32.totalorder %s44_s1, %s44_s1 }
  0x27   :  { %p8594_p1 = scmp.ne.s32.totalorder %s44_s1, %s8593_s21  ;;  %p8599_p3 = scmp.lt.s32.totalorder %s8593_s21, %s8593_s21 }
  0x29   :  { %p8600_p4 = por %p8599_p3, %p8598_p2 }
  0x2b   :  { %p8601_p5 = pnand %p8600_p4, %p8594_p1 }
  0x2d   :  { %8604 = shalt.err (!%p8601_p5)
}
  0x2e   :  { %49 = dma.hbm_to_vmem [thread:$0]  %s9056_s2, 2048, %s44_s1, [#allocation9], %s8698_s27, %s8698_s27, %s8699_s28  }
  0x2f   :  { %s8705_s23 = smov [#allocation13]  }
  0x30   :  { %s67_s24 = sshll.u32 %s8705_s23, 4  ;;  %s68_s24 = int_to_ptr.vmem [resolvable:$true] %s67_s24 }
  0x31   :  { %s8613_s25 = scalar_lea.vmem %s68_s24, 2048  ;;  %p8618_p7 = scmp.lt.s32.totalorder %s68_s24, %s68_s24 }
  0x32   :  { %p8614_p6 = scmp.ne.s32.totalorder %s68_s24, %s8613_s25  ;;  %p8619_p8 = scmp.lt.s32.totalorder %s8613_s25, %s8613_s25 }
  0x34   :  { %p8620_p9 = por %p8619_p8, %p8618_p7 }
  0x36   :  { %p8621_p10 = pnand %p8620_p9, %p8614_p6 }
  0x38   :  { %8624 = shalt.err (!%p8621_p10)
}
  0x39   :  { %s8706_s0 = smov 1024   ;;  %s8707_s26 = smov 64  }
  0x3a   :  { %73 = dma.hbm_to_vmem [thread:$0]  %s9060_s6, 2048, %s68_s24, [#allocation12], %s8706_s0, %s8706_s0, %s8707_s26  }
  0x3b   :  { %8685 = dma.done.wait [#allocation6], 128  }
  0x3c   :  { %8686 = vsyncadd [#allocation6], 4294967168 }
  0x3d   :  { %8687 = dma.done.wait [#allocation9], 2304  }
  0x3e   :  { %8688 = vsyncadd [#allocation9], 4294964992 }
  0x3f   :  { %8689 = dma.done.wait [#allocation12], 10240  }
  0x40   :  { %8690 = vsyncadd [#allocation12], 4294957056  ;;  %v8708_v0 = vmov 0.0   ;;  %vm8709_vm0 = vmmov 0   ;;  %vm122_vm1 = vcmask 1041408   ;;  %v114_v2 = vld [vmem:[#allocation8] sm:$0xff] }
  0x41   :  { %7683 = vmatprep.subr.mxu0 %v8708_v0  ;;  %7687 = vmatprep.mubr.msk.f32.mxu0 %vm8709_vm0, %v8708_v0  ;;  %v115_v1 = vld [vmem:[#allocation8 + $0x8] sm:$0x3]  ;;  %v113_v3 = vld [vmem:[#allocation5] sm:$0xff]  ;;  %vm118_vm2 = vcmask 80896   ;;  %v7707_v4 = vld [vmem:[#allocation10 + $0x74] ss:$8 sps:$4 sm:$0xff]  }
  0x42   :  { %7684 = vmatpush3.msk.msra.mxu0 %vm122_vm1, %v115_v1  ;;  %v7709_v5 = vld [vmem:[#allocation10 + $0x70] ss:$8 sps:$4 sm:$0xff]   ;;  %323 = vmatprep.subr.bf16.mxu1 %v7707_v4  ;;  %v7710_v6 = vld [vmem:[#allocation10 + $0x64] ss:$8 sps:$4 sm:$0xff]   ;;  %v7712_v7 = vld [vmem:[#allocation10 + $0x60] ss:$8 sps:$4 sm:$0xff]  }
  0x43   :  { %7685 = vmatprep.subr.mxu0 %v8708_v0  ;;  %324 = vmatpush1.bf16.msra.mxu1 %v7709_v5  ;;  %v7713_v8 = vld [vmem:[#allocation10 + $0x54] ss:$8 sps:$4 sm:$0xff]   ;;  %v7715_v9 = vld [vmem:[#allocation10 + $0x50] ss:$8 sps:$4 sm:$0xff]   ;;  %v7716_v10 = vld [vmem:[#allocation10 + $0x44] ss:$8 sps:$4 sm:$0xff]  }
  0x44   :  { %7686 = vmatpush3.msra.mxu0 %v114_v2  ;;  %325 = vmatprep.subr.bf16.mxu1 %v7710_v6  ;;  %v7718_v11 = vld [vmem:[#allocation10 + $0x40] ss:$8 sps:$4 sm:$0xff]   ;;  %v7719_v12 = vld [vmem:[#allocation10 + $0x34] ss:$8 sps:$4 sm:$0xff]   ;;  %v7721_v13 = vld [vmem:[#allocation10 + $0x30] ss:$8 sps:$4 sm:$0xff]  }
  0x45   :  { %7688 = vmatmul.mubr.msk.f32.vlgmr.msra.gmra.mxu0 %vm118_vm2, %v113_v3  ;;  %v7722_v14 = vld [vmem:[#allocation10 + $0x24] ss:$8 sps:$4 sm:$0xff]   ;;  %v7724_v15 = vld [vmem:[#allocation10 + $0x20] ss:$8 sps:$4 sm:$0xff]   ;;  %v7725_v16 = vld [vmem:[#allocation10 + $0x14] ss:$8 sps:$4 sm:$0xff]  }
  0x46   :  { %v7727_v17 = vld [vmem:[#allocation10 + $0x10] ss:$8 sps:$4 sm:$0xff]   ;;  %v7728_v18 = vld [vmem:[#allocation10 + $0x4] ss:$8 sps:$4 sm:$0xff]   ;;  %v8710_v19 = vmov 0   ;;  %s8711_s2 = smov [#allocation2]  }
  0x47   :  { %326 = vmatpush1.bf16.msra.mxu1 %v7712_v7  ;;  %355 = vmatprep.mubr.bf16.mxu1 %v8710_v19  ;;  %v7730_v20 = vld [vmem:[#allocation10] ss:$8 sps:$4 sm:$0xff]   ;;  %v7733_v22 = vld [vmem:[#allocation11 + $0xe4] ss:$16 sps:$4 sm:$0xff]   ;;  %v7736_v23 = vld [vmem:[#allocation11 + $0xec] ss:$16 sps:$4 sm:$0xff]  }
  0x48   :  { %327 = vmatprep.subr.bf16.mxu1 %v7713_v8  ;;  %v7731_v21 = vld [vmem:[#allocation11 + $0xe0] ss:$16 sps:$4 sm:$0xff]   ;;  %v7739_v24 = vld [vmem:[#allocation11 + $0xc4] ss:$16 sps:$4 sm:$0xff]   ;;  %826 = vmatprep.subr.bf16.mxu0 %v7733_v22  ;;  %v7734_v59 = vld [vmem:[#allocation11 + $0xe8] ss:$16 sps:$4 sm:$0xff]  }
  0x49   :  { %827 = vmatpush1.bf16.msra.mxu0 %v7731_v21  ;;  %v7737_v25 = vld [vmem:[#allocation11 + $0xc0] ss:$16 sps:$4 sm:$0xff]   ;;  %v7745_v26 = vld [vmem:[#allocation11 + $0xa4] ss:$16 sps:$4 sm:$0xff]   ;;  %v7742_v61 = vld [vmem:[#allocation11 + $0xcc] ss:$16 sps:$4 sm:$0xff]  }
  0x4a   :  { %828 = vmatprep.subr.bf16.mxu0 %v7739_v24  ;;  %v7743_v27 = vld [vmem:[#allocation11 + $0xa0] ss:$16 sps:$4 sm:$0xff]   ;;  %v7751_v28 = vld [vmem:[#allocation11 + $0x84] ss:$16 sps:$4 sm:$0xff]   ;;  %v7740_v62 = vld [vmem:[#allocation11 + $0xc8] ss:$16 sps:$4 sm:$0xff]  }
  0x4b   :  { %328 = vmatpush1.bf16.msra.mxu1 %v7715_v9  ;;  %v7749_v29 = vld [vmem:[#allocation11 + $0x80] ss:$16 sps:$4 sm:$0xff]   ;;  %v117_v55 = vld [vmem:[#allocation13 + $0x4] ss:$0 sm:$0xff]  ;;  %v7748_v63 = vld [vmem:[#allocation11 + $0xac] ss:$16 sps:$4 sm:$0xff]  }
  0x4c   :  { %329 = vmatprep.subr.bf16.mxu1 %v7716_v10  ;;  %v116_v53 = vld [vmem:[#allocation13] ss:$0 sm:$0xff]  ;;  %v7746_v0 = vld [vmem:[#allocation11 + $0xa8] ss:$16 sps:$4 sm:$0xff]   ;;  %v7754_v1 = vld [vmem:[#allocation11 + $0x8c] ss:$16 sps:$4 sm:$0xff]  }
  0x4d   :  { %829 = vmatpush1.bf16.msra.mxu0 %v7737_v25  ;;  %v7752_v2 = vld [vmem:[#allocation11 + $0x88] ss:$16 sps:$4 sm:$0xff]   ;;  %v7757_v3 = vld [vmem:[#allocation11 + $0x64] ss:$16 sps:$4 sm:$0xff]   ;;  %v7760_v4 = vld [vmem:[#allocation11 + $0x6c] ss:$16 sps:$4 sm:$0xff]  }
  0x4e   :  { %830 = vmatprep.subr.bf16.mxu0 %v7745_v26  ;;  %v7755_v5 = vld [vmem:[#allocation11 + $0x60] ss:$16 sps:$4 sm:$0xff]   ;;  %v7758_v6 = vld [vmem:[#allocation11 + $0x68] ss:$16 sps:$4 sm:$0xff]   ;;  %v7763_v7 = vld [vmem:[#allocation11 + $0x44] ss:$16 sps:$4 sm:$0xff]  }
  0x4f   :  { %330 = vmatpush1.bf16.msra.mxu1 %v7718_v11  ;;  %v7766_v8 = vld [vmem:[#allocation11 + $0x4c] ss:$16 sps:$4 sm:$0xff]   ;;  %v7761_v9 = vld [vmem:[#allocation11 + $0x40] ss:$16 sps:$4 sm:$0xff]   ;;  %v7764_v10 = vld [vmem:[#allocation11 + $0x48] ss:$16 sps:$4 sm:$0xff]  }
  0x50   :  { %331 = vmatprep.subr.bf16.mxu1 %v7719_v12  ;;  %v7769_v11 = vld [vmem:[#allocation11 + $0x24] ss:$16 sps:$4 sm:$0xff]   ;;  %v7772_v12 = vld [vmem:[#allocation11 + $0x2c] ss:$16 sps:$4 sm:$0xff]   ;;  %v7779_v21 = vld [vmem:[#allocation11 + $0x1e0] ss:$16 sps:$4 sm:$0xff]  }
  0x51   :  { %831 = vmatpush1.bf16.msra.mxu0 %v7743_v27  ;;  %v7781_v19 = vld [vmem:[#allocation11 + $0x1e4] ss:$16 sps:$4 sm:$0xff]   ;;  %v7782_v22 = vld [vmem:[#allocation11 + $0x1e8] ss:$16 sps:$4 sm:$0xff]   ;;  %v7790_v24 = vld [vmem:[#allocation11 + $0x1cc] ss:$16 sps:$4 sm:$0xff]  }
  0x52   :  { %832 = vmatprep.subr.bf16.mxu0 %v7751_v28  ;;  %v7785_v25 = vld [vmem:[#allocation11 + $0x1c0] ss:$16 sps:$4 sm:$0xff]   ;;  %v7788_v26 = vld [vmem:[#allocation11 + $0x1c8] ss:$16 sps:$4 sm:$0xff]   ;;  %v7793_v27 = vld [vmem:[#allocation11 + $0x1a4] ss:$16 sps:$4 sm:$0xff]  }
  0x53   :  { %332 = vmatpush1.bf16.msra.mxu1 %v7721_v13  ;;  %v7767_v13 = vld [vmem:[#allocation11 + $0x20] ss:$16 sps:$4 sm:$0xff]   ;;  %v7796_v28 = vld [vmem:[#allocation11 + $0x1ac] ss:$16 sps:$4 sm:$0xff]   ;;  %s97_s6 = sshll.u32 %s8711_s2, 4  ;;  %s8712_s27 = smov [#allocation3]   ;;  %s98_s6 = int_to_ptr.vmem [resolvable:$true] %s97_s6 }
  0x54   :  { %333 = vmatprep.subr.bf16.mxu1 %v7722_v14  ;;  %v7770_v14 = vld [vmem:[#allocation11 + $0x28] ss:$16 sps:$4 sm:$0xff]   ;;  %s109_s28 = sshll.u32 %s8712_s27, 4  ;;  %s8633_s8 = scalar_lea.vmem %s98_s6, 32768  ;;  %s110_s28 = int_to_ptr.vmem [resolvable:$true] %s109_s28 }
  0x55   :  { %833 = vmatpush1.bf16.msra.mxu0 %v7749_v29  ;;  %v7791_v29 = vld [vmem:[#allocation11 + $0x1a0] ss:$16 sps:$4 sm:$0xff]   ;;  %p8634_p11 = scmp.ne.s32.totalorder %s98_s6, %s8633_s8  ;;  %p8638_p12 = scmp.lt.s32.totalorder %s98_s6, %s98_s6 }
  0x56   :  { %834 = vmatprep.subr.bf16.mxu0 %v7757_v3  ;;  %p8639_p13 = scmp.lt.s32.totalorder %s8633_s8, %s8633_s8 }
  0x57   :  { %334 = vmatpush1.bf16.msra.mxu1 %v7724_v15  ;;  %v7775_v15 = vld [vmem:[#allocation11 + $0x4] ss:$16 sps:$4 sm:$0xff]  }
  0x58   :  { %335 = vmatprep.subr.bf16.mxu1 %v7725_v16  ;;  %v7778_v16 = vld [vmem:[#allocation11 + $0xc] ss:$16 sps:$4 sm:$0xff]   ;;  %p8640_p0 = por %p8639_p13, %p8638_p12 }
  0x59   :  { %835 = vmatpush1.bf16.msra.mxu0 %v7755_v5 }
  0x5a   :  { %836 = vmatprep.subr.bf16.mxu0 %v7763_v7  ;;  %p8641_p1 = pnand %p8640_p0, %p8634_p11 }
  0x5b   :  { %336 = vmatpush1.bf16.msra.mxu1 %v7727_v17  ;;  %v7773_v17 = vld [vmem:[#allocation11] ss:$16 sps:$4 sm:$0xff]  }
  0x5c   :  { %337 = vmatprep.subr.bf16.mxu1 %v7728_v18  ;;  %v7776_v18 = vld [vmem:[#allocation11 + $0x8] ss:$16 sps:$4 sm:$0xff]  }
  0x5d   :  { %837 = vmatpush1.bf16.msra.mxu0 %v7761_v9 }
  0x5e   :  { %838 = vmatprep.subr.bf16.mxu0 %v7769_v11 }
  0x5f   :  { %338 = vmatpush1.bf16.msra.mxu1 %v7730_v20  ;;  %v7784_v20 = vld [vmem:[#allocation11 + $0x1ec] ss:$16 sps:$4 sm:$0xff]  }
  0x60   :  { %867 = vmatprep.subr.bf16.mxu1 %v7736_v23  ;;  %v7787_v23 = vld [vmem:[#allocation11 + $0x1c4] ss:$16 sps:$4 sm:$0xff]  }
  0x61   :  { %839 = vmatpush1.bf16.msra.mxu0 %v7767_v13 }
  0x62   :  { %840 = vmatprep.subr.bf16.mxu0 %v7775_v15 }
  0x65   :  { %841 = vmatpush1.bf16.msra.mxu0 %v7773_v17 }
  0x66   :  { %842 = vmatprep.subr.bf16.mxu0 %v7781_v19 }
  0x69   :  { %843 = vmatpush2.bf16.msra.mxu0 %v7779_v21 }
  0x6a   :  { %844 = vmatprep.subr.bf16.mxu0 %v7787_v23 }
  0x6d   :  { %845 = vmatpush2.bf16.msra.mxu0 %v7785_v25 }
  0x6e   :  { %846 = vmatprep.subr.bf16.mxu0 %v7793_v27 }
  0x71   :  { %847 = vmatpush2.bf16.msra.mxu0 %v7791_v29 }
 0x105   :  { %v192_v30 = vpop.f32.mrf.mxu0 }
 0x106   :  { %v196_v31 = vrot.slane %v192_v30, 4  ;;  %v204_v32 = vmul.f32 %v192_v30, %v192_v30 }
 0x107   :  { %v7689_v33 = vpop.f32.mrf.mxu0 }
 0x108   :  { %v197_v34 = vadd.f32 %v196_v31, %v192_v30  ;;  %v205_v35 = vrot.slane %v204_v32, 4  ;;  %v7799_v31 = vld [vmem:[#allocation11 + $0x184] ss:$16 sps:$4 sm:$0xff]   ;;  %v7797_v33 = vld [vmem:[#allocation11 + $0x180] ss:$16 sps:$4 sm:$0xff]  }
 0x109   :  { %848 = vmatprep.subr.bf16.mxu0 %v7799_v31 }
 0x10a   :  { %v198_v36 = vrot.slane %v197_v34, 2  ;;  %v206_v37 = vadd.f32 %v205_v35, %v204_v32  ;;  %v7802_v32 = vld [vmem:[#allocation11 + $0x18c] ss:$16 sps:$4 sm:$0xff]   ;;  %849 = vmatpush2.bf16.msra.mxu0 %v7797_v33  ;;  %v7805_v35 = vld [vmem:[#allocation11 + $0x164] ss:$16 sps:$4 sm:$0xff]  }
 0x10b   :  { %850 = vmatprep.subr.bf16.mxu0 %v7805_v35  ;;  %v242_v33 = vld [vmem:[#allocation13 + $0x5] ss:$8 sm:$0x3] }
 0x10c   :  { %v199_v38 = vadd.f32 %v198_v36, %v197_v34  ;;  %v207_v39 = vrot.slane %v206_v37, 2  ;;  %v7800_v34 = vld [vmem:[#allocation11 + $0x188] ss:$16 sps:$4 sm:$0xff]   ;;  %v7808_v36 = vld [vmem:[#allocation11 + $0x16c] ss:$16 sps:$4 sm:$0xff]  }
 0x10e   :  { %v200_v40 = vrot.slane %v199_v38, 1  ;;  %v208_v41 = vadd.f32 %v207_v39, %v206_v37  ;;  %v7803_v37 = vld [vmem:[#allocation11 + $0x160] ss:$16 sps:$4 sm:$0xff]   ;;  %v7811_v39 = vld [vmem:[#allocation11 + $0x144] ss:$16 sps:$4 sm:$0xff]  }
 0x10f   :  { %851 = vmatpush2.bf16.msra.mxu0 %v7803_v37 }
 0x110   :  { %v201_v42 = vadd.f32 %v200_v40, %v199_v38  ;;  %v209_v43 = vrot.slane %v208_v41, 1  ;;  %v7806_v38 = vld [vmem:[#allocation11 + $0x168] ss:$16 sps:$4 sm:$0xff]   ;;  %v7814_v40 = vld [vmem:[#allocation11 + $0x14c] ss:$16 sps:$4 sm:$0xff]   ;;  %852 = vmatprep.subr.bf16.mxu0 %v7811_v39 }
 0x112   :  { %v203_v44 = vmul.f32 0.125, %v201_v42  ;;  %v210_v45 = vadd.f32 %v209_v43, %v208_v41  ;;  %v7809_v41 = vld [vmem:[#allocation11 + $0x140] ss:$16 sps:$4 sm:$0xff]   ;;  %v7812_v42 = vld [vmem:[#allocation11 + $0x148] ss:$16 sps:$4 sm:$0xff]  }
 0x113   :  { %853 = vmatpush2.bf16.msra.mxu0 %v7809_v41  ;;  %v7815_v43 = vld [vmem:[#allocation11 + $0x120] ss:$16 sps:$4 sm:$0xff]  }
 0x114   :  { %v211_v46 = vmul.f32 0.125, %v210_v45  ;;  %v212_v47 = vmul.f32 %v203_v44, %v203_v44  ;;  %v215_v51 = vsub.f32 %v192_v30, %v203_v44  ;;  %v7794_v30 = vld [vmem:[#allocation11 + $0x1a8] ss:$16 sps:$4 sm:$0xff]   ;;  %v7817_v44 = vld [vmem:[#allocation11 + $0x124] ss:$16 sps:$4 sm:$0xff]  }
 0x115   :  { %v7818_v45 = vld [vmem:[#allocation11 + $0x128] ss:$16 sps:$4 sm:$0xff]   ;;  %854 = vmatprep.subr.bf16.mxu0 %v7817_v44 }
 0x116   :  { %v213_v48 = vsub.f32 %v211_v46, %v212_v47  ;;  %v7820_v46 = vld [vmem:[#allocation11 + $0x12c] ss:$16 sps:$4 sm:$0xff]   ;;  %v7823_v47 = vld [vmem:[#allocation11 + $0x104] ss:$16 sps:$4 sm:$0xff]  }
 0x117   :  { %855 = vmatpush2.bf16.msra.mxu0 %v7815_v43 }
 0x118   :  { %v214_v49 = vmax.f32 %v213_v48, 0.0  ;;  %v7826_v48 = vld [vmem:[#allocation11 + $0x10c] ss:$16 sps:$4 sm:$0xff]   ;;  %856 = vmatprep.subr.bf16.mxu0 %v7823_v47 }
 0x11a   :  { %v216_v50 = vadd.f32 1e-05, %v214_v49  ;;  %v7821_v49 = vld [vmem:[#allocation11 + $0x100] ss:$16 sps:$4 sm:$0xff]  }
 0x11b   :  { %857 = vmatpush2.bf16.msra.mxu0 %v7821_v49 }
 0x11c   :  { %7827 = vrsqrt.f32 %v216_v50  ;;  %v7824_v50 = vld [vmem:[#allocation11 + $0x108] ss:$16 sps:$4 sm:$0xff]  }
 0x129   :  { %v7828_v52 = vpop.eup %7827 }
 0x12a   :  { %v218_v54 = vmul.f32 %v7828_v52, %v215_v51 }
 0x12c   :  { %v219_v56 = vmul.f32 %v218_v54, %v116_v53 }
 0x12e   :  { %v220_v57 = vadd.f32 %v219_v56, %v117_v55 }
 0x130   :  { %v221_v58 = vmax.f32 %v220_v57, 0.0 }
 0x132   :  { %v222_v60 = vpack.c.bf16 %v221_v58, %v221_v58 }
 0x134   :  { %356 = vmatmul.mubr.bf16.vlgmr.msra.gmra.mxu1 %v222_v60 }
 0x135   :  { %868 = vmatpush1.bf16.msra.mxu1 %v7734_v59 }
 0x136   :  { %869 = vmatprep.subr.bf16.mxu1 %v7742_v61 }
 0x139   :  { %870 = vmatpush1.bf16.msra.mxu1 %v7740_v62 }
 0x13a   :  { %871 = vmatprep.subr.bf16.mxu1 %v7748_v63 }
 0x13d   :  { %872 = vmatpush1.bf16.msra.mxu1 %v7746_v0 }
 0x13e   :  { %873 = vmatprep.subr.bf16.mxu1 %v7754_v1 }
 0x141   :  { %874 = vmatpush1.bf16.msra.mxu1 %v7752_v2 }
 0x142   :  { %875 = vmatprep.subr.bf16.mxu1 %v7760_v4 }
 0x145   :  { %876 = vmatpush1.bf16.msra.mxu1 %v7758_v6 }
 0x146   :  { %877 = vmatprep.subr.bf16.mxu1 %v7766_v8 }
 0x149   :  { %878 = vmatpush1.bf16.msra.mxu1 %v7764_v10 }
 0x14a   :  { %879 = vmatprep.subr.bf16.mxu1 %v7772_v12 }
 0x14d   :  { %880 = vmatpush1.bf16.msra.mxu1 %v7770_v14 }
 0x14e   :  { %881 = vmatprep.subr.bf16.mxu1 %v7778_v16 }
 0x151   :  { %882 = vmatpush1.bf16.msra.mxu1 %v7776_v18 }
 0x152   :  { %883 = vmatprep.subr.bf16.mxu1 %v7784_v20 }
 0x155   :  { %884 = vmatpush2.bf16.msra.mxu1 %v7782_v22 }
 0x156   :  { %885 = vmatprep.subr.bf16.mxu1 %v7790_v24 }
 0x159   :  { %886 = vmatpush2.bf16.msra.mxu1 %v7788_v26 }
 0x15a   :  { %887 = vmatprep.subr.bf16.mxu1 %v7796_v28  ;;  %v409_v28 = vlaneseq }
 0x15d   :  { %888 = vmatpush2.bf16.msra.mxu1 %v7794_v30  ;;  %v8775_v30 = vshrl.u32 %v409_v28, 7 }
 0x15e   :  { %889 = vmatprep.subr.bf16.mxu1 %v7802_v32  ;;  %v240_v32 = vld [vmem:[#allocation13 + $0x1] ss:$8 sm:$0x3] }
 0x15f   :  { %v8778_v31 = vsub.s32 0, %v8775_v30 }
 0x161   :  { %890 = vmatpush2.bf16.msra.mxu1 %v7800_v34  ;;  %v8781_v34 = vsub.s32 1, %v8775_v30  ;;  %v425_v39 = vrot.slane %v242_v33, %v8778_v31 }
 0x162   :  { %891 = vmatprep.subr.bf16.mxu1 %v7808_v36  ;;  %v412_v36 = vrot.slane %v240_v32, %v8778_v31 }
 0x163   :  { %v416_v41 = vrot.slane %v240_v32, %v8781_v34 }
 0x165   :  { %892 = vmatpush2.bf16.msra.mxu1 %v7806_v38 }
 0x166   :  { %893 = vmatprep.subr.bf16.mxu1 %v7814_v40 }
 0x169   :  { %894 = vmatpush2.bf16.msra.mxu1 %v7812_v42 }
 0x16a   :  { %895 = vmatprep.subr.bf16.mxu1 %v7820_v46 }
 0x16d   :  { %896 = vmatpush2.bf16.msra.mxu1 %v7818_v45  ;;  %v429_v45 = vrot.slane %v242_v33, %v8781_v34 }
 0x16e   :  { %897 = vmatprep.subr.bf16.mxu1 %v7826_v48 }
 0x171   :  { %898 = vmatpush2.bf16.msra.mxu1 %v7824_v50 }
 0x1f4   :  { %v357_v51 = vpop.f32.mrf.mxu1 }
 0x1f5   :  { %v364_v52 = vrot.slane %v357_v51, 4  ;;  %v378_v53 = vmul.f32 %v357_v51, %v357_v51 }
 0x1f6   :  { %v359_v54 = vpop.f32.mrf.mxu1 }
 0x1f7   :  { %v365_v55 = vadd.f32 %v364_v52, %v357_v51  ;;  %v380_v56 = vrot.slane %v378_v53, 4  ;;  %v370_v57 = vrot.slane %v359_v54, 4  ;;  %v379_v58 = vmul.f32 %v359_v54, %v359_v54 }
 0x1f8   :  { %v361_v59 = vpop.f32.mrf.mxu1 }
 0x1f9   :  { %v366_v60 = vrot.slane %v365_v55, 2  ;;  %v381_v61 = vadd.f32 %v380_v56, %v378_v53  ;;  %v371_v62 = vadd.f32 %v370_v57, %v359_v54  ;;  %v386_v63 = vrot.slane %v379_v58, 4 }
 0x1fa   :  { %v362_v0 = vpop.f32.mrf.mxu1 }
 0x1fb   :  { %v367_v1 = vadd.f32 %v366_v60, %v365_v55  ;;  %v382_v2 = vrot.slane %v381_v61, 2  ;;  %v372_v3 = vrot.slane %v371_v62, 2  ;;  %v387_v4 = vadd.f32 %v386_v63, %v379_v58 }
 0x1fd   :  { %v368_v5 = vrot.slane %v367_v1, 1  ;;  %v383_v6 = vadd.f32 %v382_v2, %v381_v61  ;;  %v373_v7 = vadd.f32 %v372_v3, %v371_v62  ;;  %v388_v8 = vrot.slane %v387_v4, 2 }
 0x1ff   :  { %v369_v9 = vadd.f32 %v368_v5, %v367_v1  ;;  %v384_v10 = vrot.slane %v383_v6, 1  ;;  %v374_v11 = vrot.slane %v373_v7, 1  ;;  %v389_v12 = vadd.f32 %v388_v8, %v387_v4 }
 0x201   :  { %v376_v13 = vmul.f32 0.125, %v369_v9  ;;  %v385_v14 = vadd.f32 %v384_v10, %v383_v6  ;;  %v375_v15 = vadd.f32 %v374_v11, %v373_v7  ;;  %v390_v16 = vrot.slane %v389_v12, 1 }
 0x203   :  { %v392_v17 = vmul.f32 0.125, %v385_v14  ;;  %v394_v18 = vmul.f32 %v376_v13, %v376_v13  ;;  %v377_v19 = vmul.f32 0.125, %v375_v15  ;;  %v391_v20 = vadd.f32 %v390_v16, %v389_v12 }
 0x204   :  { %v400_v35 = vsub.f32 %v357_v51, %v376_v13 }
 0x205   :  { %v396_v21 = vsub.f32 %v392_v17, %v394_v18  ;;  %v395_v22 = vmul.f32 %v377_v19, %v377_v19  ;;  %v393_v23 = vmul.f32 0.125, %v391_v20  ;;  %v401_v40 = vsub.f32 %v359_v54, %v377_v19 }
 0x207   :  { %v398_v24 = vmax.f32 %v396_v21, 0.0  ;;  %v397_v25 = vsub.f32 %v393_v23, %v395_v22 }
 0x209   :  { %v402_v26 = vadd.f32 1e-05, %v398_v24  ;;  %v399_v27 = vmax.f32 %v397_v25, 0.0 }
 0x20b   :  { %7829 = vrsqrt.f32 %v402_v26  ;;  %v403_v29 = vadd.f32 1e-05, %v399_v27 }
 0x20d   :  { %7831 = vrsqrt.f32 %v403_v29 }
 0x218   :  { %v7830_v37 = vpop.eup %7829 }
 0x219   :  { %v406_v38 = vmul.f32 %v7830_v37, %v400_v35 }
 0x21a   :  { %v7832_v42 = vpop.eup %7831 }
 0x21b   :  { %v419_v43 = vmul.f32 %v412_v36, %v406_v38  ;;  %v407_v44 = vmul.f32 %v7832_v42, %v401_v40 }
 0x21d   :  { %v432_v46 = vadd.f32 %v425_v39, %v419_v43  ;;  %v420_v47 = vmul.f32 %v416_v41, %v407_v44 }
 0x21f   :  { %v433_v48 = vadd.f32 %v429_v45, %v420_v47  ;;  %v434_v49 = vmax.f32 %v432_v46, 0.0 }
 0x221   :  { %v435_v50 = vmax.f32 %v433_v48, 0.0  ;;  %v436_v52 = vpack.c.bf16 %v434_v49, %v434_v49 }
 0x223   :  { %v437_v51 = vpack.c.bf16 %v435_v50, %v435_v50 }
 0x225   :  { %858 = vmatprep.mubr.bf16.mxu0 %v437_v51  ;;  %899 = vmatprep.mubr.bf16.mxu1 %v437_v51 }
 0x226   :  { %859 = vmatmul.mubr.bf16.vlgmr.msra.gmra.mxu0 %v436_v52  ;;  %900 = vmatmul.mubr.bf16.vlgmr.msra.gmra.mxu1 %v436_v52 }
 0x227   :  { %8644 = shalt.err (!%p8641_p1)  }
 0x228   :  { %100 = dma.hbm_to_vmem [thread:$0]  %s9058_s4, 32768, %s98_s6, [#allocation4] }
 0x229   :  { %s8653_s11 = scalar_lea.vmem %s110_s28, 57344  ;;  %p8658_p3 = scmp.lt.s32.totalorder %s110_s28, %s110_s28 }
 0x22a   :  { %p8654_p2 = scmp.ne.s32.totalorder %s110_s28, %s8653_s11  ;;  %p8659_p4 = scmp.lt.s32.totalorder %s8653_s11, %s8653_s11 }
 0x22c   :  { %p8660_p5 = por %p8659_p4, %p8658_p3 }
 0x22e   :  { %p8661_p6 = pnand %p8660_p5, %p8654_p2 }
 0x230   :  { %8664 = shalt.err (!%p8661_p6)  }
 0x231   :  { %112 = dma.hbm_to_vmem [thread:$0]  %s9059_s5, 57344, %s110_s28, [#allocation4 + $0x1] }
 0x2e6   :  { %v8793_v53 = vpop.f32.mrf.mxu0  ;;  %v8795_v54 = vpop.f32.mrf.mxu1 }
 0x2e7   :  { %v908_v55 = vrot.slane %v8793_v53, 4  ;;  %v936_v56 = vmul.f32 %v8793_v53, %v8793_v53  ;;  %v920_v57 = vrot.slane %v8795_v54, 4  ;;  %v938_v58 = vmul.f32 %v8795_v54, %v8795_v54 }
 0x2e8   :  { %v8803_v59 = vpop.f32.mrf.mxu0  ;;  %v8805_v60 = vpop.f32.mrf.mxu1 }
 0x2e9   :  { %v909_v61 = vadd.f32 %v908_v55, %v8793_v53  ;;  %v940_v62 = vrot.slane %v936_v56, 4  ;;  %v921_v63 = vadd.f32 %v920_v57, %v8795_v54  ;;  %v952_v0 = vrot.slane %v938_v58, 4 }
 0x2ea   :  { %v914_v1 = vrot.slane %v8803_v59, 4  ;;  %v937_v2 = vmul.f32 %v8803_v59, %v8803_v59  ;;  %v926_v3 = vrot.slane %v8805_v60, 4  ;;  %v939_v4 = vmul.f32 %v8805_v60, %v8805_v60  ;;  %v864_v5 = vpop.f32.mrf.mxu0  ;;  %v905_v6 = vpop.f32.mrf.mxu1 }
 0x2eb   :  { %v910_v7 = vrot.slane %v909_v61, 2  ;;  %v941_v8 = vadd.f32 %v940_v62, %v936_v56  ;;  %v922_v9 = vrot.slane %v921_v63, 2  ;;  %v953_v10 = vadd.f32 %v952_v0, %v938_v58 }
 0x2ec   :  { %v915_v11 = vadd.f32 %v914_v1, %v8803_v59  ;;  %v946_v12 = vrot.slane %v937_v2, 4  ;;  %v927_v13 = vadd.f32 %v926_v3, %v8805_v60  ;;  %v958_v14 = vrot.slane %v939_v4, 4  ;;  %v865_v15 = vpop.f32.mrf.mxu0  ;;  %v906_v16 = vpop.f32.mrf.mxu1 }
 0x2ed   :  { %v911_v17 = vadd.f32 %v910_v7, %v909_v61  ;;  %v942_v18 = vrot.slane %v941_v8, 2  ;;  %v923_v19 = vadd.f32 %v922_v9, %v921_v63  ;;  %v954_v20 = vrot.slane %v953_v10, 2  ;;  %v503_v16 = vld [vmem:[#allocation13 + $0x2] ss:$8 sm:$0xf] }
 0x2ee   :  { %v916_v21 = vrot.slane %v915_v11, 2  ;;  %v947_v22 = vadd.f32 %v946_v12, %v937_v2  ;;  %v928_v23 = vrot.slane %v927_v13, 2  ;;  %v959_v24 = vadd.f32 %v958_v14, %v939_v4 }
 0x2ef   :  { %v912_v25 = vrot.slane %v911_v17, 1  ;;  %v943_v26 = vadd.f32 %v942_v18, %v941_v8  ;;  %v924_v27 = vrot.slane %v923_v19, 1  ;;  %v955_v28 = vadd.f32 %v954_v20, %v953_v10  ;;  %v505_v18 = vld [vmem:[#allocation13 + $0x6] ss:$8 sm:$0xf] }
 0x2f0   :  { %v917_v29 = vadd.f32 %v916_v21, %v915_v11  ;;  %v948_v32 = vrot.slane %v947_v22, 2  ;;  %v929_v33 = vadd.f32 %v928_v23, %v927_v13  ;;  %v960_v35 = vrot.slane %v959_v24, 2 }
 0x2f1   :  { %v913_v36 = vadd.f32 %v912_v25, %v911_v17  ;;  %v944_v37 = vrot.slane %v943_v26, 1  ;;  %v925_v38 = vadd.f32 %v924_v27, %v923_v19  ;;  %v956_v39 = vrot.slane %v955_v28, 1 }
 0x2f2   :  { %v918_v40 = vrot.slane %v917_v29, 1  ;;  %v949_v41 = vadd.f32 %v948_v32, %v947_v22  ;;  %v930_v42 = vrot.slane %v929_v33, 1  ;;  %v961_v43 = vadd.f32 %v960_v35, %v959_v24 }
 0x2f3   :  { %v932_v44 = vmul.f32 0.125, %v913_v36  ;;  %v945_v45 = vadd.f32 %v944_v37, %v943_v26  ;;  %v934_v46 = vmul.f32 0.125, %v925_v38  ;;  %v957_v47 = vadd.f32 %v956_v39, %v955_v28 }
 0x2f4   :  { %v919_v48 = vadd.f32 %v918_v40, %v917_v29  ;;  %v950_v49 = vrot.slane %v949_v41, 1  ;;  %v931_v50 = vadd.f32 %v930_v42, %v929_v33  ;;  %v962_v51 = vrot.slane %v961_v43, 1 }
 0x2f5   :  { %v964_v52 = vmul.f32 0.125, %v945_v45  ;;  %v968_v55 = vmul.f32 %v932_v44, %v932_v44  ;;  %v966_v56 = vmul.f32 0.125, %v957_v47  ;;  %v970_v57 = vmul.f32 %v934_v46, %v934_v46 }
 0x2f6   :  { %v933_v58 = vmul.f32 0.125, %v919_v48  ;;  %v951_v61 = vadd.f32 %v950_v49, %v949_v41  ;;  %v935_v63 = vmul.f32 0.125, %v931_v50  ;;  %v963_v0 = vadd.f32 %v962_v51, %v961_v43 }
 0x2f7   :  { %v972_v62 = vsub.f32 %v964_v52, %v968_v55  ;;  %v974_v1 = vsub.f32 %v966_v56, %v970_v57  ;;  %v8818_v17 = vsub.s32 2, %v8775_v30  ;;  %v980_v19 = vsub.f32 %v8793_v53, %v932_v44 }
 0x2f8   :  { %v965_v2 = vmul.f32 0.125, %v951_v61  ;;  %v969_v3 = vmul.f32 %v933_v58, %v933_v58  ;;  %v967_v5 = vmul.f32 0.125, %v963_v0  ;;  %v971_v6 = vmul.f32 %v935_v63, %v935_v63 }
 0x2f9   :  { %v976_v4 = vmax.f32 %v972_v62, 0.0  ;;  %v978_v7 = vmax.f32 %v974_v1, 0.0  ;;  %v1000_v20 = vrot.slane %v503_v16, %v8778_v31  ;;  %v8823_v21 = vsub.s32 3, %v8775_v30 }
 0x2fa   :  { %v973_v8 = vsub.f32 %v965_v2, %v969_v3  ;;  %v975_v10 = vsub.f32 %v967_v5, %v971_v6  ;;  %v982_v23 = vsub.f32 %v8795_v54, %v934_v46  ;;  %v1008_v24 = vrot.slane %v503_v16, %v8818_v17 }
 0x2fb   :  { %v984_v9 = vadd.f32 1e-05, %v976_v4  ;;  %v986_v11 = vadd.f32 1e-05, %v978_v7  ;;  %v1025_v27 = vrot.slane %v505_v18, %v8778_v31  ;;  %v1033_v29 = vrot.slane %v505_v18, %v8818_v17 }
 0x2fc   :  { %v977_v12 = vmax.f32 %v973_v8, 0.0  ;;  %v979_v13 = vmax.f32 %v975_v10, 0.0  ;;  %v981_v32 = vsub.f32 %v8803_v59, %v933_v58  ;;  %v1004_v53 = vrot.slane %v503_v16, %v8781_v34 }
 0x2fd   :  { %7833 = vrsqrt.f32 %v984_v9  ;;  %v983_v36 = vsub.f32 %v8805_v60, %v935_v63  ;;  %v1012_v37 = vrot.slane %v503_v16, %v8823_v21  ;;  %v1029_v40 = vrot.slane %v505_v18, %v8781_v34 }
 0x2fe   :  { %7835 = vrsqrt.f32 %v986_v11  ;;  %v985_v14 = vadd.f32 1e-05, %v977_v12  ;;  %v987_v15 = vadd.f32 1e-05, %v979_v13  ;;  %v1037_v43 = vrot.slane %v505_v18, %v8823_v21 }
 0x300   :  { %7837 = vrsqrt.f32 %v985_v14 }
 0x301   :  { %7839 = vrsqrt.f32 %v987_v15 }
 0x30a   :  { %v7834_v22 = vpop.eup %7833 }
 0x30b   :  { %v7836_v25 = vpop.eup %7835  ;;  %v992_v26 = vmul.f32 %v7834_v22, %v980_v19 }
 0x30c   :  { %v994_v28 = vmul.f32 %v7836_v25, %v982_v23 }
 0x30d   :  { %v7838_v33 = vpop.eup %7837  ;;  %v1017_v35 = vmul.f32 %v1000_v20, %v992_v26 }
 0x30e   :  { %v7840_v54 = vpop.eup %7839  ;;  %v1019_v38 = vmul.f32 %v1008_v24, %v994_v28  ;;  %v993_v39 = vmul.f32 %v7838_v33, %v981_v32 }
 0x30f   :  { %v8834_v41 = vadd.f32 %v1025_v27, %v1017_v35  ;;  %v995_v42 = vmul.f32 %v7840_v54, %v983_v36 }
 0x310   :  { %v8837_v44 = vadd.f32 %v1033_v29, %v1019_v38  ;;  %v1018_v59 = vmul.f32 %v1004_v53, %v993_v39 }
 0x311   :  { %v1046_v45 = vmax.f32 %v8834_v41, 0.0  ;;  %v1020_v46 = vmul.f32 %v1012_v37, %v995_v42 }
 0x312   :  { %v1048_v60 = vmax.f32 %v8837_v44, 0.0  ;;  %v1043_v47 = vadd.f32 %v1029_v40, %v1018_v59 }
 0x313   :  { %v1045_v48 = vadd.f32 %v1037_v43, %v1020_v46 }
 0x314   :  { %v1047_v49 = vmax.f32 %v1043_v47, 0.0 }
 0x315   :  { %v1049_v50 = vmax.f32 %v1045_v48, 0.0 }
 0x316   :  { %8691 = dma.done.wait [#allocation4], 32768 }
 0x317   :  { %8692 = vsyncadd [#allocation4], 4294934528  ;;  %v8841_v51 = vpack.c.bf16 %v1047_v49, %v1047_v49  ;;  %v8843_v52 = vpack.c.bf16 %v1049_v50, %v1049_v50  ;;  %v1114_v55 = vld [vmem:[#allocation2 + $0x1c0] sm:$0xff]  ;;  %v1103_v41 = vld [vmem:[#allocation2 + $0x168] sm:$0xff] }
 0x318   :  { %v1118_v56 = vld [vmem:[#allocation2 + $0x1e0] sm:$0xff] }
 0x319   :  { %2634 = vmatprep.mubr.bf16.mxu0 %v8841_v51  ;;  %2675 = vmatprep.mubr.bf16.mxu1 %v8843_v52  ;;  %v1242_v57 = vld [vmem:[#allocation2 + $0x5c0] sm:$0xff]  ;;  %v6943_v58 = vcombine.high %v1114_v55, %v1118_v56  ;;  %v6942_v62 = vcombine.low %v1114_v55, %v1118_v56 }
 0x31a   :  { %v1246_v61 = vld [vmem:[#allocation2 + $0x5e0] sm:$0xff] }
 0x31b   :  { %v1106_v63 = vld [vmem:[#allocation2 + $0x180] sm:$0xff]  ;;  %v7071_v1 = vcombine.high %v1242_v57, %v1246_v61  ;;  %v7070_v2 = vcombine.low %v1242_v57, %v1246_v61  ;;  %2602 = vmatprep.subr.bf16.mxu0 %v6943_v58 }
 0x31c   :  { %v1110_v0 = vld [vmem:[#allocation2 + $0x1a0] sm:$0xff]  ;;  %2603 = vmatpush1.bf16.msra.mxu0 %v6942_v62 }
 0x31d   :  { %v6935_v3 = vcombine.high %v1106_v63, %v1110_v0  ;;  %v1234_v4 = vld [vmem:[#allocation2 + $0x580] sm:$0xff]  ;;  %2643 = vmatprep.subr.bf16.mxu1 %v7071_v1  ;;  %v6934_v11 = vcombine.low %v1106_v63, %v1110_v0 }
 0x31e   :  { %v1238_v5 = vld [vmem:[#allocation2 + $0x5a0] sm:$0xff]  ;;  %2644 = vmatpush1.bf16.msra.mxu1 %v7070_v2 }
 0x31f   :  { %v1098_v6 = vld [vmem:[#allocation2 + $0x140] sm:$0xff]  ;;  %v7063_v7 = vcombine.high %v1234_v4, %v1238_v5  ;;  %2604 = vmatprep.subr.bf16.mxu0 %v6935_v3  ;;  %v7062_v12 = vcombine.low %v1234_v4, %v1238_v5 }
 0x320   :  { %v1102_v8 = vld [vmem:[#allocation2 + $0x160] sm:$0xff]  ;;  %2605 = vmatpush1.bf16.msra.mxu0 %v6934_v11 }
 0x321   :  { %v1226_v9 = vld [vmem:[#allocation2 + $0x540] sm:$0xff]  ;;  %v6927_v13 = vcombine.high %v1098_v6, %v1102_v8  ;;  %2645 = vmatprep.subr.bf16.mxu1 %v7063_v7  ;;  %v6926_v20 = vcombine.low %v1098_v6, %v1102_v8 }
 0x322   :  { %v1230_v10 = vld [vmem:[#allocation2 + $0x560] sm:$0xff]  ;;  %2646 = vmatpush1.bf16.msra.mxu1 %v7062_v12 }
 0x323   :  { %v7055_v14 = vcombine.high %v1226_v9, %v1230_v10  ;;  %v1090_v15 = vld [vmem:[#allocation2 + $0x100] sm:$0xff]  ;;  %2606 = vmatprep.subr.bf16.mxu0 %v6927_v13  ;;  %v7054_v22 = vcombine.low %v1226_v9, %v1230_v10 }
 0x324   :  { %v1094_v16 = vld [vmem:[#allocation2 + $0x120] sm:$0xff]  ;;  %2607 = vmatpush1.bf16.msra.mxu0 %v6926_v20 }
 0x325   :  { %v1218_v18 = vld [vmem:[#allocation2 + $0x500] sm:$0xff]  ;;  %v6919_v23 = vcombine.high %v1090_v15, %v1094_v16  ;;  %2647 = vmatprep.subr.bf16.mxu1 %v7055_v14  ;;  %v6918_v29 = vcombine.low %v1090_v15, %v1094_v16 }
 0x326   :  { %v1222_v19 = vld [vmem:[#allocation2 + $0x520] sm:$0xff]  ;;  %2648 = vmatpush1.bf16.msra.mxu1 %v7054_v22 }
 0x327   :  { %v7047_v24 = vcombine.high %v1218_v18, %v1222_v19  ;;  %v1082_v25 = vld [vmem:[#allocation2 + $0xc0] sm:$0xff]  ;;  %2608 = vmatprep.subr.bf16.mxu0 %v6919_v23  ;;  %v7046_v32 = vcombine.low %v1218_v18, %v1222_v19 }
 0x328   :  { %v1086_v26 = vld [vmem:[#allocation2 + $0xe0] sm:$0xff]  ;;  %2609 = vmatpush1.bf16.msra.mxu0 %v6918_v29 }
 0x329   :  { %v1210_v27 = vld [vmem:[#allocation2 + $0x4c0] sm:$0xff]  ;;  %v6911_v53 = vcombine.high %v1082_v25, %v1086_v26  ;;  %2649 = vmatprep.subr.bf16.mxu1 %v7047_v24  ;;  %v6910_v38 = vcombine.low %v1082_v25, %v1086_v26 }
 0x32a   :  { %v1214_v28 = vld [vmem:[#allocation2 + $0x4e0] sm:$0xff]  ;;  %2650 = vmatpush1.bf16.msra.mxu1 %v7046_v32 }
 0x32b   :  { %v7039_v33 = vcombine.high %v1210_v27, %v1214_v28  ;;  %v1074_v35 = vld [vmem:[#allocation2 + $0x80] sm:$0xff]  ;;  %2610 = vmatprep.subr.bf16.mxu0 %v6911_v53  ;;  %v7038_v39 = vcombine.low %v1210_v27, %v1214_v28 }
 0x32c   :  { %v1078_v36 = vld [vmem:[#allocation2 + $0xa0] sm:$0xff]  ;;  %2611 = vmatpush1.bf16.msra.mxu0 %v6910_v38 }
 0x32d   :  { %v1202_v37 = vld [vmem:[#allocation2 + $0x480] sm:$0xff]  ;;  %v6903_v40 = vcombine.high %v1074_v35, %v1078_v36  ;;  %2651 = vmatprep.subr.bf16.mxu1 %v7039_v33  ;;  %v6902_v48 = vcombine.low %v1074_v35, %v1078_v36 }
 0x32e   :  { %v1206_v54 = vld [vmem:[#allocation2 + $0x4a0] sm:$0xff]  ;;  %2652 = vmatpush1.bf16.msra.mxu1 %v7038_v39 }
 0x32f   :  { %v7031_v42 = vcombine.high %v1202_v37, %v1206_v54  ;;  %v1066_v43 = vld [vmem:[#allocation2 + $0x40] sm:$0xff]  ;;  %2612 = vmatprep.subr.bf16.mxu0 %v6903_v40  ;;  %v7030_v49 = vcombine.low %v1202_v37, %v1206_v54 }
 0x330   :  { %v1070_v59 = vld [vmem:[#allocation2 + $0x60] sm:$0xff]  ;;  %2613 = vmatpush1.bf16.msra.mxu0 %v6902_v48 }
 0x331   :  { %v1194_v46 = vld [vmem:[#allocation2 + $0x440] sm:$0xff]  ;;  %v6895_v50 = vcombine.high %v1066_v43, %v1070_v59  ;;  %2653 = vmatprep.subr.bf16.mxu1 %v7031_v42  ;;  %v6894_v62 = vcombine.low %v1066_v43, %v1070_v59 }
 0x332   :  { %v1198_v47 = vld [vmem:[#allocation2 + $0x460] sm:$0xff]  ;;  %2654 = vmatpush1.bf16.msra.mxu1 %v7030_v49 }
 0x333   :  { %v7023_v55 = vcombine.high %v1194_v46, %v1198_v47  ;;  %v1058_v56 = vld [vmem:[#allocation2] sm:$0xff]  ;;  %2614 = vmatprep.subr.bf16.mxu0 %v6895_v50  ;;  %v7022_v63 = vcombine.low %v1194_v46, %v1198_v47 }
 0x334   :  { %v1062_v57 = vld [vmem:[#allocation2 + $0x20] sm:$0xff]  ;;  %2615 = vmatpush1.bf16.msra.mxu0 %v6894_v62 }
 0x335   :  { %v1186_v58 = vld [vmem:[#allocation2 + $0x400] sm:$0xff]  ;;  %v6887_v0 = vcombine.high %v1058_v56, %v1062_v57  ;;  %2655 = vmatprep.subr.bf16.mxu1 %v7023_v55  ;;  %v6886_v6 = vcombine.low %v1058_v56, %v1062_v57 }
 0x336   :  { %v1190_v61 = vld [vmem:[#allocation2 + $0x420] sm:$0xff]  ;;  %2656 = vmatpush1.bf16.msra.mxu1 %v7022_v63 }
 0x337   :  { %v7015_v1 = vcombine.high %v1186_v58, %v1190_v61  ;;  %v1178_v2 = vld [vmem:[#allocation2 + $0x3c0] sm:$0xff]  ;;  %2616 = vmatprep.subr.bf16.mxu0 %v6887_v0  ;;  %v7014_v7 = vcombine.low %v1186_v58, %v1190_v61 }
 0x338   :  { %v1182_v3 = vld [vmem:[#allocation2 + $0x3e0] sm:$0xff]  ;;  %2617 = vmatpush1.bf16.msra.mxu0 %v6886_v6 }
 0x339   :  { %v1306_v4 = vld [vmem:[#allocation2 + $0x7c0] sm:$0xff]  ;;  %v7007_v8 = vcombine.high %v1178_v2, %v1182_v3  ;;  %2657 = vmatprep.subr.bf16.mxu1 %v7015_v1  ;;  %v7006_v14 = vcombine.low %v1178_v2, %v1182_v3 }
 0x33a   :  { %v1310_v5 = vld [vmem:[#allocation2 + $0x7e0] sm:$0xff]  ;;  %2658 = vmatpush1.bf16.msra.mxu1 %v7014_v7 }
 0x33b   :  { %v7135_v9 = vcombine.high %v1306_v4, %v1310_v5  ;;  %v1170_v10 = vld [vmem:[#allocation2 + $0x380] sm:$0xff]  ;;  %2618 = vmatprep.subr.bf16.mxu0 %v7007_v8  ;;  %v7134_v15 = vcombine.low %v1306_v4, %v1310_v5 }
 0x33c   :  { %v1174_v11 = vld [vmem:[#allocation2 + $0x3a0] sm:$0xff]  ;;  %2619 = vmatpush2.bf16.msra.mxu0 %v7006_v14  ;;  %v1119_v14 = vld [vmem:[#allocation2 + $0x1e8] sm:$0xff] }
 0x33d   :  { %v1298_v12 = vld [vmem:[#allocation2 + $0x780] sm:$0xff]  ;;  %v6999_v16 = vcombine.high %v1170_v10, %v1174_v11  ;;  %2659 = vmatprep.subr.bf16.mxu1 %v7135_v9  ;;  %v6998_v24 = vcombine.low %v1170_v10, %v1174_v11 }
 0x33e   :  { %v1302_v13 = vld [vmem:[#allocation2 + $0x7a0] sm:$0xff]  ;;  %2660 = vmatpush2.bf16.msra.mxu1 %v7134_v15  ;;  %v1243_v15 = vld [vmem:[#allocation2 + $0x5c8] sm:$0xff] }
 0x33f   :  { %v7127_v18 = vcombine.high %v1298_v12, %v1302_v13  ;;  %v1162_v19 = vld [vmem:[#allocation2 + $0x340] sm:$0xff]  ;;  %2620 = vmatprep.subr.bf16.mxu0 %v6999_v16  ;;  %v7126_v25 = vcombine.low %v1298_v12, %v1302_v13  ;;  %v1115_v13 = vld [vmem:[#allocation2 + $0x1c8] sm:$0xff] }
 0x340   :  { %v1166_v20 = vld [vmem:[#allocation2 + $0x360] sm:$0xff]  ;;  %2621 = vmatpush2.bf16.msra.mxu0 %v6998_v24  ;;  %v1247_v16 = vld [vmem:[#allocation2 + $0x5e8] sm:$0xff] }
 0x341   :  { %v1290_v22 = vld [vmem:[#allocation2 + $0x740] sm:$0xff]  ;;  %v6991_v26 = vcombine.high %v1162_v19, %v1166_v20  ;;  %2661 = vmatprep.subr.bf16.mxu1 %v7127_v18  ;;  %v6990_v33 = vcombine.low %v1162_v19, %v1166_v20  ;;  %v6945_v20 = vcombine.high %v1115_v13, %v1119_v14  ;;  %v1111_v24 = vld [vmem:[#allocation2 + $0x1a8] sm:$0xff] }
 0x342   :  { %v1294_v23 = vld [vmem:[#allocation2 + $0x760] sm:$0xff]  ;;  %2662 = vmatpush2.bf16.msra.mxu1 %v7126_v25  ;;  %v8850_v25 = vpack.c.bf16 %v1046_v45, %v1046_v45  ;;  %v1227_v45 = vld [vmem:[#allocation2 + $0x548] sm:$0xff] }
 0x343   :  { %v7119_v27 = vcombine.high %v1290_v22, %v1294_v23  ;;  %v1154_v28 = vld [vmem:[#allocation2 + $0x300] sm:$0xff]  ;;  %2622 = vmatprep.subr.bf16.mxu0 %v6991_v26  ;;  %v7118_v35 = vcombine.low %v1290_v22, %v1294_v23  ;;  %v7073_v22 = vcombine.high %v1243_v15, %v1247_v16  ;;  %v1107_v23 = vld [vmem:[#allocation2 + $0x188] sm:$0xff] }
 0x344   :  { %v1158_v29 = vld [vmem:[#allocation2 + $0x320] sm:$0xff]  ;;  %2623 = vmatpush2.bf16.msra.mxu0 %v6990_v33  ;;  %v1235_v26 = vld [vmem:[#allocation2 + $0x588] sm:$0xff]  ;;  %v6936_v44 = vcombine.low %v1107_v23, %v1111_v24 }
 0x345   :  { %v1282_v32 = vld [vmem:[#allocation2 + $0x700] sm:$0xff]  ;;  %v6983_v36 = vcombine.high %v1154_v28, %v1158_v29  ;;  %2663 = vmatprep.subr.bf16.mxu1 %v7119_v27  ;;  %v6982_v42 = vcombine.low %v1154_v28, %v1158_v29  ;;  %v1239_v27 = vld [vmem:[#allocation2 + $0x5a8] sm:$0xff]  ;;  %v8855_v28 = vpack.c.bf16 %v1048_v60, %v1048_v60  ;;  %v6944_v29 = vcombine.low %v1115_v13, %v1119_v14 }
 0x346   :  { %v1286_v53 = vld [vmem:[#allocation2 + $0x720] sm:$0xff]  ;;  %2664 = vmatpush2.bf16.msra.mxu1 %v7118_v35  ;;  %v7065_v33 = vcombine.high %v1235_v26, %v1239_v27  ;;  %v1099_v35 = vld [vmem:[#allocation2 + $0x148] sm:$0xff]  ;;  %v7064_v60 = vcombine.low %v1235_v26, %v1239_v27 }
 0x347   :  { %v7111_v37 = vcombine.high %v1282_v32, %v1286_v53  ;;  %v1146_v54 = vld [vmem:[#allocation2 + $0x2c0] sm:$0xff]  ;;  %2624 = vmatprep.subr.bf16.mxu0 %v6983_v36  ;;  %v7110_v43 = vcombine.low %v1282_v32, %v1286_v53  ;;  %v7072_v32 = vcombine.low %v1243_v15, %v1247_v16  ;;  %v6937_v53 = vcombine.high %v1107_v23, %v1111_v24  ;;  %v1231_v36 = vld [vmem:[#allocation2 + $0x568] sm:$0xff] }
 0x348   :  { %v1150_v38 = vld [vmem:[#allocation2 + $0x2e0] sm:$0xff]  ;;  %2625 = vmatpush2.bf16.msra.mxu0 %v6982_v42  ;;  %v1223_v42 = vld [vmem:[#allocation2 + $0x528] sm:$0xff] }
 0x349   :  { %v1274_v39 = vld [vmem:[#allocation2 + $0x6c0] sm:$0xff]  ;;  %v6975_v59 = vcombine.high %v1146_v54, %v1150_v38  ;;  %2665 = vmatprep.subr.bf16.mxu1 %v7111_v37  ;;  %v6974_v55 = vcombine.low %v1146_v54, %v1150_v38  ;;  %v6929_v37 = vcombine.high %v1099_v35, %v1103_v41  ;;  %v7057_v54 = vcombine.high %v1227_v45, %v1231_v36  ;;  %v1091_v38 = vld [vmem:[#allocation2 + $0x108] sm:$0xff] }
 0x34a   :  { %v1278_v40 = vld [vmem:[#allocation2 + $0x6e0] sm:$0xff]  ;;  %2666 = vmatpush2.bf16.msra.mxu1 %v7110_v43  ;;  %v6928_v43 = vcombine.low %v1099_v35, %v1103_v41  ;;  %v1059_v14 = vld [vmem:[#allocation2 + $0x8] sm:$0xff] }
 0x34b   :  { %v7103_v46 = vcombine.high %v1274_v39, %v1278_v40  ;;  %v1138_v47 = vld [vmem:[#allocation2 + $0x280] sm:$0xff]  ;;  %2626 = vmatprep.subr.bf16.mxu0 %v6975_v59  ;;  %v7102_v56 = vcombine.low %v1274_v39, %v1278_v40  ;;  %v1095_v39 = vld [vmem:[#allocation2 + $0x128] sm:$0xff]  ;;  %v7056_v59 = vcombine.low %v1227_v45, %v1231_v36 }
 0x34c   :  { %v1142_v48 = vld [vmem:[#allocation2 + $0x2a0] sm:$0xff]  ;;  %2627 = vmatpush2.bf16.msra.mxu0 %v6974_v55  ;;  %v1219_v40 = vld [vmem:[#allocation2 + $0x508] sm:$0xff] }
 0x34d   :  { %v1266_v49 = vld [vmem:[#allocation2 + $0x680] sm:$0xff]  ;;  %v6967_v57 = vcombine.high %v1138_v47, %v1142_v48  ;;  %2667 = vmatprep.subr.bf16.mxu1 %v7103_v46  ;;  %v6966_v1 = vcombine.low %v1138_v47, %v1142_v48  ;;  %v6921_v46 = vcombine.high %v1091_v38, %v1095_v39  ;;  %v7049_v47 = vcombine.high %v1219_v40, %v1223_v42  ;;  %v1083_v48 = vld [vmem:[#allocation2 + $0xc8] sm:$0xff] }
 0x34e   :  { %v1270_v50 = vld [vmem:[#allocation2 + $0x6a0] sm:$0xff]  ;;  %2668 = vmatpush2.bf16.msra.mxu1 %v7102_v56  ;;  %v1215_v55 = vld [vmem:[#allocation2 + $0x4e8] sm:$0xff]  ;;  %v6920_v56 = vcombine.low %v1091_v38, %v1095_v39 }
 0x34f   :  { %v7095_v58 = vcombine.high %v1266_v49, %v1270_v50  ;;  %v1130_v61 = vld [vmem:[#allocation2 + $0x240] sm:$0xff]  ;;  %2628 = vmatprep.subr.bf16.mxu0 %v6967_v57  ;;  %v7094_v2 = vcombine.low %v1266_v49, %v1270_v50  ;;  %v1087_v49 = vld [vmem:[#allocation2 + $0xe8] sm:$0xff]  ;;  %v7048_v57 = vcombine.low %v1219_v40, %v1223_v42 }
 0x350   :  { %v1134_v62 = vld [vmem:[#allocation2 + $0x260] sm:$0xff]  ;;  %2629 = vmatpush2.bf16.msra.mxu0 %v6966_v1  ;;  %v1211_v50 = vld [vmem:[#allocation2 + $0x4c8] sm:$0xff] }
 0x351   :  { %v1258_v63 = vld [vmem:[#allocation2 + $0x640] sm:$0xff]  ;;  %v6959_v3 = vcombine.high %v1130_v61, %v1134_v62  ;;  %2669 = vmatprep.subr.bf16.mxu1 %v7095_v58  ;;  %v6958_v9 = vcombine.low %v1130_v61, %v1134_v62  ;;  %v6913_v58 = vcombine.high %v1083_v48, %v1087_v49  ;;  %v7041_v61 = vcombine.high %v1211_v50, %v1215_v55  ;;  %v1075_v62 = vld [vmem:[#allocation2 + $0x88] sm:$0xff] }
 0x352   :  { %v1262_v0 = vld [vmem:[#allocation2 + $0x660] sm:$0xff]  ;;  %2670 = vmatpush2.bf16.msra.mxu1 %v7094_v2  ;;  %v1207_v1 = vld [vmem:[#allocation2 + $0x4a8] sm:$0xff]  ;;  %v6912_v2 = vcombine.low %v1083_v48, %v1087_v49 }
 0x353   :  { %v7087_v4 = vcombine.high %v1258_v63, %v1262_v0  ;;  %v1122_v5 = vld [vmem:[#allocation2 + $0x200] sm:$0xff]  ;;  %2630 = vmatprep.subr.bf16.mxu0 %v6959_v3  ;;  %v7086_v10 = vcombine.low %v1258_v63, %v1262_v0  ;;  %v1079_v63 = vld [vmem:[#allocation2 + $0xa8] sm:$0xff]  ;;  %v7040_v3 = vcombine.low %v1211_v50, %v1215_v55 }
 0x354   :  { %v1126_v6 = vld [vmem:[#allocation2 + $0x220] sm:$0xff]  ;;  %2631 = vmatpush2.bf16.msra.mxu0 %v6958_v9  ;;  %v1203_v0 = vld [vmem:[#allocation2 + $0x488] sm:$0xff] }
 0x355   :  { %v1250_v7 = vld [vmem:[#allocation2 + $0x600] sm:$0xff]  ;;  %v6951_v11 = vcombine.high %v1122_v5, %v1126_v6  ;;  %2671 = vmatprep.subr.bf16.mxu1 %v7087_v4  ;;  %v6950_v18 = vcombine.low %v1122_v5, %v1126_v6  ;;  %v6905_v4 = vcombine.high %v1075_v62, %v1079_v63  ;;  %v7033_v5 = vcombine.high %v1203_v0, %v1207_v1  ;;  %v1067_v6 = vld [vmem:[#allocation2 + $0x48] sm:$0xff] }
 0x356   :  { %v1254_v8 = vld [vmem:[#allocation2 + $0x620] sm:$0xff]  ;;  %2672 = vmatpush2.bf16.msra.mxu1 %v7086_v10  ;;  %v1199_v9 = vld [vmem:[#allocation2 + $0x468] sm:$0xff]  ;;  %v6904_v10 = vcombine.low %v1075_v62, %v1079_v63 }
 0x357   :  { %v7079_v12 = vcombine.high %v1250_v7, %v1254_v8  ;;  %2632 = vmatprep.subr.bf16.mxu0 %v6951_v11  ;;  %v7078_v19 = vcombine.low %v1250_v7, %v1254_v8  ;;  %v1071_v7 = vld [vmem:[#allocation2 + $0x68] sm:$0xff]  ;;  %v7032_v11 = vcombine.low %v1203_v0, %v1207_v1 }
 0x358   :  { %2633 = vmatpush2.bf16.msra.mxu0 %v6950_v18  ;;  %v1195_v8 = vld [vmem:[#allocation2 + $0x448] sm:$0xff] }
 0x359   :  { %2673 = vmatprep.subr.bf16.mxu1 %v7079_v12  ;;  %2684 = vmatprep.subr.bf16.mxu0 %v6945_v20  ;;  %v6897_v12 = vcombine.high %v1067_v6, %v1071_v7  ;;  %v7025_v13 = vcombine.high %v1195_v8, %v1199_v9  ;;  %v1063_v15 = vld [vmem:[#allocation2 + $0x28] sm:$0xff]  ;;  %v7024_v20 = vcombine.low %v1195_v8, %v1199_v9 }
 0x35a   :  { %2674 = vmatpush2.bf16.msra.mxu1 %v7078_v19  ;;  %v1187_v16 = vld [vmem:[#allocation2 + $0x408] sm:$0xff]  ;;  %v6896_v19 = vcombine.low %v1067_v6, %v1071_v7 }
 0x35b   :  { %2725 = vmatprep.subr.bf16.mxu1 %v7073_v22  ;;  %2635 = vmatmul.mubr.bf16.vlgmr.msra.gmra.mxu0 %v8850_v25  ;;  %v1191_v18 = vld [vmem:[#allocation2 + $0x428] sm:$0xff]  ;;  %v6889_v22 = vcombine.high %v1059_v14, %v1063_v15 }
 0x35c   :  { %2685 = vmatpush1.bf16.msra.mxu0 %v6944_v29  ;;  %2716 = vmatprep.mubr.bf16.mxu0 %v8841_v51  ;;  %v7017_v23 = vcombine.high %v1187_v16, %v1191_v18  ;;  %v1179_v24 = vld [vmem:[#allocation2 + $0x3c8] sm:$0xff] }
 0x35d   :  { %2676 = vmatmul.mubr.bf16.vlgmr.msra.gmra.mxu1 %v8855_v28  ;;  %2686 = vmatprep.subr.bf16.mxu0 %v6937_v53  ;;  %v1183_v26 = vld [vmem:[#allocation2 + $0x3e8] sm:$0xff]  ;;  %v7016_v53 = vcombine.low %v1187_v16, %v1191_v18 }
 0x35e   :  { %2726 = vmatpush1.bf16.msra.mxu1 %v7072_v32  ;;  %2757 = vmatprep.mubr.bf16.mxu1 %v8843_v52  ;;  %v1307_v27 = vld [vmem:[#allocation2 + $0x7c8] sm:$0xff]  ;;  %v6888_v32 = vcombine.low %v1059_v14, %v1063_v15 }
 0x35f   :  { %2727 = vmatprep.subr.bf16.mxu1 %v7065_v33  ;;  %v1311_v29 = vld [vmem:[#allocation2 + $0x7e8] sm:$0xff]  ;;  %v7009_v33 = vcombine.high %v1179_v24, %v1183_v26 }
 0x360   :  { %2687 = vmatpush1.bf16.msra.mxu0 %v6936_v44  ;;  %v7137_v35 = vcombine.high %v1307_v27, %v1311_v29  ;;  %v1171_v41 = vld [vmem:[#allocation2 + $0x388] sm:$0xff] }
 0x361   :  { %2688 = vmatprep.subr.bf16.mxu0 %v6929_v37  ;;  %v1175_v45 = vld [vmem:[#allocation2 + $0x3a8] sm:$0xff]  ;;  %v7136_v37 = vcombine.low %v1307_v27, %v1311_v29 }
 0x362   :  { %2728 = vmatpush1.bf16.msra.mxu1 %v7064_v60  ;;  %v1299_v36 = vld [vmem:[#allocation2 + $0x788] sm:$0xff]  ;;  %v7008_v60 = vcombine.low %v1179_v24, %v1183_v26 }
 0x363   :  { %2729 = vmatprep.subr.bf16.mxu1 %v7057_v54  ;;  %v1303_v44 = vld [vmem:[#allocation2 + $0x7a8] sm:$0xff]  ;;  %v7001_v54 = vcombine.high %v1171_v41, %v1175_v45 }
 0x364   :  { %2689 = vmatpush1.bf16.msra.mxu0 %v6928_v43  ;;  %v7129_v38 = vcombine.high %v1299_v36, %v1303_v44  ;;  %v1163_v39 = vld [vmem:[#allocation2 + $0x348] sm:$0xff] }
 0x365   :  { %2690 = vmatprep.subr.bf16.mxu0 %v6921_v46  ;;  %v1167_v40 = vld [vmem:[#allocation2 + $0x368] sm:$0xff]  ;;  %v7128_v46 = vcombine.low %v1299_v36, %v1303_v44  ;;  %v1120_v36 = vld [vmem:[#allocation2 + $0x1f0] sm:$0xff] }
 0x366   :  { %2730 = vmatpush1.bf16.msra.mxu1 %v7056_v59  ;;  %v1291_v42 = vld [vmem:[#allocation2 + $0x748] sm:$0xff]  ;;  %v7000_v59 = vcombine.low %v1171_v41, %v1175_v45  ;;  %v1116_v45 = vld [vmem:[#allocation2 + $0x1d0] sm:$0xff] }
 0x367   :  { %2731 = vmatprep.subr.bf16.mxu1 %v7049_v47  ;;  %v1295_v43 = vld [vmem:[#allocation2 + $0x768] sm:$0xff]  ;;  %v6993_v47 = vcombine.high %v1163_v39, %v1167_v40  ;;  %v1244_v44 = vld [vmem:[#allocation2 + $0x5d0] sm:$0xff] }
 0x368   :  { %2691 = vmatpush1.bf16.msra.mxu0 %v6920_v56  ;;  %v7121_v48 = vcombine.high %v1291_v42, %v1295_v43  ;;  %v1155_v49 = vld [vmem:[#allocation2 + $0x308] sm:$0xff] }
 0x369   :  { %2692 = vmatprep.subr.bf16.mxu0 %v6913_v58  ;;  %v1159_v50 = vld [vmem:[#allocation2 + $0x328] sm:$0xff]  ;;  %v7120_v58 = vcombine.low %v1291_v42, %v1295_v43  ;;  %v1112_v42 = vld [vmem:[#allocation2 + $0x1b0] sm:$0xff] }
 0x36a   :  { %2732 = vmatpush1.bf16.msra.mxu1 %v7048_v57  ;;  %v1283_v55 = vld [vmem:[#allocation2 + $0x708] sm:$0xff]  ;;  %v6992_v57 = vcombine.low %v1163_v39, %v1167_v40  ;;  %v1108_v40 = vld [vmem:[#allocation2 + $0x190] sm:$0xff] }
 0x36b   :  { %2733 = vmatprep.subr.bf16.mxu1 %v7041_v61  ;;  %v1287_v56 = vld [vmem:[#allocation2 + $0x728] sm:$0xff]  ;;  %v6985_v61 = vcombine.high %v1155_v49, %v1159_v50  ;;  %v1236_v43 = vld [vmem:[#allocation2 + $0x590] sm:$0xff] }
 0x36c   :  { %2693 = vmatpush1.bf16.msra.mxu0 %v6912_v2  ;;  %v7113_v62 = vcombine.high %v1283_v55, %v1287_v56  ;;  %v1147_v63 = vld [vmem:[#allocation2 + $0x2c8] sm:$0xff] }
 0x36d   :  { %2694 = vmatprep.subr.bf16.mxu0 %v6905_v4  ;;  %v1151_v0 = vld [vmem:[#allocation2 + $0x2e8] sm:$0xff]  ;;  %v7112_v4 = vcombine.low %v1283_v55, %v1287_v56  ;;  %v1104_v55 = vld [vmem:[#allocation2 + $0x170] sm:$0xff] }
 0x36e   :  { %2734 = vmatpush1.bf16.msra.mxu1 %v7040_v3  ;;  %v1275_v1 = vld [vmem:[#allocation2 + $0x6c8] sm:$0xff]  ;;  %v6984_v3 = vcombine.low %v1155_v49, %v1159_v50  ;;  %v1100_v50 = vld [vmem:[#allocation2 + $0x150] sm:$0xff] }
 0x36f   :  { %2735 = vmatprep.subr.bf16.mxu1 %v7033_v5  ;;  %v1279_v2 = vld [vmem:[#allocation2 + $0x6e8] sm:$0xff]  ;;  %v6977_v5 = vcombine.high %v1147_v63, %v1151_v0  ;;  %v1228_v56 = vld [vmem:[#allocation2 + $0x550] sm:$0xff] }
 0x370   :  { %2695 = vmatpush1.bf16.msra.mxu0 %v6904_v10  ;;  %v7105_v6 = vcombine.high %v1275_v1, %v1279_v2  ;;  %v1139_v7 = vld [vmem:[#allocation2 + $0x288] sm:$0xff] }
 0x371   :  { %2696 = vmatprep.subr.bf16.mxu0 %v6897_v12  ;;  %v1143_v8 = vld [vmem:[#allocation2 + $0x2a8] sm:$0xff]  ;;  %v7104_v12 = vcombine.low %v1275_v1, %v1279_v2  ;;  %v1096_v1 = vld [vmem:[#allocation2 + $0x130] sm:$0xff] }
 0x372   :  { %2736 = vmatpush1.bf16.msra.mxu1 %v7032_v11  ;;  %v1267_v9 = vld [vmem:[#allocation2 + $0x688] sm:$0xff]  ;;  %v6976_v11 = vcombine.low %v1147_v63, %v1151_v0  ;;  %v1092_v0 = vld [vmem:[#allocation2 + $0x110] sm:$0xff] }
 0x373   :  { %2737 = vmatprep.subr.bf16.mxu1 %v7025_v13  ;;  %v1271_v10 = vld [vmem:[#allocation2 + $0x6a8] sm:$0xff]  ;;  %v6969_v13 = vcombine.high %v1139_v7, %v1143_v8  ;;  %v1220_v2 = vld [vmem:[#allocation2 + $0x510] sm:$0xff] }
 0x374   :  { %2697 = vmatpush1.bf16.msra.mxu0 %v6896_v19  ;;  %v7097_v14 = vcombine.high %v1267_v9, %v1271_v10  ;;  %v1131_v15 = vld [vmem:[#allocation2 + $0x248] sm:$0xff] }
 0x375   :  { %2698 = vmatprep.subr.bf16.mxu0 %v6889_v22  ;;  %v1135_v16 = vld [vmem:[#allocation2 + $0x268] sm:$0xff]  ;;  %v7096_v22 = vcombine.low %v1267_v9, %v1271_v10  ;;  %v1088_v9 = vld [vmem:[#allocation2 + $0xf0] sm:$0xff] }
 0x376   :  { %2738 = vmatpush1.bf16.msra.mxu1 %v7024_v20  ;;  %v1259_v18 = vld [vmem:[#allocation2 + $0x648] sm:$0xff]  ;;  %v6968_v20 = vcombine.low %v1139_v7, %v1143_v8  ;;  %v1084_v8 = vld [vmem:[#allocation2 + $0xd0] sm:$0xff] }
 0x377   :  { %2739 = vmatprep.subr.bf16.mxu1 %v7017_v23  ;;  %v1263_v19 = vld [vmem:[#allocation2 + $0x668] sm:$0xff]  ;;  %v6961_v23 = vcombine.high %v1131_v15, %v1135_v16  ;;  %v1212_v10 = vld [vmem:[#allocation2 + $0x4d0] sm:$0xff] }
 0x378   :  { %2699 = vmatpush1.bf16.msra.mxu0 %v6888_v32  ;;  %v7089_v24 = vcombine.high %v1259_v18, %v1263_v19  ;;  %v1123_v26 = vld [vmem:[#allocation2 + $0x208] sm:$0xff] }
 0x379   :  { %2700 = vmatprep.subr.bf16.mxu0 %v7009_v33  ;;  %v1127_v27 = vld [vmem:[#allocation2 + $0x228] sm:$0xff]  ;;  %v7088_v33 = vcombine.low %v1259_v18, %v1263_v19  ;;  %v1080_v18 = vld [vmem:[#allocation2 + $0xb0] sm:$0xff] }
 0x37a   :  { %2740 = vmatpush1.bf16.msra.mxu1 %v7016_v53  ;;  %v1251_v29 = vld [vmem:[#allocation2 + $0x608] sm:$0xff]  ;;  %v6960_v53 = vcombine.low %v1131_v15, %v1135_v16  ;;  %v1076_v16 = vld [vmem:[#allocation2 + $0x90] sm:$0xff] }
 0x37b   :  { %2741 = vmatprep.subr.bf16.mxu1 %v7137_v35  ;;  %v1255_v32 = vld [vmem:[#allocation2 + $0x628] sm:$0xff]  ;;  %v6953_v35 = vcombine.high %v1123_v26, %v1127_v27  ;;  %v1204_v19 = vld [vmem:[#allocation2 + $0x490] sm:$0xff] }
 0x37c   :  { %2701 = vmatpush2.bf16.msra.mxu0 %v7008_v60  ;;  %v7081_v41 = vcombine.high %v1251_v29, %v1255_v32  ;;  %v1248_v60 = vld [vmem:[#allocation2 + $0x5f0] sm:$0xff] }
 0x37d   :  { %2702 = vmatprep.subr.bf16.mxu0 %v7001_v54  ;;  %v7080_v54 = vcombine.low %v1251_v29, %v1255_v32  ;;  %v7075_v39 = vcombine.high %v1244_v44, %v1248_v60  ;;  %v1072_v29 = vld [vmem:[#allocation2 + $0x70] sm:$0xff] }
 0x37e   :  { %2742 = vmatpush2.bf16.msra.mxu1 %v7136_v37  ;;  %v6952_v37 = vcombine.low %v1123_v26, %v1127_v27  ;;  %v1068_v27 = vld [vmem:[#allocation2 + $0x50] sm:$0xff] }
 0x37f   :  { %2743 = vmatprep.subr.bf16.mxu1 %v7129_v38  ;;  %v6947_v38 = vcombine.high %v1116_v45, %v1120_v36  ;;  %v1196_v32 = vld [vmem:[#allocation2 + $0x450] sm:$0xff] }
 0x380   :  { %2703 = vmatpush2.bf16.msra.mxu0 %v7000_v59  ;;  %v1240_v59 = vld [vmem:[#allocation2 + $0x5b0] sm:$0xff] }
 0x381   :  { %2704 = vmatprep.subr.bf16.mxu0 %v6993_v47  ;;  %v7074_v47 = vcombine.low %v1244_v44, %v1248_v60  ;;  %v7067_v49 = vcombine.high %v1236_v43, %v1240_v59  ;;  %v1064_v44 = vld [vmem:[#allocation2 + $0x30] sm:$0xff] }
 0x382   :  { %2744 = vmatpush2.bf16.msra.mxu1 %v7128_v46  ;;  %v6946_v46 = vcombine.low %v1116_v45, %v1120_v36  ;;  %v1060_v36 = vld [vmem:[#allocation2 + $0x10] sm:$0xff] }
 0x383   :  { %2745 = vmatprep.subr.bf16.mxu1 %v7121_v48  ;;  %v6939_v48 = vcombine.high %v1108_v40, %v1112_v42  ;;  %v1188_v60 = vld [vmem:[#allocation2 + $0x410] sm:$0xff] }
 0x384   :  { %2705 = vmatpush2.bf16.msra.mxu0 %v6992_v57  ;;  %v1232_v57 = vld [vmem:[#allocation2 + $0x570] sm:$0xff] }
 0x385   :  { %2706 = vmatprep.subr.bf16.mxu0 %v6985_v61  ;;  %v7066_v61 = vcombine.low %v1236_v43, %v1240_v59  ;;  %v7059_v63 = vcombine.high %v1228_v56, %v1232_v57  ;;  %v1184_v43 = vld [vmem:[#allocation2 + $0x3f0] sm:$0xff] }
 0x386   :  { %2746 = vmatpush2.bf16.msra.mxu1 %v7120_v58  ;;  %v6938_v58 = vcombine.low %v1108_v40, %v1112_v42  ;;  %v1180_v42 = vld [vmem:[#allocation2 + $0x3d0] sm:$0xff] }
 0x387   :  { %2747 = vmatprep.subr.bf16.mxu1 %v7113_v62  ;;  %v6931_v62 = vcombine.high %v1100_v50, %v1104_v55  ;;  %v1308_v59 = vld [vmem:[#allocation2 + $0x7d0] sm:$0xff] }
 0x388   :  { %2707 = vmatpush2.bf16.msra.mxu0 %v6984_v3  ;;  %v1224_v3 = vld [vmem:[#allocation2 + $0x530] sm:$0xff] }
 0x389   :  { %2708 = vmatprep.subr.bf16.mxu0 %v6977_v5  ;;  %v7058_v5 = vcombine.low %v1228_v56, %v1232_v57  ;;  %v7051_v7 = vcombine.high %v1220_v2, %v1224_v3  ;;  %v1176_v56 = vld [vmem:[#allocation2 + $0x3b0] sm:$0xff] }
 0x38a   :  { %2748 = vmatpush2.bf16.msra.mxu1 %v7112_v4  ;;  %v6930_v4 = vcombine.low %v1100_v50, %v1104_v55  ;;  %v1172_v55 = vld [vmem:[#allocation2 + $0x390] sm:$0xff] }
 0x38b   :  { %2749 = vmatprep.subr.bf16.mxu1 %v7105_v6  ;;  %v6923_v6 = vcombine.high %v1092_v0, %v1096_v1  ;;  %v1300_v57 = vld [vmem:[#allocation2 + $0x790] sm:$0xff] }
 0x38c   :  { %2709 = vmatpush2.bf16.msra.mxu0 %v6976_v11  ;;  %v1216_v11 = vld [vmem:[#allocation2 + $0x4f0] sm:$0xff] }
 0x38d   :  { %2710 = vmatprep.subr.bf16.mxu0 %v6969_v13  ;;  %v7050_v13 = vcombine.low %v1220_v2, %v1224_v3  ;;  %v7043_v15 = vcombine.high %v1212_v10, %v1216_v11  ;;  %v1168_v2 = vld [vmem:[#allocation2 + $0x370] sm:$0xff] }
 0x38e   :  { %2750 = vmatpush2.bf16.msra.mxu1 %v7104_v12  ;;  %v6922_v12 = vcombine.low %v1092_v0, %v1096_v1  ;;  %v1164_v1 = vld [vmem:[#allocation2 + $0x350] sm:$0xff] }
 0x38f   :  { %2751 = vmatprep.subr.bf16.mxu1 %v7097_v14  ;;  %v6915_v14 = vcombine.high %v1084_v8, %v1088_v9  ;;  %v1292_v3 = vld [vmem:[#allocation2 + $0x750] sm:$0xff] }
 0x390   :  { %2711 = vmatpush2.bf16.msra.mxu0 %v6968_v20  ;;  %v1208_v20 = vld [vmem:[#allocation2 + $0x4b0] sm:$0xff] }
 0x391   :  { %2712 = vmatprep.subr.bf16.mxu0 %v6961_v23  ;;  %v7042_v23 = vcombine.low %v1212_v10, %v1216_v11  ;;  %v7035_v26 = vcombine.high %v1204_v19, %v1208_v20  ;;  %v1160_v10 = vld [vmem:[#allocation2 + $0x330] sm:$0xff] }
 0x392   :  { %2752 = vmatpush2.bf16.msra.mxu1 %v7096_v22  ;;  %v6914_v22 = vcombine.low %v1084_v8, %v1088_v9  ;;  %v1156_v9 = vld [vmem:[#allocation2 + $0x310] sm:$0xff] }
 0x393   :  { %2753 = vmatprep.subr.bf16.mxu1 %v7089_v24  ;;  %v6907_v24 = vcombine.high %v1076_v16, %v1080_v18  ;;  %v1284_v11 = vld [vmem:[#allocation2 + $0x710] sm:$0xff] }
 0x394   :  { %2713 = vmatpush2.bf16.msra.mxu0 %v6960_v53  ;;  %v1200_v53 = vld [vmem:[#allocation2 + $0x470] sm:$0xff] }
 0x395   :  { %2714 = vmatprep.subr.bf16.mxu0 %v6953_v35  ;;  %v7034_v35 = vcombine.low %v1204_v19, %v1208_v20  ;;  %v7027_v45 = vcombine.high %v1196_v32, %v1200_v53  ;;  %v1152_v19 = vld [vmem:[#allocation2 + $0x2f0] sm:$0xff] }
 0x396   :  { %2754 = vmatpush2.bf16.msra.mxu1 %v7088_v33  ;;  %v6906_v33 = vcombine.low %v1076_v16, %v1080_v18  ;;  %v1148_v18 = vld [vmem:[#allocation2 + $0x2d0] sm:$0xff] }
 0x397   :  { %2755 = vmatprep.subr.bf16.mxu1 %v7081_v41  ;;  %v6899_v41 = vcombine.high %v1068_v27, %v1072_v29  ;;  %v1276_v20 = vld [vmem:[#allocation2 + $0x6d0] sm:$0xff] }
 0x398   :  { %2715 = vmatpush2.bf16.msra.mxu0 %v6952_v37  ;;  %v1192_v37 = vld [vmem:[#allocation2 + $0x430] sm:$0xff] }
 0x399   :  { %2766 = vmatprep.subr.bf16.mxu0 %v6947_v38  ;;  %v7026_v38 = vcombine.low %v1196_v32, %v1200_v53  ;;  %v7019_v40 = vcombine.high %v1188_v60, %v1192_v37  ;;  %v1144_v32 = vld [vmem:[#allocation2 + $0x2b0] sm:$0xff] }
 0x39a   :  { %2756 = vmatpush2.bf16.msra.mxu1 %v7080_v54  ;;  %v6898_v54 = vcombine.low %v1068_v27, %v1072_v29  ;;  %v1140_v29 = vld [vmem:[#allocation2 + $0x290] sm:$0xff] }
 0x39b   :  { %2807 = vmatprep.subr.bf16.mxu1 %v7075_v39  ;;  %2717 = vmatmul.mubr.bf16.vlgmr.msra.gmra.mxu0 %v8850_v25  ;;  %v6891_v39 = vcombine.high %v1060_v36, %v1064_v44  ;;  %v1268_v53 = vld [vmem:[#allocation2 + $0x690] sm:$0xff] }
 0x39c   :  { %2767 = vmatpush1.bf16.msra.mxu0 %v6946_v46  ;;  %2798 = vmatprep.mubr.bf16.mxu0 %v8841_v51  ;;  %v1312_v46 = vld [vmem:[#allocation2 + $0x7f0] sm:$0xff] }
 0x39d   :  { %2758 = vmatmul.mubr.bf16.vlgmr.msra.gmra.mxu1 %v8855_v28  ;;  %2768 = vmatprep.subr.bf16.mxu0 %v6939_v48  ;;  %v7018_v48 = vcombine.low %v1188_v60, %v1192_v37  ;;  %v7139_v50 = vcombine.high %v1308_v59, %v1312_v46  ;;  %v1136_v60 = vld [vmem:[#allocation2 + $0x270] sm:$0xff] }
 0x39e   :  { %2808 = vmatpush1.bf16.msra.mxu1 %v7074_v47  ;;  %2839 = vmatprep.mubr.bf16.mxu1 %v8843_v52  ;;  %v6890_v47 = vcombine.low %v1060_v36, %v1064_v44  ;;  %v1132_v44 = vld [vmem:[#allocation2 + $0x250] sm:$0xff] }
 0x39f   :  { %2809 = vmatprep.subr.bf16.mxu1 %v7067_v49  ;;  %v7011_v49 = vcombine.high %v1180_v42, %v1184_v43  ;;  %v1260_v37 = vld [vmem:[#allocation2 + $0x650] sm:$0xff] }
 0x3a0   :  { %2769 = vmatpush1.bf16.msra.mxu0 %v6938_v58  ;;  %v1304_v58 = vld [vmem:[#allocation2 + $0x7b0] sm:$0xff] }
 0x3a1   :  { %2770 = vmatprep.subr.bf16.mxu0 %v6931_v62  ;;  %v7138_v62 = vcombine.low %v1308_v59, %v1312_v46  ;;  %v7131_v0 = vcombine.high %v1300_v57, %v1304_v58  ;;  %v1128_v59 = vld [vmem:[#allocation2 + $0x230] sm:$0xff] }
 0x3a2   :  { %2810 = vmatpush1.bf16.msra.mxu1 %v7066_v61  ;;  %v7010_v61 = vcombine.low %v1180_v42, %v1184_v43  ;;  %v1124_v43 = vld [vmem:[#allocation2 + $0x210] sm:$0xff] }
 0x3a3   :  { %2811 = vmatprep.subr.bf16.mxu1 %v7059_v63  ;;  %v7003_v63 = vcombine.high %v1172_v55, %v1176_v56  ;;  %v1252_v46 = vld [vmem:[#allocation2 + $0x610] sm:$0xff] }
 0x3a4   :  { %2771 = vmatpush1.bf16.msra.mxu0 %v6930_v4  ;;  %v1296_v4 = vld [vmem:[#allocation2 + $0x770] sm:$0xff] }
 0x3a5   :  { %2772 = vmatprep.subr.bf16.mxu0 %v6923_v6  ;;  %v7130_v6 = vcombine.low %v1300_v57, %v1304_v58  ;;  %v7123_v8 = vcombine.high %v1292_v3, %v1296_v4  ;;  %v1121_v57 = vld [vmem:[#allocation2 + $0x1f8] sm:$0xff] }
 0x3a6   :  { %2812 = vmatpush1.bf16.msra.mxu1 %v7058_v5  ;;  %v7002_v5 = vcombine.low %v1172_v55, %v1176_v56  ;;  %v1117_v56 = vld [vmem:[#allocation2 + $0x1d8] sm:$0xff] }
 0x3a7   :  { %2813 = vmatprep.subr.bf16.mxu1 %v7051_v7  ;;  %v6995_v7 = vcombine.high %v1164_v1, %v1168_v2  ;;  %v1245_v58 = vld [vmem:[#allocation2 + $0x5d8] sm:$0xff] }
 0x3a8   :  { %2773 = vmatpush1.bf16.msra.mxu0 %v6922_v12  ;;  %v1288_v12 = vld [vmem:[#allocation2 + $0x730] sm:$0xff] }
 0x3a9   :  { %2774 = vmatprep.subr.bf16.mxu0 %v6915_v14  ;;  %v7122_v14 = vcombine.low %v1292_v3, %v1296_v4  ;;  %v7115_v16 = vcombine.high %v1284_v11, %v1288_v12  ;;  %v1113_v3 = vld [vmem:[#allocation2 + $0x1b8] sm:$0xff] }
 0x3aa   :  { %2814 = vmatpush1.bf16.msra.mxu1 %v7050_v13  ;;  %v6994_v13 = vcombine.low %v1164_v1, %v1168_v2  ;;  %v1109_v2 = vld [vmem:[#allocation2 + $0x198] sm:$0xff] }
 0x3ab   :  { %2815 = vmatprep.subr.bf16.mxu1 %v7043_v15  ;;  %v6987_v15 = vcombine.high %v1156_v9, %v1160_v10  ;;  %v1237_v4 = vld [vmem:[#allocation2 + $0x598] sm:$0xff] }
 0x3ac   :  { %2775 = vmatpush1.bf16.msra.mxu0 %v6914_v22  ;;  %v1280_v22 = vld [vmem:[#allocation2 + $0x6f0] sm:$0xff] }
 0x3ad   :  { %2776 = vmatprep.subr.bf16.mxu0 %v6907_v24  ;;  %v7114_v24 = vcombine.low %v1284_v11, %v1288_v12  ;;  %v7107_v27 = vcombine.high %v1276_v20, %v1280_v22  ;;  %v1105_v11 = vld [vmem:[#allocation2 + $0x178] sm:$0xff] }
 0x3ae   :  { %2816 = vmatpush1.bf16.msra.mxu1 %v7042_v23  ;;  %v6986_v23 = vcombine.low %v1156_v9, %v1160_v10  ;;  %v1101_v10 = vld [vmem:[#allocation2 + $0x158] sm:$0xff] }
 0x3af   :  { %2817 = vmatprep.subr.bf16.mxu1 %v7035_v26  ;;  %v6979_v26 = vcombine.high %v1148_v18, %v1152_v19  ;;  %v1229_v12 = vld [vmem:[#allocation2 + $0x558] sm:$0xff] }
 0x3b0   :  { %2777 = vmatpush1.bf16.msra.mxu0 %v6906_v33  ;;  %v1272_v33 = vld [vmem:[#allocation2 + $0x6b0] sm:$0xff] }
 0x3b1   :  { %2778 = vmatprep.subr.bf16.mxu0 %v6899_v41  ;;  %v7106_v41 = vcombine.low %v1276_v20, %v1280_v22  ;;  %v7099_v36 = vcombine.high %v1268_v53, %v1272_v33  ;;  %v1097_v20 = vld [vmem:[#allocation2 + $0x138] sm:$0xff] }
 0x3b2   :  { %2818 = vmatpush1.bf16.msra.mxu1 %v7034_v35  ;;  %v6978_v35 = vcombine.low %v1148_v18, %v1152_v19  ;;  %v1093_v19 = vld [vmem:[#allocation2 + $0x118] sm:$0xff] }
 0x3b3   :  { %2819 = vmatprep.subr.bf16.mxu1 %v7027_v45  ;;  %v6971_v45 = vcombine.high %v1140_v29, %v1144_v32  ;;  %v1221_v22 = vld [vmem:[#allocation2 + $0x518] sm:$0xff] }
 0x3b4   :  { %2779 = vmatpush1.bf16.msra.mxu0 %v6898_v54  ;;  %v1264_v54 = vld [vmem:[#allocation2 + $0x670] sm:$0xff] }
 0x3b5   :  { %2780 = vmatprep.subr.bf16.mxu0 %v6891_v39  ;;  %v7098_v39 = vcombine.low %v1268_v53, %v1272_v33  ;;  %v7091_v42 = vcombine.high %v1260_v37, %v1264_v54  ;;  %v1089_v53 = vld [vmem:[#allocation2 + $0xf8] sm:$0xff] }
 0x3b6   :  { %2820 = vmatpush1.bf16.msra.mxu1 %v7026_v38  ;;  %v6970_v38 = vcombine.low %v1140_v29, %v1144_v32  ;;  %v1085_v32 = vld [vmem:[#allocation2 + $0xd8] sm:$0xff] }
 0x3b7   :  { %2821 = vmatprep.subr.bf16.mxu1 %v7019_v40  ;;  %v6963_v40 = vcombine.high %v1132_v44, %v1136_v60  ;;  %v1213_v33 = vld [vmem:[#allocation2 + $0x4d8] sm:$0xff] }
 0x3b8   :  { %2781 = vmatpush1.bf16.msra.mxu0 %v6890_v47  ;;  %v1256_v47 = vld [vmem:[#allocation2 + $0x630] sm:$0xff] }
 0x3b9   :  { %2782 = vmatprep.subr.bf16.mxu0 %v7011_v49  ;;  %v7090_v49 = vcombine.low %v1260_v37, %v1264_v54  ;;  %v7083_v55 = vcombine.high %v1252_v46, %v1256_v47  ;;  %v1209_v37 = vld [vmem:[#allocation2 + $0x4b8] sm:$0xff]  ;;  %v6916_v54 = vcombine.low %v1085_v32, %v1089_v53 }
 0x3ba   :  { %2822 = vmatpush1.bf16.msra.mxu1 %v7018_v48  ;;  %v6962_v48 = vcombine.low %v1132_v44, %v1136_v60  ;;  %v1081_v44 = vld [vmem:[#allocation2 + $0xb8] sm:$0xff] }
 0x3bb   :  { %2823 = vmatprep.subr.bf16.mxu1 %v7139_v50  ;;  %v6955_v50 = vcombine.high %v1124_v43, %v1128_v59  ;;  %v1205_v60 = vld [vmem:[#allocation2 + $0x498] sm:$0xff] }
 0x3bc   :  { %2783 = vmatpush2.bf16.msra.mxu0 %v7010_v61  ;;  %v1249_v61 = vld [vmem:[#allocation2 + $0x5f8] sm:$0xff] }
 0x3bd   :  { %2784 = vmatprep.subr.bf16.mxu0 %v7003_v63  ;;  %v7082_v63 = vcombine.low %v1252_v46, %v1256_v47  ;;  %v7077_v1 = vcombine.high %v1245_v58, %v1249_v61  ;;  %v1201_v46 = vld [vmem:[#allocation2 + $0x478] sm:$0xff] }
 0x3be   :  { %2824 = vmatpush2.bf16.msra.mxu1 %v7138_v62  ;;  %v6954_v62 = vcombine.low %v1124_v43, %v1128_v59  ;;  %v1073_v43 = vld [vmem:[#allocation2 + $0x78] sm:$0xff] }
 0x3bf   :  { %2825 = vmatprep.subr.bf16.mxu1 %v7131_v0  ;;  %v6949_v0 = vcombine.high %v1117_v56, %v1121_v57  ;;  %v1197_v59 = vld [vmem:[#allocation2 + $0x458] sm:$0xff] }
 0x3c0   :  { %2785 = vmatpush2.bf16.msra.mxu0 %v7002_v5  ;;  %v1241_v5 = vld [vmem:[#allocation2 + $0x5b8] sm:$0xff] }
 0x3c1   :  { %2786 = vmatprep.subr.bf16.mxu0 %v6995_v7  ;;  %v7076_v7 = vcombine.low %v1245_v58, %v1249_v61  ;;  %v7069_v9 = vcombine.high %v1237_v4, %v1241_v5  ;;  %v1193_v58 = vld [vmem:[#allocation2 + $0x438] sm:$0xff] }
 0x3c2   :  { %2826 = vmatpush2.bf16.msra.mxu1 %v7130_v6  ;;  %v6948_v6 = vcombine.low %v1117_v56, %v1121_v57  ;;  %v1065_v56 = vld [vmem:[#allocation2 + $0x38] sm:$0xff] }
 0x3c3   :  { %2827 = vmatprep.subr.bf16.mxu1 %v7123_v8  ;;  %v6941_v8 = vcombine.high %v1109_v2, %v1113_v3  ;;  %v1189_v57 = vld [vmem:[#allocation2 + $0x418] sm:$0xff] }
 0x3c4   :  { %2787 = vmatpush2.bf16.msra.mxu0 %v6994_v13  ;;  %v1233_v13 = vld [vmem:[#allocation2 + $0x578] sm:$0xff] }
 0x3c5   :  { %2788 = vmatprep.subr.bf16.mxu0 %v6987_v15  ;;  %v7068_v15 = vcombine.low %v1237_v4, %v1241_v5  ;;  %v7061_v18 = vcombine.high %v1229_v12, %v1233_v13  ;;  %v1313_v4 = vld [vmem:[#allocation2 + $0x7f8] sm:$0xff] }
 0x3c6   :  { %2828 = vmatpush2.bf16.msra.mxu1 %v7122_v14  ;;  %v6940_v14 = vcombine.low %v1109_v2, %v1113_v3  ;;  %v1185_v2 = vld [vmem:[#allocation2 + $0x3f8] sm:$0xff] }
 0x3c7   :  { %2829 = vmatprep.subr.bf16.mxu1 %v7115_v16  ;;  %v6933_v16 = vcombine.high %v1101_v10, %v1105_v11  ;;  %v1309_v3 = vld [vmem:[#allocation2 + $0x7d8] sm:$0xff] }
 0x3c8   :  { %2789 = vmatpush2.bf16.msra.mxu0 %v6986_v23  ;;  %v1225_v23 = vld [vmem:[#allocation2 + $0x538] sm:$0xff] }
 0x3c9   :  { %2790 = vmatprep.subr.bf16.mxu0 %v6979_v26  ;;  %v7060_v26 = vcombine.low %v1229_v12, %v1233_v13  ;;  %v7053_v29 = vcombine.high %v1221_v22, %v1225_v23  ;;  %v1305_v12 = vld [vmem:[#allocation2 + $0x7b8] sm:$0xff] }
 0x3ca   :  { %2830 = vmatpush2.bf16.msra.mxu1 %v7114_v24  ;;  %v6932_v24 = vcombine.low %v1101_v10, %v1105_v11  ;;  %v1177_v10 = vld [vmem:[#allocation2 + $0x3b8] sm:$0xff] }
 0x3cb   :  { %2831 = vmatprep.subr.bf16.mxu1 %v7107_v27  ;;  %v6925_v27 = vcombine.high %v1093_v19, %v1097_v20  ;;  %v1301_v11 = vld [vmem:[#allocation2 + $0x798] sm:$0xff] }
 0x3cc   :  { %2791 = vmatpush2.bf16.msra.mxu0 %v6978_v35  ;;  %v1217_v35 = vld [vmem:[#allocation2 + $0x4f8] sm:$0xff] }
 0x3cd   :  { %2792 = vmatprep.subr.bf16.mxu0 %v6971_v45  ;;  %v6917_v45 = vcombine.high %v1085_v32, %v1089_v53  ;;  %v1161_v32 = vld [vmem:[#allocation2 + $0x338] sm:$0xff] }
 0x3ce   :  { %2832 = vmatpush2.bf16.msra.mxu1 %v7106_v41  ;;  %v6924_v41 = vcombine.low %v1093_v19, %v1097_v20  ;;  %v1169_v19 = vld [vmem:[#allocation2 + $0x378] sm:$0xff] }
 0x3cf   :  { %2833 = vmatprep.subr.bf16.mxu1 %v7099_v36  ;;  %v1077_v36 = vld [vmem:[#allocation2 + $0x98] sm:$0xff] }
 0x3d0   :  { %2793 = vmatpush2.bf16.msra.mxu0 %v6970_v38  ;;  %v7044_v38 = vcombine.low %v1213_v33, %v1217_v35  ;;  %v6908_v47 = vcombine.low %v1077_v36, %v1081_v44  ;;  %v1293_v20 = vld [vmem:[#allocation2 + $0x758] sm:$0xff] }
 0x3d1   :  { %2794 = vmatprep.subr.bf16.mxu0 %v6963_v40  ;;  %v7037_v40 = vcombine.high %v1205_v60, %v1209_v37  ;;  %v1285_v53 = vld [vmem:[#allocation2 + $0x718] sm:$0xff] }
 0x3d2   :  { %2834 = vmatpush2.bf16.msra.mxu1 %v7098_v39  ;;  %v6909_v39 = vcombine.high %v1077_v36, %v1081_v44  ;;  %v1153_v36 = vld [vmem:[#allocation2 + $0x2f8] sm:$0xff] }
 0x3d3   :  { %2835 = vmatprep.subr.bf16.mxu1 %v7091_v42  ;;  %v1069_v42 = vld [vmem:[#allocation2 + $0x58] sm:$0xff] }
 0x3d4   :  { %2795 = vmatpush2.bf16.msra.mxu0 %v6962_v48  ;;  %v7036_v48 = vcombine.low %v1205_v60, %v1209_v37  ;;  %v6900_v61 = vcombine.low %v1069_v42, %v1073_v43  ;;  %v1277_v44 = vld [vmem:[#allocation2 + $0x6d8] sm:$0xff] }
 0x3d5   :  { %2796 = vmatprep.subr.bf16.mxu0 %v6955_v50  ;;  %v7029_v50 = vcombine.high %v1197_v59, %v1201_v46  ;;  %v1281_v60 = vld [vmem:[#allocation2 + $0x6f8] sm:$0xff] }
 0x3d6   :  { %2836 = vmatpush2.bf16.msra.mxu1 %v7090_v49  ;;  %v6901_v49 = vcombine.high %v1069_v42, %v1073_v43  ;;  %v1145_v42 = vld [vmem:[#allocation2 + $0x2b8] sm:$0xff] }
 0x3d7   :  { %2837 = vmatprep.subr.bf16.mxu1 %v7083_v55  ;;  %v1061_v55 = vld [vmem:[#allocation2 + $0x18] sm:$0xff] }
 0x3d8   :  { %2797 = vmatpush2.bf16.msra.mxu0 %v6954_v62  ;;  %v7028_v62 = vcombine.low %v1197_v59, %v1201_v46  ;;  %v6892_v5 = vcombine.low %v1061_v55, %v1065_v56  ;;  %v1269_v43 = vld [vmem:[#allocation2 + $0x698] sm:$0xff] }
 0x3d9   :  { %2848 = vmatprep.subr.bf16.mxu0 %v6949_v0  ;;  %v7021_v0 = vcombine.high %v1189_v57, %v1193_v58  ;;  %v1273_v59 = vld [vmem:[#allocation2 + $0x6b8] sm:$0xff] }
 0x3da   :  { %2838 = vmatpush2.bf16.msra.mxu1 %v7082_v63  ;;  %v6893_v63 = vcombine.high %v1061_v55, %v1065_v56  ;;  %v1137_v55 = vld [vmem:[#allocation2 + $0x278] sm:$0xff] }
 0x3db   :  { %2889 = vmatprep.subr.bf16.mxu1 %v7077_v1  ;;  %2799 = vmatmul.mubr.bf16.vlgmr.msra.gmra.mxu0 %v8850_v25  ;;  %v1181_v1 = vld [vmem:[#allocation2 + $0x3d8] sm:$0xff] }
 0x3dc   :  { %2849 = vmatpush1.bf16.msra.mxu0 %v6948_v6  ;;  %2880 = vmatprep.mubr.bf16.mxu0 %v8841_v51  ;;  %v7052_v51 = vcombine.low %v1221_v22, %v1225_v23  ;;  %v7020_v6 = vcombine.low %v1189_v57, %v1193_v58  ;;  %v7012_v13 = vcombine.low %v1181_v1, %v1185_v2  ;;  %v1297_v22 = vld [vmem:[#allocation2 + $0x778] sm:$0xff] }
 0x3dd   :  { %2840 = vmatmul.mubr.bf16.vlgmr.msra.gmra.mxu1 %v8855_v28  ;;  %2850 = vmatprep.subr.bf16.mxu0 %v6941_v8  ;;  %v7141_v8 = vcombine.high %v1309_v3, %v1313_v4  ;;  %v1261_v56 = vld [vmem:[#allocation2 + $0x658] sm:$0xff] }
 0x3de   :  { %2890 = vmatpush1.bf16.msra.mxu1 %v7076_v7  ;;  %2921 = vmatprep.mubr.bf16.mxu1 %v8843_v52  ;;  %v7045_v52 = vcombine.high %v1213_v33, %v1217_v35  ;;  %v7013_v7 = vcombine.high %v1181_v1, %v1185_v2  ;;  %v1289_v33 = vld [vmem:[#allocation2 + $0x738] sm:$0xff] }
 0x3df   :  { %2891 = vmatprep.subr.bf16.mxu1 %v7069_v9  ;;  %v1173_v9 = vld [vmem:[#allocation2 + $0x398] sm:$0xff] }
 0x3e0   :  { %2851 = vmatpush1.bf16.msra.mxu0 %v6940_v14  ;;  %v7140_v14 = vcombine.low %v1309_v3, %v1313_v4  ;;  %v7004_v23 = vcombine.low %v1173_v9, %v1177_v10  ;;  %v1265_v57 = vld [vmem:[#allocation2 + $0x678] sm:$0xff] }
 0x3e1   :  { %2852 = vmatprep.subr.bf16.mxu0 %v6933_v16  ;;  %v7133_v16 = vcombine.high %v1301_v11, %v1305_v12  ;;  %v1129_v1 = vld [vmem:[#allocation2 + $0x238] sm:$0xff] }
 0x3e2   :  { %2892 = vmatpush1.bf16.msra.mxu1 %v7068_v15  ;;  %v7005_v15 = vcombine.high %v1173_v9, %v1177_v10  ;;  %v1253_v2 = vld [vmem:[#allocation2 + $0x618] sm:$0xff] }
 0x3e3   :  { %2893 = vmatprep.subr.bf16.mxu1 %v7061_v18  ;;  %v1165_v18 = vld [vmem:[#allocation2 + $0x358] sm:$0xff] }
 0x3e4   :  { %2853 = vmatpush1.bf16.msra.mxu0 %v6932_v24  ;;  %v7132_v24 = vcombine.low %v1301_v11, %v1305_v12  ;;  %v6996_v35 = vcombine.low %v1165_v18, %v1169_v19  ;;  %v1257_v3 = vld [vmem:[#allocation2 + $0x638] sm:$0xff] }
 0x3e5   :  { %2854 = vmatprep.subr.bf16.mxu0 %v6925_v27  ;;  %v7125_v27 = vcombine.high %v1293_v20, %v1297_v22  ;;  %v7084_v9 = vcombine.low %v1253_v2, %v1257_v3 }
 0x3e6   :  { %2894 = vmatpush1.bf16.msra.mxu1 %v7060_v26  ;;  %v6997_v26 = vcombine.high %v1165_v18, %v1169_v19 }
 0x3e7   :  { %2895 = vmatprep.subr.bf16.mxu1 %v7053_v29  ;;  %v1157_v29 = vld [vmem:[#allocation2 + $0x318] sm:$0xff] }
 0x3e8   :  { %2855 = vmatpush1.bf16.msra.mxu0 %v6924_v41  ;;  %v7124_v41 = vcombine.low %v1293_v20, %v1297_v22  ;;  %v6988_v37 = vcombine.low %v1157_v29, %v1161_v32 }
 0x3e9   :  { %2856 = vmatprep.subr.bf16.mxu0 %v6917_v45  ;;  %v7117_v45 = vcombine.high %v1285_v53, %v1289_v33 }
 0x3ea   :  { %2896 = vmatpush1.bf16.msra.mxu1 %v7052_v51  ;;  %v6989_v51 = vcombine.high %v1157_v29, %v1161_v32 }
 0x3eb   :  { %2897 = vmatprep.subr.bf16.mxu1 %v7045_v52  ;;  %v1149_v52 = vld [vmem:[#allocation2 + $0x2d8] sm:$0xff] }
 0x3ec   :  { %2857 = vmatpush1.bf16.msra.mxu0 %v6916_v54  ;;  %v7116_v54 = vcombine.low %v1285_v53, %v1289_v33  ;;  %v6980_v46 = vcombine.low %v1149_v52, %v1153_v36 }
 0x3ed   :  { %2858 = vmatprep.subr.bf16.mxu0 %v6909_v39  ;;  %v7109_v39 = vcombine.high %v1277_v44, %v1281_v60 }
 0x3ee   :  { %2898 = vmatpush1.bf16.msra.mxu1 %v7044_v38  ;;  %v6981_v38 = vcombine.high %v1149_v52, %v1153_v36 }
 0x3ef   :  { %2899 = vmatprep.subr.bf16.mxu1 %v7037_v40  ;;  %v1141_v40 = vld [vmem:[#allocation2 + $0x298] sm:$0xff] }
 0x3f0   :  { %2859 = vmatpush1.bf16.msra.mxu0 %v6908_v47  ;;  %v7108_v47 = vcombine.low %v1277_v44, %v1281_v60  ;;  %v6972_v58 = vcombine.low %v1141_v40, %v1145_v42 }
 0x3f1   :  { %2860 = vmatprep.subr.bf16.mxu0 %v6901_v49  ;;  %v7101_v49 = vcombine.high %v1269_v43, %v1273_v59 }
 0x3f2   :  { %2900 = vmatpush1.bf16.msra.mxu1 %v7036_v48  ;;  %v6973_v48 = vcombine.high %v1141_v40, %v1145_v42 }
 0x3f3   :  { %2901 = vmatprep.subr.bf16.mxu1 %v7029_v50  ;;  %v1133_v50 = vld [vmem:[#allocation2 + $0x258] sm:$0xff] }
 0x3f4   :  { %2861 = vmatpush1.bf16.msra.mxu0 %v6900_v61  ;;  %v7100_v61 = vcombine.low %v1269_v43, %v1273_v59  ;;  %v6964_v4 = vcombine.low %v1133_v50, %v1137_v55 }
 0x3f5   :  { %2862 = vmatprep.subr.bf16.mxu0 %v6893_v63  ;;  %v7093_v63 = vcombine.high %v1261_v56, %v1265_v57 }
 0x3f6   :  { %2902 = vmatpush1.bf16.msra.mxu1 %v7028_v62  ;;  %v6965_v62 = vcombine.high %v1133_v50, %v1137_v55 }
 0x3f7   :  { %2903 = vmatprep.subr.bf16.mxu1 %v7021_v0  ;;  %v1125_v0 = vld [vmem:[#allocation2 + $0x218] sm:$0xff] }
 0x3f8   :  { %2863 = vmatpush1.bf16.msra.mxu0 %v6892_v5  ;;  %v7092_v5 = vcombine.low %v1261_v56, %v1265_v57 }
 0x3f9   :  { %2864 = vmatprep.subr.bf16.mxu0 %v7013_v7  ;;  %v7085_v7 = vcombine.high %v1253_v2, %v1257_v3  ;;  %v1320_v2 = vld [vmem:[#allocation13 + $0x7] ss:$8 sm:$0xf0] }
 0x3fa   :  { %2904 = vmatpush1.bf16.msra.mxu1 %v7020_v6  ;;  %v6957_v6 = vcombine.high %v1125_v0, %v1129_v1 }
 0x3fb   :  { %2905 = vmatprep.subr.bf16.mxu1 %v7141_v8  ;;  %v6956_v8 = vcombine.low %v1125_v0, %v1129_v1  ;;  %v1316_v0 = vld [vmem:[#allocation13 + $0x3] ss:$8 sm:$0xf0]  ;;  %v1319_v1 = vld [vmem:[#allocation13 + $0x7] ss:$8 sm:$0xf] }
 0x3fc   :  { %2865 = vmatpush2.bf16.msra.mxu0 %v7012_v13 }
 0x3fd   :  { %2866 = vmatprep.subr.bf16.mxu0 %v7005_v15 }
 0x3fe   :  { %2906 = vmatpush2.bf16.msra.mxu1 %v7140_v14 }
 0x3ff   :  { %2907 = vmatprep.subr.bf16.mxu1 %v7133_v16 }
 0x400   :  { %2867 = vmatpush2.bf16.msra.mxu0 %v7004_v23 }
 0x401   :  { %2868 = vmatprep.subr.bf16.mxu0 %v6997_v26 }
 0x402   :  { %2908 = vmatpush2.bf16.msra.mxu1 %v7132_v24 }
 0x403   :  { %2909 = vmatprep.subr.bf16.mxu1 %v7125_v27 }
 0x404   :  { %2869 = vmatpush2.bf16.msra.mxu0 %v6996_v35 }
 0x405   :  { %2870 = vmatprep.subr.bf16.mxu0 %v6989_v51 }
 0x406   :  { %2910 = vmatpush2.bf16.msra.mxu1 %v7124_v41 }
 0x407   :  { %2911 = vmatprep.subr.bf16.mxu1 %v7117_v45 }
 0x408   :  { %2871 = vmatpush2.bf16.msra.mxu0 %v6988_v37 }
 0x409   :  { %2872 = vmatprep.subr.bf16.mxu0 %v6981_v38 }
 0x40a   :  { %2912 = vmatpush2.bf16.msra.mxu1 %v7116_v54 }
 0x40b   :  { %2913 = vmatprep.subr.bf16.mxu1 %v7109_v39 }
 0x40c   :  { %2873 = vmatpush2.bf16.msra.mxu0 %v6980_v46 }
 0x40d   :  { %2874 = vmatprep.subr.bf16.mxu0 %v6973_v48 }
 0x40e   :  { %2914 = vmatpush2.bf16.msra.mxu1 %v7108_v47 }
 0x40f   :  { %2915 = vmatprep.subr.bf16.mxu1 %v7101_v49 }
 0x410   :  { %2875 = vmatpush2.bf16.msra.mxu0 %v6972_v58 }
 0x411   :  { %2876 = vmatprep.subr.bf16.mxu0 %v6965_v62 }
 0x412   :  { %2916 = vmatpush2.bf16.msra.mxu1 %v7100_v61 }
 0x413   :  { %2917 = vmatprep.subr.bf16.mxu1 %v7093_v63  ;;  %v1315_v63 = vld [vmem:[#allocation13 + $0x3] ss:$8 sm:$0xf] }
 0x414   :  { %2877 = vmatpush2.bf16.msra.mxu0 %v6964_v4  ;;  %v8871_v3 = vor.u32 %v1316_v0, %v1315_v63  ;;  %v8873_v4 = vor.u32 %v1320_v2, %v1319_v1 }
 0x415   :  { %2878 = vmatprep.subr.bf16.mxu0 %v6957_v6 }
 0x416   :  { %2918 = vmatpush2.bf16.msra.mxu1 %v7092_v5  ;;  %v3110_v6 = vrot.slane %v8871_v3, %v8778_v31 }
 0x417   :  { %2919 = vmatprep.subr.bf16.mxu1 %v7085_v7 }
 0x418   :  { %2879 = vmatpush2.bf16.msra.mxu0 %v6956_v8 }
 0x41a   :  { %2920 = vmatpush2.bf16.msra.mxu1 %v7084_v9  ;;  %v3159_v9 = vrot.slane %v8873_v4, %v8778_v31 }
 0x41b   :  { %v2636_v10 = vpop.f32.mrf.mxu0  ;;  %2881 = vmatmul.mubr.bf16.vlgmr.msra.gmra.mxu0 %v8850_v25 }
 0x41d   :  { %v2677_v11 = vpop.f32.mrf.mxu1  ;;  %2922 = vmatmul.mubr.bf16.vlgmr.msra.gmra.mxu1 %v8855_v28  ;;  %v2638_v13 = vpop.f32.mrf.mxu0 }
 0x41e   :  { %v2678_v12 = vadd.f32 %v2677_v11, %v2636_v10  ;;  %v3114_v11 = vrot.slane %v8871_v3, %v8781_v34 }
 0x41f   :  { %v2679_v14 = vpop.f32.mrf.mxu1  ;;  %v2640_v19 = vpop.f32.mrf.mxu0 }
 0x420   :  { %v2930_v15 = vrot.slane %v2678_v12, 4  ;;  %v2986_v16 = vmul.f32 %v2678_v12, %v2678_v12  ;;  %v2680_v18 = vadd.f32 %v2679_v14, %v2638_v13 }
 0x421   :  { %v2681_v20 = vpop.f32.mrf.mxu1  ;;  %v2641_v27 = vpop.f32.mrf.mxu0 }
 0x422   :  { %v2931_v22 = vadd.f32 %v2930_v15, %v2678_v12  ;;  %v2994_v23 = vrot.slane %v2986_v16, 4  ;;  %v2936_v24 = vrot.slane %v2680_v18, 4  ;;  %v2987_v26 = vmul.f32 %v2680_v18, %v2680_v18 }
 0x423   :  { %v2682_v29 = vpop.f32.mrf.mxu1 }
 0x424   :  { %v2932_v32 = vrot.slane %v2931_v22, 2  ;;  %v2995_v53 = vadd.f32 %v2994_v23, %v2986_v16  ;;  %v2937_v25 = vadd.f32 %v2936_v24, %v2680_v18  ;;  %v3000_v33 = vrot.slane %v2987_v26, 4 }
 0x425   :  { %v3163_v16 = vrot.slane %v8873_v4, %v8781_v34 }
 0x426   :  { %v2933_v35 = vadd.f32 %v2932_v32, %v2931_v22  ;;  %v2996_v28 = vrot.slane %v2995_v53, 2  ;;  %v2938_v41 = vrot.slane %v2937_v25, 2  ;;  %v3001_v51 = vadd.f32 %v3000_v33, %v2987_v26 }
 0x428   :  { %v2934_v45 = vrot.slane %v2933_v35, 1  ;;  %v2997_v52 = vadd.f32 %v2996_v28, %v2995_v53  ;;  %v2939_v36 = vadd.f32 %v2938_v41, %v2937_v25  ;;  %v3002_v44 = vrot.slane %v3001_v51, 2 }
 0x42a   :  { %v2935_v60 = vadd.f32 %v2934_v45, %v2933_v35  ;;  %v2998_v37 = vrot.slane %v2997_v52, 1  ;;  %v2940_v54 = vrot.slane %v2939_v36, 1  ;;  %v3003_v38 = vadd.f32 %v3002_v44, %v3001_v51 }
 0x42c   :  { %v2978_v39 = vmul.f32 0.125, %v2935_v60  ;;  %v2999_v40 = vadd.f32 %v2998_v37, %v2997_v52  ;;  %v2941_v42 = vadd.f32 %v2940_v54, %v2939_v36  ;;  %v3004_v43 = vrot.slane %v3003_v38, 1 }
 0x42e   :  { %v3042_v59 = vmul.f32 0.125, %v2999_v40  ;;  %v3050_v46 = vmul.f32 %v2978_v39, %v2978_v39  ;;  %v2979_v47 = vmul.f32 0.125, %v2941_v42  ;;  %v3005_v48 = vadd.f32 %v3004_v43, %v3003_v38 }
 0x42f   :  { %v3074_v5 = vsub.f32 %v2678_v12, %v2978_v39 }
 0x430   :  { %v3058_v49 = vsub.f32 %v3042_v59, %v3050_v46  ;;  %v3051_v50 = vmul.f32 %v2979_v47, %v2979_v47  ;;  %v3043_v55 = vmul.f32 0.125, %v3005_v48  ;;  %v3075_v10 = vsub.f32 %v2680_v18, %v2979_v47 }
 0x432   :  { %v3066_v56 = vmax.f32 %v3058_v49, 0.0  ;;  %v3059_v57 = vsub.f32 %v3043_v55, %v3051_v50 }
 0x434   :  { %v3082_v58 = vadd.f32 1e-05, %v3066_v56  ;;  %v3067_v61 = vmax.f32 %v3059_v57, 0.0 }
 0x436   :  { %7841 = vrsqrt.f32 %v3082_v58  ;;  %v3083_v62 = vadd.f32 1e-05, %v3067_v61 }
 0x438   :  { %7843 = vrsqrt.f32 %v3083_v62 }
 0x443   :  { %v7842_v7 = vpop.eup %7841 }
 0x444   :  { %v3098_v8 = vmul.f32 %v7842_v7, %v3074_v5 }
 0x445   :  { %v7844_v13 = vpop.eup %7843 }
 0x446   :  { %v3147_v14 = vmul.f32 %v3110_v6, %v3098_v8  ;;  %v3099_v15 = vmul.f32 %v7844_v13, %v3075_v10 }
 0x448   :  { %v8883_v19 = vadd.f32 %v3159_v9, %v3147_v14  ;;  %v3148_v12 = vmul.f32 %v3114_v11, %v3099_v15  ;;  %v3118_v14 = vrot.slane %v8871_v3, %v8818_v17 }
 0x44a   :  { %v3204_v20 = vmax.f32 %v8883_v19, 0.0  ;;  %v8886_v22 = vadd.f32 %v3163_v16, %v3148_v12  ;;  %v3167_v12 = vrot.slane %v8873_v4, %v8818_v17 }
 0x44c   :  { %v3205_v23 = vmax.f32 %v8886_v22, 0.0 }
 0x45b   :  { %v2718_v24 = vpop.f32.mrf.mxu0 }
 0x45d   :  { %v2759_v18 = vpop.f32.mrf.mxu1  ;;  %v2720_v27 = vpop.f32.mrf.mxu0 }
 0x45e   :  { %v2760_v26 = vadd.f32 %v2759_v18, %v2718_v24  ;;  %v3122_v18 = vrot.slane %v8871_v3, %v8823_v21 }
 0x45f   :  { %v2761_v29 = vpop.f32.mrf.mxu1  ;;  %v2722_v33 = vpop.f32.mrf.mxu0 }
 0x460   :  { %v2942_v32 = vrot.slane %v2760_v26, 4  ;;  %v2988_v53 = vmul.f32 %v2760_v26, %v2760_v26  ;;  %v2762_v25 = vadd.f32 %v2761_v29, %v2720_v27 }
 0x461   :  { %v2763_v35 = vpop.f32.mrf.mxu1  ;;  %v2723_v52 = vpop.f32.mrf.mxu0 }
 0x462   :  { %v2943_v28 = vadd.f32 %v2942_v32, %v2760_v26  ;;  %v3006_v41 = vrot.slane %v2988_v53, 4  ;;  %v2948_v51 = vrot.slane %v2762_v25, 4  ;;  %v2989_v45 = vmul.f32 %v2762_v25, %v2762_v25 }
 0x463   :  { %v2764_v36 = vpop.f32.mrf.mxu1 }
 0x464   :  { %v2944_v44 = vrot.slane %v2943_v28, 2  ;;  %v3007_v60 = vadd.f32 %v3006_v41, %v2988_v53  ;;  %v2949_v37 = vadd.f32 %v2948_v51, %v2762_v25  ;;  %v3012_v54 = vrot.slane %v2989_v45, 4 }
 0x465   :  { %v3171_v53 = vrot.slane %v8873_v4, %v8823_v21 }
 0x466   :  { %v2945_v38 = vadd.f32 %v2944_v44, %v2943_v28  ;;  %v3008_v39 = vrot.slane %v3007_v60, 2  ;;  %v2950_v40 = vrot.slane %v2949_v37, 2  ;;  %v3013_v42 = vadd.f32 %v3012_v54, %v2989_v45 }
 0x468   :  { %v2946_v43 = vrot.slane %v2945_v38, 1  ;;  %v3009_v59 = vadd.f32 %v3008_v39, %v3007_v60  ;;  %v2951_v46 = vadd.f32 %v2950_v40, %v2949_v37  ;;  %v3014_v47 = vrot.slane %v3013_v42, 2 }
 0x46a   :  { %v2947_v48 = vadd.f32 %v2946_v43, %v2945_v38  ;;  %v3010_v49 = vrot.slane %v3009_v59, 1  ;;  %v2952_v50 = vrot.slane %v2951_v46, 1  ;;  %v3015_v55 = vadd.f32 %v3014_v47, %v3013_v42 }
 0x46c   :  { %v2980_v56 = vmul.f32 0.125, %v2947_v48  ;;  %v3011_v57 = vadd.f32 %v3010_v49, %v3009_v59  ;;  %v2953_v58 = vadd.f32 %v2952_v50, %v2951_v46  ;;  %v3016_v61 = vrot.slane %v3015_v55, 1 }
 0x46e   :  { %v3044_v62 = vmul.f32 0.125, %v3011_v57  ;;  %v3052_v63 = vmul.f32 %v2980_v56, %v2980_v56  ;;  %v2981_v0 = vmul.f32 0.125, %v2953_v58  ;;  %v3017_v1 = vadd.f32 %v3016_v61, %v3015_v55 }
 0x46f   :  { %v3076_v13 = vsub.f32 %v2760_v26, %v2980_v56 }
 0x470   :  { %v3060_v2 = vsub.f32 %v3044_v62, %v3052_v63  ;;  %v3053_v5 = vmul.f32 %v2981_v0, %v2981_v0  ;;  %v3045_v6 = vmul.f32 0.125, %v3017_v1  ;;  %v3077_v24 = vsub.f32 %v2762_v25, %v2981_v0 }
 0x472   :  { %v3068_v7 = vmax.f32 %v3060_v2, 0.0  ;;  %v3061_v8 = vsub.f32 %v3045_v6, %v3053_v5 }
 0x474   :  { %v3084_v9 = vadd.f32 1e-05, %v3068_v7  ;;  %v3069_v10 = vmax.f32 %v3061_v8, 0.0 }
 0x476   :  { %7845 = vrsqrt.f32 %v3084_v9  ;;  %v3085_v11 = vadd.f32 1e-05, %v3069_v10 }
 0x478   :  { %7847 = vrsqrt.f32 %v3085_v11 }
 0x483   :  { %v7846_v15 = vpop.eup %7845 }
 0x484   :  { %v3100_v16 = vmul.f32 %v7846_v15, %v3076_v13 }
 0x485   :  { %v7848_v27 = vpop.eup %7847 }
 0x486   :  { %v3149_v29 = vmul.f32 %v3118_v14, %v3100_v16  ;;  %v3101_v32 = vmul.f32 %v7848_v27, %v3077_v24 }
 0x488   :  { %v8897_v33 = vadd.f32 %v3167_v12, %v3149_v29  ;;  %v3150_v26 = vmul.f32 %v3122_v18, %v3101_v32 }
 0x48a   :  { %v3206_v35 = vmax.f32 %v8897_v33, 0.0  ;;  %v8900_v28 = vadd.f32 %v3171_v53, %v3150_v26  ;;  %v8904_v26 = vsub.s32 4, %v8775_v30 }
 0x48c   :  { %v3207_v41 = vmax.f32 %v8900_v28, 0.0 }
 0x49b   :  { %v2800_v51 = vpop.f32.mrf.mxu0 }
 0x49d   :  { %v2841_v25 = vpop.f32.mrf.mxu1  ;;  %v2802_v52 = vpop.f32.mrf.mxu0 }
 0x49e   :  { %v2842_v45 = vadd.f32 %v2841_v25, %v2800_v51  ;;  %v8907_v51 = vsub.s32 5, %v8775_v30 }
 0x49f   :  { %v2843_v36 = vpop.f32.mrf.mxu1  ;;  %v2804_v54 = vpop.f32.mrf.mxu0 }
 0x4a0   :  { %v2954_v44 = vrot.slane %v2842_v45, 4  ;;  %v2990_v60 = vmul.f32 %v2842_v45, %v2842_v45  ;;  %v2844_v37 = vadd.f32 %v2843_v36, %v2802_v52  ;;  %v3126_v52 = vrot.slane %v8871_v3, %v8904_v26 }
 0x4a1   :  { %v2845_v38 = vpop.f32.mrf.mxu1  ;;  %v2805_v59 = vpop.f32.mrf.mxu0 }
 0x4a2   :  { %v2955_v39 = vadd.f32 %v2954_v44, %v2842_v45  ;;  %v3018_v40 = vrot.slane %v2990_v60, 4  ;;  %v2960_v42 = vrot.slane %v2844_v37, 4  ;;  %v2991_v43 = vmul.f32 %v2844_v37, %v2844_v37 }
 0x4a3   :  { %v2846_v46 = vpop.f32.mrf.mxu1  ;;  %v3130_v38 = vrot.slane %v8871_v3, %v8907_v51 }
 0x4a4   :  { %v2956_v47 = vrot.slane %v2955_v39, 2  ;;  %v3019_v48 = vadd.f32 %v3018_v40, %v2990_v60  ;;  %v2961_v49 = vadd.f32 %v2960_v42, %v2844_v37  ;;  %v3024_v50 = vrot.slane %v2991_v43, 4 }
 0x4a5   :  { %v3175_v60 = vrot.slane %v8873_v4, %v8904_v26 }
 0x4a6   :  { %v2957_v55 = vadd.f32 %v2956_v47, %v2955_v39  ;;  %v3020_v56 = vrot.slane %v3019_v48, 2  ;;  %v2962_v57 = vrot.slane %v2961_v49, 2  ;;  %v3025_v58 = vadd.f32 %v3024_v50, %v2991_v43 }
 0x4a7   :  { %v3179_v43 = vrot.slane %v8873_v4, %v8907_v51 }
 0x4a8   :  { %v2958_v61 = vrot.slane %v2957_v55, 1  ;;  %v3021_v62 = vadd.f32 %v3020_v56, %v3019_v48  ;;  %v2963_v63 = vadd.f32 %v2962_v57, %v2961_v49  ;;  %v3026_v0 = vrot.slane %v3025_v58, 2 }
 0x4aa   :  { %v2959_v1 = vadd.f32 %v2958_v61, %v2957_v55  ;;  %v3022_v2 = vrot.slane %v3021_v62, 1  ;;  %v2964_v5 = vrot.slane %v2963_v63, 1  ;;  %v3027_v6 = vadd.f32 %v3026_v0, %v3025_v58 }
 0x4ac   :  { %v2982_v7 = vmul.f32 0.125, %v2959_v1  ;;  %v3023_v8 = vadd.f32 %v3022_v2, %v3021_v62  ;;  %v2965_v9 = vadd.f32 %v2964_v5, %v2963_v63  ;;  %v3028_v10 = vrot.slane %v3027_v6, 1 }
 0x4ae   :  { %v3046_v11 = vmul.f32 0.125, %v3023_v8  ;;  %v3054_v13 = vmul.f32 %v2982_v7, %v2982_v7  ;;  %v2983_v14 = vmul.f32 0.125, %v2965_v9  ;;  %v3029_v15 = vadd.f32 %v3028_v10, %v3027_v6 }
 0x4af   :  { %v3078_v25 = vsub.f32 %v2842_v45, %v2982_v7 }
 0x4b0   :  { %v3062_v16 = vsub.f32 %v3046_v11, %v3054_v13  ;;  %v3055_v12 = vmul.f32 %v2983_v14, %v2983_v14  ;;  %v3047_v24 = vmul.f32 0.125, %v3029_v15  ;;  %v3079_v54 = vsub.f32 %v2844_v37, %v2983_v14 }
 0x4b2   :  { %v3070_v18 = vmax.f32 %v3062_v16, 0.0  ;;  %v3063_v27 = vsub.f32 %v3047_v24, %v3055_v12 }
 0x4b4   :  { %v3086_v29 = vadd.f32 1e-05, %v3070_v18  ;;  %v3071_v32 = vmax.f32 %v3063_v27, 0.0 }
 0x4b6   :  { %7849 = vrsqrt.f32 %v3086_v29  ;;  %v3087_v53 = vadd.f32 1e-05, %v3071_v32 }
 0x4b8   :  { %7851 = vrsqrt.f32 %v3087_v53 }
 0x4c3   :  { %v7850_v36 = vpop.eup %7849 }
 0x4c4   :  { %v3102_v44 = vmul.f32 %v7850_v36, %v3078_v25 }
 0x4c5   :  { %v7852_v39 = vpop.eup %7851 }
 0x4c6   :  { %v3151_v40 = vmul.f32 %v3126_v52, %v3102_v44  ;;  %v3103_v42 = vmul.f32 %v7852_v39, %v3079_v54 }
 0x4c8   :  { %v8917_v59 = vadd.f32 %v3175_v60, %v3151_v40  ;;  %v3152_v45 = vmul.f32 %v3130_v38, %v3103_v42 }
 0x4ca   :  { %v3208_v46 = vmax.f32 %v8917_v59, 0.0  ;;  %v8920_v47 = vadd.f32 %v3179_v43, %v3152_v45 }
 0x4cc   :  { %v3209_v48 = vmax.f32 %v8920_v47, 0.0 }
 0x4db   :  { %v2882_v49 = vpop.f32.mrf.mxu0 }
 0x4dd   :  { %v2923_v37 = vpop.f32.mrf.mxu1  ;;  %v2884_v55 = vpop.f32.mrf.mxu0 }
 0x4de   :  { %v2924_v50 = vadd.f32 %v2923_v37, %v2882_v49 }
 0x4df   :  { %v2925_v56 = vpop.f32.mrf.mxu1  ;;  %v2886_v62 = vpop.f32.mrf.mxu0 }
 0x4e0   :  { %v2966_v57 = vrot.slane %v2924_v50, 4  ;;  %v2992_v58 = vmul.f32 %v2924_v50, %v2924_v50  ;;  %v2926_v61 = vadd.f32 %v2925_v56, %v2884_v55  ;;  %v3137_v62 = vsub.s32 7, %v8775_v30 }
 0x4e1   :  { %v2927_v63 = vpop.f32.mrf.mxu1  ;;  %v2887_v6 = vpop.f32.mrf.mxu0 }
 0x4e2   :  { %v2967_v0 = vadd.f32 %v2966_v57, %v2924_v50  ;;  %v3030_v1 = vrot.slane %v2992_v58, 4  ;;  %v2972_v2 = vrot.slane %v2926_v61, 4  ;;  %v2993_v5 = vmul.f32 %v2926_v61, %v2926_v61 }
 0x4e3   :  { %v2928_v7 = vpop.f32.mrf.mxu1 }
 0x4e4   :  { %v2968_v8 = vrot.slane %v2967_v0, 2  ;;  %v3031_v9 = vadd.f32 %v3030_v1, %v2992_v58  ;;  %v2973_v10 = vadd.f32 %v2972_v2, %v2926_v61  ;;  %v3036_v11 = vrot.slane %v2993_v5, 4 }
 0x4e5   :  { %v8924_v58 = vsub.s32 6, %v8775_v30  ;;  %v3138_v7 = vrot.slane %v8871_v3, %v3137_v62 }
 0x4e6   :  { %v2969_v13 = vadd.f32 %v2968_v8, %v2967_v0  ;;  %v3032_v14 = vrot.slane %v3031_v9, 2  ;;  %v2974_v15 = vrot.slane %v2973_v10, 2  ;;  %v3037_v16 = vadd.f32 %v3036_v11, %v2993_v5 }
 0x4e7   :  { %v3134_v0 = vrot.slane %v8871_v3, %v8924_v58  ;;  %v3183_v5 = vrot.slane %v8873_v4, %v8924_v58  ;;  %v3187_v11 = vrot.slane %v8873_v4, %v3137_v62 }
 0x4e8   :  { %v2970_v12 = vrot.slane %v2969_v13, 1  ;;  %v3033_v24 = vadd.f32 %v3032_v14, %v3031_v9  ;;  %v2975_v18 = vadd.f32 %v2974_v15, %v2973_v10  ;;  %v3038_v27 = vrot.slane %v3037_v16, 2 }
 0x4ea   :  { %v2971_v29 = vadd.f32 %v2970_v12, %v2969_v13  ;;  %v3034_v32 = vrot.slane %v3033_v24, 1  ;;  %v2976_v53 = vrot.slane %v2975_v18, 1  ;;  %v3039_v25 = vadd.f32 %v3038_v27, %v3037_v16 }
 0x4ec   :  { %v2984_v52 = vmul.f32 0.125, %v2971_v29  ;;  %v3035_v36 = vadd.f32 %v3034_v32, %v3033_v24  ;;  %v2977_v44 = vadd.f32 %v2976_v53, %v2975_v18  ;;  %v3040_v60 = vrot.slane %v3039_v25, 1 }
 0x4ee   :  { %v3048_v54 = vmul.f32 0.125, %v3035_v36  ;;  %v3056_v38 = vmul.f32 %v2984_v52, %v2984_v52  ;;  %v2985_v39 = vmul.f32 0.125, %v2977_v44  ;;  %v3041_v40 = vadd.f32 %v3040_v60, %v3039_v25 }
 0x4ef   :  { %v3080_v63 = vsub.f32 %v2924_v50, %v2984_v52 }
 0x4f0   :  { %v3064_v42 = vsub.f32 %v3048_v54, %v3056_v38  ;;  %v3057_v43 = vmul.f32 %v2985_v39, %v2985_v39  ;;  %v3049_v45 = vmul.f32 0.125, %v3041_v40  ;;  %v3081_v6 = vsub.f32 %v2926_v61, %v2985_v39 }
 0x4f2   :  { %v3072_v49 = vmax.f32 %v3064_v42, 0.0  ;;  %v3065_v37 = vsub.f32 %v3049_v45, %v3057_v43 }
 0x4f4   :  { %v3088_v55 = vadd.f32 1e-05, %v3072_v49  ;;  %v3073_v56 = vmax.f32 %v3065_v37, 0.0 }
 0x4f6   :  { %7853 = vrsqrt.f32 %v3088_v55  ;;  %v3089_v57 = vadd.f32 1e-05, %v3073_v56 }
 0x4f8   :  { %7855 = vrsqrt.f32 %v3089_v57 }
 0x503   :  { %v7854_v1 = vpop.eup %7853 }
 0x504   :  { %v3104_v2 = vmul.f32 %v7854_v1, %v3080_v63 }
 0x505   :  { %v7856_v8 = vpop.eup %7855 }
 0x506   :  { %v3153_v9 = vmul.f32 %v3134_v0, %v3104_v2  ;;  %v3105_v10 = vmul.f32 %v7856_v8, %v3081_v6 }
 0x508   :  { %v8933_v13 = vadd.f32 %v3183_v5, %v3153_v9  ;;  %v3154_v30 = vmul.f32 %v3138_v7, %v3105_v10 }
 0x50a   :  { %v3210_v50 = vmax.f32 %v8933_v13, 0.0  ;;  %v8936_v14 = vadd.f32 %v3187_v11, %v3154_v30 }
 0x50c   :  { %v3211_v15 = vmax.f32 %v8936_v14, 0.0 }
 0x50d   :  { %8693 = dma.done.wait [#allocation4 + $0x1], 57344 }
 0x50e   :  { %8694 = vsyncadd [#allocation4 + $0x1], 4294909952  ;;  %v8942_v3 = vpack.c.bf16 %v3205_v23, %v3205_v23  ;;  %v8947_v4 = vpack.c.bf16 %v3207_v41, %v3207_v41  ;;  %v7857_v61 = vld [vmem:[#allocation3 + $0x18c] ss:$28 sps:$4 sm:$0xff]   ;;  %v7863_v18 = vld [vmem:[#allocation3 + $0x154] ss:$28 sps:$4 sm:$0xff]   ;;  %v8964_v19 = vpack.c.bf16 %v3209_v48, %v3209_v48 }
 0x50f   :  { %v7859_v16 = vld [vmem:[#allocation3 + $0x50c] ss:$28 sps:$4 sm:$0xff]   ;;  %6080 = vmatprep.subr.bf16.mxu0 %v7857_v61  ;;  %v7865_v22 = vld [vmem:[#allocation3 + $0x4d4] ss:$28 sps:$4 sm:$0xff]   ;;  %v7869_v41 = vld [vmem:[#allocation3 + $0x11c] ss:$28 sps:$4 sm:$0xff]  }
 0x510   :  { %6112 = vmatprep.mubr.bf16.mxu0 %v8942_v3  ;;  %6153 = vmatprep.mubr.bf16.mxu1 %v8947_v4  ;;  %v7861_v12 = vld [vmem:[#allocation3 + $0x188] ss:$28 sps:$4 sm:$0xff]   ;;  %v7867_v23 = vld [vmem:[#allocation3 + $0x150] ss:$28 sps:$4 sm:$0xff]   ;;  %v7871_v27 = vld [vmem:[#allocation3 + $0x49c] ss:$28 sps:$4 sm:$0xff]  }
 0x511   :  { %v7862_v24 = vld [vmem:[#allocation3 + $0x508] ss:$28 sps:$4 sm:$0xff]   ;;  %6121 = vmatprep.subr.bf16.mxu1 %v7859_v16  ;;  %6081 = vmatpush1.bf16.msra.mxu0 %v7861_v12  ;;  %v7868_v28 = vld [vmem:[#allocation3 + $0x4d0] ss:$28 sps:$4 sm:$0xff]   ;;  %v7873_v29 = vld [vmem:[#allocation3 + $0x118] ss:$28 sps:$4 sm:$0xff]  }
 0x512   :  { %6122 = vmatpush1.bf16.msra.mxu1 %v7862_v24  ;;  %6082 = vmatprep.subr.bf16.mxu0 %v7863_v18  ;;  %v7874_v32 = vld [vmem:[#allocation3 + $0x498] ss:$28 sps:$4 sm:$0xff]   ;;  %v7875_v53 = vld [vmem:[#allocation3 + $0xe4] ss:$28 sps:$4 sm:$0xff]   ;;  %v7881_v44 = vld [vmem:[#allocation3 + $0xac] ss:$28 sps:$4 sm:$0xff]  }
 0x513   :  { %6123 = vmatprep.subr.bf16.mxu1 %v7865_v22  ;;  %v7877_v25 = vld [vmem:[#allocation3 + $0x464] ss:$28 sps:$4 sm:$0xff]   ;;  %v7883_v60 = vld [vmem:[#allocation3 + $0x42c] ss:$28 sps:$4 sm:$0xff]   ;;  %v7887_v39 = vld [vmem:[#allocation3 + $0x74] ss:$28 sps:$4 sm:$0xff]  }
 0x514   :  { %v7879_v52 = vld [vmem:[#allocation3 + $0xe0] ss:$28 sps:$4 sm:$0xff]   ;;  %v7885_v54 = vld [vmem:[#allocation3 + $0xa8] ss:$28 sps:$4 sm:$0xff]   ;;  %v7889_v40 = vld [vmem:[#allocation3 + $0x3f4] ss:$28 sps:$4 sm:$0xff]  }
 0x515   :  { %6083 = vmatpush1.bf16.msra.mxu0 %v7867_v23  ;;  %v7880_v36 = vld [vmem:[#allocation3 + $0x460] ss:$28 sps:$4 sm:$0xff]   ;;  %v7886_v38 = vld [vmem:[#allocation3 + $0x428] ss:$28 sps:$4 sm:$0xff]   ;;  %v7891_v42 = vld [vmem:[#allocation3 + $0x70] ss:$28 sps:$4 sm:$0xff]  }
 0x516   :  { %6124 = vmatpush1.bf16.msra.mxu1 %v7868_v28  ;;  %6084 = vmatprep.subr.bf16.mxu0 %v7869_v41  ;;  %v7892_v43 = vld [vmem:[#allocation3 + $0x3f0] ss:$28 sps:$4 sm:$0xff]   ;;  %v7893_v45 = vld [vmem:[#allocation3 + $0x3c] ss:$28 sps:$4 sm:$0xff]   ;;  %v7899_v56 = vld [vmem:[#allocation3 + $0x4] ss:$28 sps:$4 sm:$0xff]  }
 0x517   :  { %6125 = vmatprep.subr.bf16.mxu1 %v7871_v27  ;;  %v7895_v49 = vld [vmem:[#allocation3 + $0x3bc] ss:$28 sps:$4 sm:$0xff]   ;;  %v7901_v57 = vld [vmem:[#allocation3 + $0x384] ss:$28 sps:$4 sm:$0xff]   ;;  %v7905_v0 = vld [vmem:[#allocation3 + $0x34c] ss:$28 sps:$4 sm:$0xff]  }
 0x518   :  { %v7897_v37 = vld [vmem:[#allocation3 + $0x38] ss:$28 sps:$4 sm:$0xff]   ;;  %v7903_v62 = vld [vmem:[#allocation3] ss:$28 sps:$4 sm:$0xff]   ;;  %v7907_v1 = vld [vmem:[#allocation3 + $0x6cc] ss:$28 sps:$4 sm:$0xff]  }
 0x519   :  { %6085 = vmatpush1.bf16.msra.mxu0 %v7873_v29  ;;  %v7898_v55 = vld [vmem:[#allocation3 + $0x3b8] ss:$28 sps:$4 sm:$0xff]   ;;  %v7904_v63 = vld [vmem:[#allocation3 + $0x380] ss:$28 sps:$4 sm:$0xff]   ;;  %v7909_v2 = vld [vmem:[#allocation3 + $0x348] ss:$28 sps:$4 sm:$0xff]  }
 0x51a   :  { %6126 = vmatpush1.bf16.msra.mxu1 %v7874_v32  ;;  %6086 = vmatprep.subr.bf16.mxu0 %v7875_v53  ;;  %v7910_v5 = vld [vmem:[#allocation3 + $0x6c8] ss:$28 sps:$4 sm:$0xff]   ;;  %v7911_v6 = vld [vmem:[#allocation3 + $0x314] ss:$28 sps:$4 sm:$0xff]   ;;  %v7917_v10 = vld [vmem:[#allocation3 + $0x2dc] ss:$28 sps:$4 sm:$0xff]  }
 0x51b   :  { %6127 = vmatprep.subr.bf16.mxu1 %v7877_v25  ;;  %v7913_v7 = vld [vmem:[#allocation3 + $0x694] ss:$28 sps:$4 sm:$0xff]   ;;  %v7919_v11 = vld [vmem:[#allocation3 + $0x65c] ss:$28 sps:$4 sm:$0xff]   ;;  %v7923_v16 = vld [vmem:[#allocation3 + $0x2a4] ss:$28 sps:$4 sm:$0xff]  }
 0x51c   :  { %v7915_v8 = vld [vmem:[#allocation3 + $0x310] ss:$28 sps:$4 sm:$0xff]   ;;  %v7921_v30 = vld [vmem:[#allocation3 + $0x2d8] ss:$28 sps:$4 sm:$0xff]   ;;  %v7925_v12 = vld [vmem:[#allocation3 + $0x624] ss:$28 sps:$4 sm:$0xff]  }
 0x51d   :  { %6087 = vmatpush1.bf16.msra.mxu0 %v7879_v52  ;;  %v7916_v9 = vld [vmem:[#allocation3 + $0x690] ss:$28 sps:$4 sm:$0xff]   ;;  %v7922_v61 = vld [vmem:[#allocation3 + $0x658] ss:$28 sps:$4 sm:$0xff]   ;;  %v7927_v24 = vld [vmem:[#allocation3 + $0x2a0] ss:$28 sps:$4 sm:$0xff]  }
 0x51e   :  { %6128 = vmatpush1.bf16.msra.mxu1 %v7880_v36  ;;  %6088 = vmatprep.subr.bf16.mxu0 %v7881_v44  ;;  %v7928_v18 = vld [vmem:[#allocation3 + $0x620] ss:$28 sps:$4 sm:$0xff]   ;;  %v7929_v22 = vld [vmem:[#allocation3 + $0x26c] ss:$28 sps:$4 sm:$0xff]   ;;  %v7935_v27 = vld [vmem:[#allocation3 + $0x234] ss:$28 sps:$4 sm:$0xff]  }
 0x51f   :  { %6129 = vmatprep.subr.bf16.mxu1 %v7883_v60  ;;  %v7931_v23 = vld [vmem:[#allocation3 + $0x5ec] ss:$28 sps:$4 sm:$0xff]   ;;  %v7937_v29 = vld [vmem:[#allocation3 + $0x5b4] ss:$28 sps:$4 sm:$0xff]   ;;  %v7941_v25 = vld [vmem:[#allocation3 + $0x1fc] ss:$28 sps:$4 sm:$0xff]  }
 0x520   :  { %v7933_v28 = vld [vmem:[#allocation3 + $0x268] ss:$28 sps:$4 sm:$0xff]   ;;  %v7939_v32 = vld [vmem:[#allocation3 + $0x230] ss:$28 sps:$4 sm:$0xff]   ;;  %v7943_v52 = vld [vmem:[#allocation3 + $0x57c] ss:$28 sps:$4 sm:$0xff]  }
 0x521   :  { %6089 = vmatpush1.bf16.msra.mxu0 %v7885_v54  ;;  %v7934_v41 = vld [vmem:[#allocation3 + $0x5e8] ss:$28 sps:$4 sm:$0xff]   ;;  %v7940_v53 = vld [vmem:[#allocation3 + $0x5b0] ss:$28 sps:$4 sm:$0xff]   ;;  %v7945_v36 = vld [vmem:[#allocation3 + $0x1f8] ss:$28 sps:$4 sm:$0xff]  }
 0x522   :  { %6130 = vmatpush1.bf16.msra.mxu1 %v7886_v38  ;;  %6090 = vmatprep.subr.bf16.mxu0 %v7887_v39  ;;  %v7946_v44 = vld [vmem:[#allocation3 + $0x578] ss:$28 sps:$4 sm:$0xff]   ;;  %v7947_v60 = vld [vmem:[#allocation3 + $0x1c4] ss:$28 sps:$4 sm:$0xff]   ;;  %v7959_v33 = vld [vmem:[#allocation3 + $0x850] ss:$28 sps:$4 sm:$0xff]  }
 0x523   :  { %6131 = vmatprep.subr.bf16.mxu1 %v7889_v40  ;;  %v7949_v54 = vld [vmem:[#allocation3 + $0x544] ss:$28 sps:$4 sm:$0xff]   ;;  %v7955_v40 = vld [vmem:[#allocation3 + $0x88c] ss:$28 sps:$4 sm:$0xff]   ;;  %v7970_v47 = vld [vmem:[#allocation3 + $0xb9c] ss:$28 sps:$4 sm:$0xff]  }
 0x524   :  { %v7951_v38 = vld [vmem:[#allocation3 + $0x1c0] ss:$28 sps:$4 sm:$0xff]   ;;  %v7965_v48 = vld [vmem:[#allocation3 + $0x818] ss:$28 sps:$4 sm:$0xff]   ;;  %s8713_s4 = smov [#allocation14]  }
 0x525   :  { %6091 = vmatpush1.bf16.msra.mxu0 %v7891_v42  ;;  %v7952_v39 = vld [vmem:[#allocation3 + $0x540] ss:$28 sps:$4 sm:$0xff]   ;;  %v7958_v42 = vld [vmem:[#allocation3 + $0xc0c] ss:$28 sps:$4 sm:$0xff]   ;;  %v7968_v14 = vld [vmem:[#allocation3 + $0xb98] ss:$28 sps:$4 sm:$0xff]  }
 0x526   :  { %6132 = vmatpush1.bf16.msra.mxu1 %v7892_v43  ;;  %6092 = vmatprep.subr.bf16.mxu0 %v7893_v45  ;;  %v8954_v43 = vpack.c.bf16 %v3204_v20, %v3204_v20  ;;  %v8959_v45 = vpack.c.bf16 %v3206_v35, %v3206_v35  ;;  %v8969_v20 = vpack.c.bf16 %v3211_v15, %v3211_v15  ;;  %v7962_v35 = vld [vmem:[#allocation3 + $0xbd0] ss:$28 sps:$4 sm:$0xff]   ;;  %v7973_v15 = vld [vmem:[#allocation3 + $0x7e4] ss:$28 sps:$4 sm:$0xff]   ;;  %v8055_v59 = vld [vmem:[#allocation3 + $0x158] ss:$28 sps:$4 sm:$0xff]  }
 0x527   :  { %6133 = vmatprep.subr.bf16.mxu1 %v7895_v49  ;;  %v7953_v49 = vld [vmem:[#allocation3 + $0x888] ss:$28 sps:$4 sm:$0xff]   ;;  %s6780_s5 = sshll.u32 %s8713_s4, 4  ;;  %s6781_s5 = int_to_ptr.vmem [resolvable:$true] %s6780_s5 }
 0x528   :  { %v8063_v13 = vld [vmem:[#allocation3 + $0x124] ss:$28 sps:$4 sm:$0xff]   ;;  %s8665_s14 = scalar_lea.vmem %s6781_s5, 896  ;;  %p8670_p8 = scmp.lt.s32.totalorder %s6781_s5, %s6781_s5 }
 0x529   :  { %6093 = vmatpush1.bf16.msra.mxu0 %v7897_v37  ;;  %v7956_v37 = vld [vmem:[#allocation3 + $0xc08] ss:$28 sps:$4 sm:$0xff]   ;;  %p8666_p7 = scmp.ne.s32.totalorder %s6781_s5, %s8665_s14  ;;  %p8671_p9 = scmp.lt.s32.totalorder %s8665_s14, %s8665_s14 }
 0x52a   :  { %6134 = vmatpush1.bf16.msra.mxu1 %v7898_v55  ;;  %6094 = vmatprep.subr.bf16.mxu0 %v7899_v56  ;;  %v7961_v55 = vld [vmem:[#allocation3 + $0x854] ss:$28 sps:$4 sm:$0xff]  }
 0x52b   :  { %6135 = vmatprep.subr.bf16.mxu1 %v7901_v57  ;;  %v7964_v56 = vld [vmem:[#allocation3 + $0xbd4] ss:$28 sps:$4 sm:$0xff]   ;;  %v7967_v57 = vld [vmem:[#allocation3 + $0x81c] ss:$28 sps:$4 sm:$0xff]   ;;  %p8672_p10 = por %p8671_p9, %p8670_p8 }
 0x52d   :  { %6095 = vmatpush1.bf16.msra.mxu0 %v7903_v62  ;;  %v7976_v62 = vld [vmem:[#allocation3 + $0xb64] ss:$28 sps:$4 sm:$0xff]   ;;  %p8673_p11 = pnand %p8672_p10, %p8666_p7 }
 0x52e   :  { %6136 = vmatpush1.bf16.msra.mxu1 %v7904_v63  ;;  %6096 = vmatprep.subr.bf16.mxu0 %v7905_v0  ;;  %v7971_v63 = vld [vmem:[#allocation3 + $0x7e0] ss:$28 sps:$4 sm:$0xff]  }
 0x52f   :  { %6137 = vmatprep.subr.bf16.mxu1 %v7907_v1  ;;  %v7974_v0 = vld [vmem:[#allocation3 + $0xb60] ss:$28 sps:$4 sm:$0xff]   ;;  %v7979_v1 = vld [vmem:[#allocation3 + $0x7ac] ss:$28 sps:$4 sm:$0xff]  }
 0x531   :  { %6097 = vmatpush2.bf16.msra.mxu0 %v7909_v2  ;;  %v7982_v2 = vld [vmem:[#allocation3 + $0xb2c] ss:$28 sps:$4 sm:$0xff]  }
 0x532   :  { %6138 = vmatpush2.bf16.msra.mxu1 %v7910_v5  ;;  %6098 = vmatprep.subr.bf16.mxu0 %v7911_v6  ;;  %v7977_v5 = vld [vmem:[#allocation3 + $0x7a8] ss:$28 sps:$4 sm:$0xff]  }
 0x533   :  { %6139 = vmatprep.subr.bf16.mxu1 %v7913_v7  ;;  %v7980_v6 = vld [vmem:[#allocation3 + $0xb28] ss:$28 sps:$4 sm:$0xff]   ;;  %v7985_v7 = vld [vmem:[#allocation3 + $0x774] ss:$28 sps:$4 sm:$0xff]  }
 0x535   :  { %6099 = vmatpush2.bf16.msra.mxu0 %v7915_v8  ;;  %v7988_v8 = vld [vmem:[#allocation3 + $0xaf4] ss:$28 sps:$4 sm:$0xff]  }
 0x536   :  { %6140 = vmatpush2.bf16.msra.mxu1 %v7916_v9  ;;  %6100 = vmatprep.subr.bf16.mxu0 %v7917_v10  ;;  %v7983_v9 = vld [vmem:[#allocation3 + $0x770] ss:$28 sps:$4 sm:$0xff]  }
 0x537   :  { %6141 = vmatprep.subr.bf16.mxu1 %v7919_v11  ;;  %v7986_v10 = vld [vmem:[#allocation3 + $0xaf0] ss:$28 sps:$4 sm:$0xff]   ;;  %v7991_v11 = vld [vmem:[#allocation3 + $0x73c] ss:$28 sps:$4 sm:$0xff]  }
 0x539   :  { %6101 = vmatpush2.bf16.msra.mxu0 %v7921_v30  ;;  %v7994_v30 = vld [vmem:[#allocation3 + $0xabc] ss:$28 sps:$4 sm:$0xff]  }
 0x53a   :  { %6142 = vmatpush2.bf16.msra.mxu1 %v7922_v61  ;;  %6102 = vmatprep.subr.bf16.mxu0 %v7923_v16  ;;  %v7989_v61 = vld [vmem:[#allocation3 + $0x738] ss:$28 sps:$4 sm:$0xff]  }
 0x53b   :  { %6143 = vmatprep.subr.bf16.mxu1 %v7925_v12  ;;  %v7992_v16 = vld [vmem:[#allocation3 + $0xab8] ss:$28 sps:$4 sm:$0xff]   ;;  %v7997_v12 = vld [vmem:[#allocation3 + $0x704] ss:$28 sps:$4 sm:$0xff]  }
 0x53d   :  { %6103 = vmatpush2.bf16.msra.mxu0 %v7927_v24  ;;  %v8000_v24 = vld [vmem:[#allocation3 + $0xa84] ss:$28 sps:$4 sm:$0xff]  }
 0x53e   :  { %6144 = vmatpush2.bf16.msra.mxu1 %v7928_v18  ;;  %6104 = vmatprep.subr.bf16.mxu0 %v7929_v22  ;;  %v7995_v18 = vld [vmem:[#allocation3 + $0x700] ss:$28 sps:$4 sm:$0xff]  }
 0x53f   :  { %6145 = vmatprep.subr.bf16.mxu1 %v7931_v23  ;;  %v7998_v22 = vld [vmem:[#allocation3 + $0xa80] ss:$28 sps:$4 sm:$0xff]   ;;  %v8003_v23 = vld [vmem:[#allocation3 + $0xa4c] ss:$28 sps:$4 sm:$0xff]  }
 0x541   :  { %6105 = vmatpush2.bf16.msra.mxu0 %v7933_v28  ;;  %v8006_v28 = vld [vmem:[#allocation3 + $0xdcc] ss:$28 sps:$4 sm:$0xff]  }
 0x542   :  { %6146 = vmatpush2.bf16.msra.mxu1 %v7934_v41  ;;  %6106 = vmatprep.subr.bf16.mxu0 %v7935_v27  ;;  %v8001_v41 = vld [vmem:[#allocation3 + $0xa48] ss:$28 sps:$4 sm:$0xff]  }
 0x543   :  { %6147 = vmatprep.subr.bf16.mxu1 %v7937_v29  ;;  %v8004_v27 = vld [vmem:[#allocation3 + $0xdc8] ss:$28 sps:$4 sm:$0xff]   ;;  %v8009_v29 = vld [vmem:[#allocation3 + $0xa14] ss:$28 sps:$4 sm:$0xff]  }
 0x545   :  { %6107 = vmatpush2.bf16.msra.mxu0 %v7939_v32  ;;  %v8012_v32 = vld [vmem:[#allocation3 + $0xd94] ss:$28 sps:$4 sm:$0xff]  }
 0x546   :  { %6148 = vmatpush2.bf16.msra.mxu1 %v7940_v53  ;;  %6108 = vmatprep.subr.bf16.mxu0 %v7941_v25  ;;  %v8007_v53 = vld [vmem:[#allocation3 + $0xa10] ss:$28 sps:$4 sm:$0xff]  }
 0x547   :  { %6149 = vmatprep.subr.bf16.mxu1 %v7943_v52  ;;  %v8010_v25 = vld [vmem:[#allocation3 + $0xd90] ss:$28 sps:$4 sm:$0xff]   ;;  %v8015_v52 = vld [vmem:[#allocation3 + $0x9dc] ss:$28 sps:$4 sm:$0xff]  }
 0x549   :  { %6109 = vmatpush2.bf16.msra.mxu0 %v7945_v36  ;;  %v8018_v36 = vld [vmem:[#allocation3 + $0xd5c] ss:$28 sps:$4 sm:$0xff]  }
 0x54a   :  { %6150 = vmatpush2.bf16.msra.mxu1 %v7946_v44  ;;  %6110 = vmatprep.subr.bf16.mxu0 %v7947_v60  ;;  %v8013_v44 = vld [vmem:[#allocation3 + $0x9d8] ss:$28 sps:$4 sm:$0xff]  }
 0x54b   :  { %6151 = vmatprep.subr.bf16.mxu1 %v7949_v54  ;;  %v8016_v60 = vld [vmem:[#allocation3 + $0xd58] ss:$28 sps:$4 sm:$0xff]   ;;  %v8021_v54 = vld [vmem:[#allocation3 + $0x9a4] ss:$28 sps:$4 sm:$0xff]  }
 0x54d   :  { %6111 = vmatpush2.bf16.msra.mxu0 %v7951_v38  ;;  %v8024_v38 = vld [vmem:[#allocation3 + $0xd24] ss:$28 sps:$4 sm:$0xff]  }
 0x54e   :  { %6152 = vmatpush2.bf16.msra.mxu1 %v7952_v39  ;;  %6162 = vmatprep.subr.bf16.mxu0 %v7955_v40  ;;  %v8019_v39 = vld [vmem:[#allocation3 + $0x9a0] ss:$28 sps:$4 sm:$0xff]  }
 0x54f   :  { %6203 = vmatprep.subr.bf16.mxu1 %v7958_v42  ;;  %v8022_v40 = vld [vmem:[#allocation3 + $0xd20] ss:$28 sps:$4 sm:$0xff]   ;;  %v8027_v42 = vld [vmem:[#allocation3 + $0x96c] ss:$28 sps:$4 sm:$0xff]  }
 0x550   :  { %6113 = vmatmul.mubr.bf16.vlgmr.msra.gmra.mxu0 %v8954_v43 }
 0x551   :  { %6154 = vmatmul.mubr.bf16.vlgmr.msra.gmra.mxu1 %v8959_v45  ;;  %6163 = vmatpush1.bf16.msra.mxu0 %v7953_v49  ;;  %v8030_v49 = vld [vmem:[#allocation3 + $0xcec] ss:$28 sps:$4 sm:$0xff]  }
 0x552   :  { %6204 = vmatpush1.bf16.msra.mxu1 %v7956_v37  ;;  %6164 = vmatprep.subr.bf16.mxu0 %v7961_v55  ;;  %v8025_v37 = vld [vmem:[#allocation3 + $0x968] ss:$28 sps:$4 sm:$0xff]  }
 0x553   :  { %6205 = vmatprep.subr.bf16.mxu1 %v7964_v56  ;;  %6194 = vmatprep.mubr.bf16.mxu0 %v8964_v19  ;;  %v8028_v55 = vld [vmem:[#allocation3 + $0xce8] ss:$28 sps:$4 sm:$0xff]   ;;  %v8033_v56 = vld [vmem:[#allocation3 + $0x934] ss:$28 sps:$4 sm:$0xff]  }
 0x554   :  { %6235 = vmatprep.mubr.bf16.mxu1 %v8969_v20 }
 0x555   :  { %6165 = vmatpush1.bf16.msra.mxu0 %v7959_v33  ;;  %v8036_v33 = vld [vmem:[#allocation3 + $0xcb4] ss:$28 sps:$4 sm:$0xff]  }
 0x556   :  { %6206 = vmatpush1.bf16.msra.mxu1 %v7962_v35  ;;  %6166 = vmatprep.subr.bf16.mxu0 %v7967_v57  ;;  %v8031_v35 = vld [vmem:[#allocation3 + $0x930] ss:$28 sps:$4 sm:$0xff]  }
 0x557   :  { %6207 = vmatprep.subr.bf16.mxu1 %v7970_v47  ;;  %v8034_v57 = vld [vmem:[#allocation3 + $0xcb0] ss:$28 sps:$4 sm:$0xff]   ;;  %v8039_v47 = vld [vmem:[#allocation3 + $0x8fc] ss:$28 sps:$4 sm:$0xff]  }
 0x559   :  { %6167 = vmatpush1.bf16.msra.mxu0 %v7965_v48  ;;  %v8042_v48 = vld [vmem:[#allocation3 + $0xc7c] ss:$28 sps:$4 sm:$0xff]  }
 0x55a   :  { %6208 = vmatpush1.bf16.msra.mxu1 %v7968_v14  ;;  %6168 = vmatprep.subr.bf16.mxu0 %v7973_v15  ;;  %v8037_v14 = vld [vmem:[#allocation3 + $0x8f8] ss:$28 sps:$4 sm:$0xff]  }
 0x55b   :  { %6209 = vmatprep.subr.bf16.mxu1 %v7976_v62  ;;  %v8040_v15 = vld [vmem:[#allocation3 + $0xc78] ss:$28 sps:$4 sm:$0xff]   ;;  %v8045_v62 = vld [vmem:[#allocation3 + $0x8c4] ss:$28 sps:$4 sm:$0xff]  }
 0x55d   :  { %6169 = vmatpush1.bf16.msra.mxu0 %v7971_v63  ;;  %v8048_v63 = vld [vmem:[#allocation3 + $0xc44] ss:$28 sps:$4 sm:$0xff]  }
 0x55e   :  { %6210 = vmatpush1.bf16.msra.mxu1 %v7974_v0  ;;  %6170 = vmatprep.subr.bf16.mxu0 %v7979_v1  ;;  %v8043_v0 = vld [vmem:[#allocation3 + $0x8c0] ss:$28 sps:$4 sm:$0xff]  }
 0x55f   :  { %6211 = vmatprep.subr.bf16.mxu1 %v7982_v2  ;;  %v8046_v1 = vld [vmem:[#allocation3 + $0xc40] ss:$28 sps:$4 sm:$0xff]   ;;  %v8051_v2 = vld [vmem:[#allocation3 + $0x194] ss:$28 sps:$4 sm:$0xff]  }
 0x561   :  { %6171 = vmatpush1.bf16.msra.mxu0 %v7977_v5  ;;  %v8054_v5 = vld [vmem:[#allocation3 + $0x514] ss:$28 sps:$4 sm:$0xff]  }
 0x562   :  { %6212 = vmatpush1.bf16.msra.mxu1 %v7980_v6  ;;  %6172 = vmatprep.subr.bf16.mxu0 %v7985_v7  ;;  %v8978_v6 = vpack.c.bf16 %v3208_v46, %v3208_v46  ;;  %v8983_v7 = vpack.c.bf16 %v3210_v50, %v3210_v50  ;;  %v8058_v46 = vld [vmem:[#allocation3 + $0x4d8] ss:$28 sps:$4 sm:$0xff]   ;;  %v8066_v50 = vld [vmem:[#allocation3 + $0x4a4] ss:$28 sps:$4 sm:$0xff]  }
 0x563   :  { %6213 = vmatprep.subr.bf16.mxu1 %v7988_v8  ;;  %v8049_v8 = vld [vmem:[#allocation3 + $0x190] ss:$28 sps:$4 sm:$0xff]  }
 0x565   :  { %6173 = vmatpush1.bf16.msra.mxu0 %v7983_v9  ;;  %v8052_v9 = vld [vmem:[#allocation3 + $0x510] ss:$28 sps:$4 sm:$0xff]  }
 0x566   :  { %6214 = vmatpush1.bf16.msra.mxu1 %v7986_v10  ;;  %6174 = vmatprep.subr.bf16.mxu0 %v7991_v11  ;;  %v8057_v10 = vld [vmem:[#allocation3 + $0x15c] ss:$28 sps:$4 sm:$0xff]  }
 0x567   :  { %6215 = vmatprep.subr.bf16.mxu1 %v7994_v30  ;;  %v8060_v11 = vld [vmem:[#allocation3 + $0x4dc] ss:$28 sps:$4 sm:$0xff]  }
 0x568   :  { %v8061_v30 = vld [vmem:[#allocation3 + $0x120] ss:$28 sps:$4 sm:$0xff]  }
 0x569   :  { %6175 = vmatpush1.bf16.msra.mxu0 %v7989_v61  ;;  %v8064_v61 = vld [vmem:[#allocation3 + $0x4a0] ss:$28 sps:$4 sm:$0xff]  }
 0x56a   :  { %6216 = vmatpush1.bf16.msra.mxu1 %v7992_v16  ;;  %6176 = vmatprep.subr.bf16.mxu0 %v7997_v12  ;;  %v8069_v16 = vld [vmem:[#allocation3 + $0xec] ss:$28 sps:$4 sm:$0xff]  }
 0x56b   :  { %6217 = vmatprep.subr.bf16.mxu1 %v8000_v24  ;;  %v8072_v12 = vld [vmem:[#allocation3 + $0x46c] ss:$28 sps:$4 sm:$0xff]  }
 0x56c   :  { %v8067_v24 = vld [vmem:[#allocation3 + $0xe8] ss:$28 sps:$4 sm:$0xff]  }
 0x56d   :  { %6177 = vmatpush1.bf16.msra.mxu0 %v7995_v18  ;;  %v8070_v18 = vld [vmem:[#allocation3 + $0x468] ss:$28 sps:$4 sm:$0xff]  }
 0x56e   :  { %6218 = vmatpush1.bf16.msra.mxu1 %v7998_v22  ;;  %6178 = vmatprep.subr.bf16.mxu0 %v8003_v23  ;;  %v8075_v22 = vld [vmem:[#allocation3 + $0xb4] ss:$28 sps:$4 sm:$0xff]  }
 0x56f   :  { %6219 = vmatprep.subr.bf16.mxu1 %v8006_v28  ;;  %v8078_v23 = vld [vmem:[#allocation3 + $0x434] ss:$28 sps:$4 sm:$0xff]  }
 0x570   :  { %v8073_v28 = vld [vmem:[#allocation3 + $0xb0] ss:$28 sps:$4 sm:$0xff]  }
 0x571   :  { %6179 = vmatpush2.bf16.msra.mxu0 %v8001_v41  ;;  %v8076_v41 = vld [vmem:[#allocation3 + $0x430] ss:$28 sps:$4 sm:$0xff]  }
 0x572   :  { %6220 = vmatpush2.bf16.msra.mxu1 %v8004_v27  ;;  %6180 = vmatprep.subr.bf16.mxu0 %v8009_v29  ;;  %v8081_v27 = vld [vmem:[#allocation3 + $0x7c] ss:$28 sps:$4 sm:$0xff]  }
 0x573   :  { %6221 = vmatprep.subr.bf16.mxu1 %v8012_v32  ;;  %v8084_v29 = vld [vmem:[#allocation3 + $0x3fc] ss:$28 sps:$4 sm:$0xff]  }
 0x574   :  { %v8079_v32 = vld [vmem:[#allocation3 + $0x78] ss:$28 sps:$4 sm:$0xff]  }
 0x575   :  { %6181 = vmatpush2.bf16.msra.mxu0 %v8007_v53  ;;  %v8082_v53 = vld [vmem:[#allocation3 + $0x3f8] ss:$28 sps:$4 sm:$0xff]  }
 0x576   :  { %6222 = vmatpush2.bf16.msra.mxu1 %v8010_v25  ;;  %6182 = vmatprep.subr.bf16.mxu0 %v8015_v52  ;;  %v8087_v25 = vld [vmem:[#allocation3 + $0x44] ss:$28 sps:$4 sm:$0xff]  }
 0x577   :  { %6223 = vmatprep.subr.bf16.mxu1 %v8018_v36  ;;  %v8090_v52 = vld [vmem:[#allocation3 + $0x3c4] ss:$28 sps:$4 sm:$0xff]  }
 0x578   :  { %v8085_v36 = vld [vmem:[#allocation3 + $0x40] ss:$28 sps:$4 sm:$0xff]  }
 0x579   :  { %6183 = vmatpush2.bf16.msra.mxu0 %v8013_v44  ;;  %v8088_v44 = vld [vmem:[#allocation3 + $0x3c0] ss:$28 sps:$4 sm:$0xff]  }
 0x57a   :  { %6224 = vmatpush2.bf16.msra.mxu1 %v8016_v60  ;;  %6184 = vmatprep.subr.bf16.mxu0 %v8021_v54  ;;  %v8093_v60 = vld [vmem:[#allocation3 + $0xc] ss:$28 sps:$4 sm:$0xff]  }
 0x57b   :  { %6225 = vmatprep.subr.bf16.mxu1 %v8024_v38  ;;  %v8096_v54 = vld [vmem:[#allocation3 + $0x38c] ss:$28 sps:$4 sm:$0xff]  }
 0x57c   :  { %v8091_v38 = vld [vmem:[#allocation3 + $0x8] ss:$28 sps:$4 sm:$0xff]  }
 0x57d   :  { %6185 = vmatpush2.bf16.msra.mxu0 %v8019_v39  ;;  %v8094_v39 = vld [vmem:[#allocation3 + $0x388] ss:$28 sps:$4 sm:$0xff]  }
 0x57e   :  { %6226 = vmatpush2.bf16.msra.mxu1 %v8022_v40  ;;  %6186 = vmatprep.subr.bf16.mxu0 %v8027_v42  ;;  %v8099_v40 = vld [vmem:[#allocation3 + $0x354] ss:$28 sps:$4 sm:$0xff]  }
 0x57f   :  { %6227 = vmatprep.subr.bf16.mxu1 %v8030_v49  ;;  %v8102_v42 = vld [vmem:[#allocation3 + $0x6d4] ss:$28 sps:$4 sm:$0xff]  }
 0x580   :  { %v8097_v49 = vld [vmem:[#allocation3 + $0x350] ss:$28 sps:$4 sm:$0xff]  }
 0x581   :  { %6187 = vmatpush2.bf16.msra.mxu0 %v8025_v37  ;;  %v8100_v37 = vld [vmem:[#allocation3 + $0x6d0] ss:$28 sps:$4 sm:$0xff]  }
 0x582   :  { %6228 = vmatpush2.bf16.msra.mxu1 %v8028_v55  ;;  %6188 = vmatprep.subr.bf16.mxu0 %v8033_v56  ;;  %v8105_v55 = vld [vmem:[#allocation3 + $0x31c] ss:$28 sps:$4 sm:$0xff]  }
 0x583   :  { %6229 = vmatprep.subr.bf16.mxu1 %v8036_v33  ;;  %v8108_v56 = vld [vmem:[#allocation3 + $0x69c] ss:$28 sps:$4 sm:$0xff]  }
 0x584   :  { %v8103_v33 = vld [vmem:[#allocation3 + $0x318] ss:$28 sps:$4 sm:$0xff]  }
 0x585   :  { %6189 = vmatpush2.bf16.msra.mxu0 %v8031_v35  ;;  %v8106_v35 = vld [vmem:[#allocation3 + $0x698] ss:$28 sps:$4 sm:$0xff]  }
 0x586   :  { %6230 = vmatpush2.bf16.msra.mxu1 %v8034_v57  ;;  %6190 = vmatprep.subr.bf16.mxu0 %v8039_v47  ;;  %v8111_v57 = vld [vmem:[#allocation3 + $0x2e4] ss:$28 sps:$4 sm:$0xff]  }
 0x587   :  { %6231 = vmatprep.subr.bf16.mxu1 %v8042_v48  ;;  %v8114_v47 = vld [vmem:[#allocation3 + $0x664] ss:$28 sps:$4 sm:$0xff]  }
 0x588   :  { %v8109_v48 = vld [vmem:[#allocation3 + $0x2e0] ss:$28 sps:$4 sm:$0xff]  }
 0x589   :  { %6191 = vmatpush2.bf16.msra.mxu0 %v8037_v14  ;;  %v8112_v14 = vld [vmem:[#allocation3 + $0x660] ss:$28 sps:$4 sm:$0xff]  }
 0x58a   :  { %6232 = vmatpush2.bf16.msra.mxu1 %v8040_v15  ;;  %6192 = vmatprep.subr.bf16.mxu0 %v8045_v62  ;;  %v8117_v15 = vld [vmem:[#allocation3 + $0x2ac] ss:$28 sps:$4 sm:$0xff]  }
 0x58b   :  { %6233 = vmatprep.subr.bf16.mxu1 %v8048_v63  ;;  %v8120_v62 = vld [vmem:[#allocation3 + $0x62c] ss:$28 sps:$4 sm:$0xff]  }
 0x58c   :  { %v8115_v63 = vld [vmem:[#allocation3 + $0x2a8] ss:$28 sps:$4 sm:$0xff]  }
 0x58d   :  { %6193 = vmatpush2.bf16.msra.mxu0 %v8043_v0  ;;  %v8118_v0 = vld [vmem:[#allocation3 + $0x628] ss:$28 sps:$4 sm:$0xff]  }
 0x58e   :  { %6234 = vmatpush2.bf16.msra.mxu1 %v8046_v1  ;;  %6244 = vmatprep.subr.bf16.mxu0 %v8051_v2  ;;  %v8123_v1 = vld [vmem:[#allocation3 + $0x274] ss:$28 sps:$4 sm:$0xff]  }
 0x58f   :  { %6285 = vmatprep.subr.bf16.mxu1 %v8054_v5  ;;  %v8126_v2 = vld [vmem:[#allocation3 + $0x5f4] ss:$28 sps:$4 sm:$0xff]  }
 0x590   :  { %6195 = vmatmul.mubr.bf16.vlgmr.msra.gmra.mxu0 %v8978_v6  ;;  %v8121_v5 = vld [vmem:[#allocation3 + $0x270] ss:$28 sps:$4 sm:$0xff]  }
 0x591   :  { %6236 = vmatmul.mubr.bf16.vlgmr.msra.gmra.mxu1 %v8983_v7  ;;  %6245 = vmatpush1.bf16.msra.mxu0 %v8049_v8  ;;  %v8124_v8 = vld [vmem:[#allocation3 + $0x5f0] ss:$28 sps:$4 sm:$0xff]  }
 0x592   :  { %6286 = vmatpush1.bf16.msra.mxu1 %v8052_v9  ;;  %6246 = vmatprep.subr.bf16.mxu0 %v8057_v10  ;;  %v8129_v9 = vld [vmem:[#allocation3 + $0x23c] ss:$28 sps:$4 sm:$0xff]  }
 0x593   :  { %6287 = vmatprep.subr.bf16.mxu1 %v8060_v11  ;;  %6276 = vmatprep.mubr.bf16.mxu0 %v8942_v3  ;;  %v8132_v10 = vld [vmem:[#allocation3 + $0x5bc] ss:$28 sps:$4 sm:$0xff]  }
 0x594   :  { %6317 = vmatprep.mubr.bf16.mxu1 %v8947_v4  ;;  %v8127_v11 = vld [vmem:[#allocation3 + $0x238] ss:$28 sps:$4 sm:$0xff]  }
 0x595   :  { %6247 = vmatpush1.bf16.msra.mxu0 %v8055_v59  ;;  %v8130_v59 = vld [vmem:[#allocation3 + $0x5b8] ss:$28 sps:$4 sm:$0xff]  }
 0x596   :  { %6288 = vmatpush1.bf16.msra.mxu1 %v8058_v46  ;;  %6248 = vmatprep.subr.bf16.mxu0 %v8063_v13  ;;  %v8135_v46 = vld [vmem:[#allocation3 + $0x204] ss:$28 sps:$4 sm:$0xff]  }
 0x597   :  { %6289 = vmatprep.subr.bf16.mxu1 %v8066_v50  ;;  %v8138_v13 = vld [vmem:[#allocation3 + $0x584] ss:$28 sps:$4 sm:$0xff]  }
 0x598   :  { %v8133_v50 = vld [vmem:[#allocation3 + $0x200] ss:$28 sps:$4 sm:$0xff]  }
 0x599   :  { %6249 = vmatpush1.bf16.msra.mxu0 %v8061_v30  ;;  %v8136_v30 = vld [vmem:[#allocation3 + $0x580] ss:$28 sps:$4 sm:$0xff]  }
 0x59a   :  { %6290 = vmatpush1.bf16.msra.mxu1 %v8064_v61  ;;  %6250 = vmatprep.subr.bf16.mxu0 %v8069_v16  ;;  %v8141_v61 = vld [vmem:[#allocation3 + $0x1cc] ss:$28 sps:$4 sm:$0xff]  }
 0x59b   :  { %6291 = vmatprep.subr.bf16.mxu1 %v8072_v12  ;;  %v8144_v16 = vld [vmem:[#allocation3 + $0x54c] ss:$28 sps:$4 sm:$0xff]  }
 0x59c   :  { %v8139_v12 = vld [vmem:[#allocation3 + $0x1c8] ss:$28 sps:$4 sm:$0xff]  }
 0x59d   :  { %6251 = vmatpush1.bf16.msra.mxu0 %v8067_v24  ;;  %v8142_v24 = vld [vmem:[#allocation3 + $0x548] ss:$28 sps:$4 sm:$0xff]  }
 0x59e   :  { %6292 = vmatpush1.bf16.msra.mxu1 %v8070_v18  ;;  %6252 = vmatprep.subr.bf16.mxu0 %v8075_v22  ;;  %v8147_v18 = vld [vmem:[#allocation3 + $0x894] ss:$28 sps:$4 sm:$0xff]  }
 0x59f   :  { %6293 = vmatprep.subr.bf16.mxu1 %v8078_v23  ;;  %v8150_v22 = vld [vmem:[#allocation3 + $0xc14] ss:$28 sps:$4 sm:$0xff]  }
 0x5a0   :  { %v8145_v23 = vld [vmem:[#allocation3 + $0x890] ss:$28 sps:$4 sm:$0xff]  }
 0x5a1   :  { %6253 = vmatpush1.bf16.msra.mxu0 %v8073_v28  ;;  %v8148_v28 = vld [vmem:[#allocation3 + $0xc10] ss:$28 sps:$4 sm:$0xff]  }
 0x5a2   :  { %6294 = vmatpush1.bf16.msra.mxu1 %v8076_v41  ;;  %6254 = vmatprep.subr.bf16.mxu0 %v8081_v27  ;;  %v8153_v41 = vld [vmem:[#allocation3 + $0x85c] ss:$28 sps:$4 sm:$0xff]  }
 0x5a3   :  { %6295 = vmatprep.subr.bf16.mxu1 %v8084_v29  ;;  %v8156_v27 = vld [vmem:[#allocation3 + $0xbdc] ss:$28 sps:$4 sm:$0xff]  }
 0x5a4   :  { %v8151_v29 = vld [vmem:[#allocation3 + $0x858] ss:$28 sps:$4 sm:$0xff]  }
 0x5a5   :  { %6255 = vmatpush1.bf16.msra.mxu0 %v8079_v32  ;;  %v8154_v32 = vld [vmem:[#allocation3 + $0xbd8] ss:$28 sps:$4 sm:$0xff]  }
 0x5a6   :  { %6296 = vmatpush1.bf16.msra.mxu1 %v8082_v53  ;;  %6256 = vmatprep.subr.bf16.mxu0 %v8087_v25  ;;  %v8159_v53 = vld [vmem:[#allocation3 + $0x824] ss:$28 sps:$4 sm:$0xff]  }
 0x5a7   :  { %6297 = vmatprep.subr.bf16.mxu1 %v8090_v52  ;;  %v8162_v25 = vld [vmem:[#allocation3 + $0xba4] ss:$28 sps:$4 sm:$0xff]  }
 0x5a8   :  { %v8157_v52 = vld [vmem:[#allocation3 + $0x820] ss:$28 sps:$4 sm:$0xff]  }
 0x5a9   :  { %6257 = vmatpush1.bf16.msra.mxu0 %v8085_v36  ;;  %v8160_v36 = vld [vmem:[#allocation3 + $0xba0] ss:$28 sps:$4 sm:$0xff]  }
 0x5aa   :  { %6298 = vmatpush1.bf16.msra.mxu1 %v8088_v44  ;;  %6258 = vmatprep.subr.bf16.mxu0 %v8093_v60  ;;  %v8165_v44 = vld [vmem:[#allocation3 + $0x7ec] ss:$28 sps:$4 sm:$0xff]  }
 0x5ab   :  { %6299 = vmatprep.subr.bf16.mxu1 %v8096_v54  ;;  %v8168_v60 = vld [vmem:[#allocation3 + $0xb6c] ss:$28 sps:$4 sm:$0xff]  }
 0x5ac   :  { %v8163_v54 = vld [vmem:[#allocation3 + $0x7e8] ss:$28 sps:$4 sm:$0xff]  }
 0x5ad   :  { %6259 = vmatpush1.bf16.msra.mxu0 %v8091_v38  ;;  %v8166_v38 = vld [vmem:[#allocation3 + $0xb68] ss:$28 sps:$4 sm:$0xff]  }
 0x5ae   :  { %6300 = vmatpush1.bf16.msra.mxu1 %v8094_v39  ;;  %6260 = vmatprep.subr.bf16.mxu0 %v8099_v40  ;;  %v8171_v39 = vld [vmem:[#allocation3 + $0x7b4] ss:$28 sps:$4 sm:$0xff]  }
 0x5af   :  { %6301 = vmatprep.subr.bf16.mxu1 %v8102_v42  ;;  %v8174_v40 = vld [vmem:[#allocation3 + $0xb34] ss:$28 sps:$4 sm:$0xff]  }
 0x5b0   :  { %v8169_v42 = vld [vmem:[#allocation3 + $0x7b0] ss:$28 sps:$4 sm:$0xff]  }
 0x5b1   :  { %6261 = vmatpush2.bf16.msra.mxu0 %v8097_v49  ;;  %v8172_v49 = vld [vmem:[#allocation3 + $0xb30] ss:$28 sps:$4 sm:$0xff]  }
 0x5b2   :  { %6302 = vmatpush2.bf16.msra.mxu1 %v8100_v37  ;;  %6262 = vmatprep.subr.bf16.mxu0 %v8105_v55  ;;  %v8177_v37 = vld [vmem:[#allocation3 + $0x77c] ss:$28 sps:$4 sm:$0xff]  }
 0x5b3   :  { %6303 = vmatprep.subr.bf16.mxu1 %v8108_v56  ;;  %v8180_v55 = vld [vmem:[#allocation3 + $0xafc] ss:$28 sps:$4 sm:$0xff]  }
 0x5b4   :  { %v8175_v56 = vld [vmem:[#allocation3 + $0x778] ss:$28 sps:$4 sm:$0xff]  }
 0x5b5   :  { %6263 = vmatpush2.bf16.msra.mxu0 %v8103_v33  ;;  %v8178_v33 = vld [vmem:[#allocation3 + $0xaf8] ss:$28 sps:$4 sm:$0xff]  }
 0x5b6   :  { %6304 = vmatpush2.bf16.msra.mxu1 %v8106_v35  ;;  %6264 = vmatprep.subr.bf16.mxu0 %v8111_v57  ;;  %v8183_v35 = vld [vmem:[#allocation3 + $0x744] ss:$28 sps:$4 sm:$0xff]  }
 0x5b7   :  { %6305 = vmatprep.subr.bf16.mxu1 %v8114_v47  ;;  %v8186_v57 = vld [vmem:[#allocation3 + $0xac4] ss:$28 sps:$4 sm:$0xff]  }
 0x5b8   :  { %v8181_v47 = vld [vmem:[#allocation3 + $0x740] ss:$28 sps:$4 sm:$0xff]  }
 0x5b9   :  { %6265 = vmatpush2.bf16.msra.mxu0 %v8109_v48  ;;  %v8184_v48 = vld [vmem:[#allocation3 + $0xac0] ss:$28 sps:$4 sm:$0xff]  }
 0x5ba   :  { %6306 = vmatpush2.bf16.msra.mxu1 %v8112_v14  ;;  %6266 = vmatprep.subr.bf16.mxu0 %v8117_v15  ;;  %v8189_v14 = vld [vmem:[#allocation3 + $0x70c] ss:$28 sps:$4 sm:$0xff]  }
 0x5bb   :  { %6307 = vmatprep.subr.bf16.mxu1 %v8120_v62  ;;  %v8192_v15 = vld [vmem:[#allocation3 + $0xa8c] ss:$28 sps:$4 sm:$0xff]  }
 0x5bc   :  { %v8187_v62 = vld [vmem:[#allocation3 + $0x708] ss:$28 sps:$4 sm:$0xff]  }
 0x5bd   :  { %6267 = vmatpush2.bf16.msra.mxu0 %v8115_v63  ;;  %v8190_v63 = vld [vmem:[#allocation3 + $0xa88] ss:$28 sps:$4 sm:$0xff]  }
 0x5be   :  { %6308 = vmatpush2.bf16.msra.mxu1 %v8118_v0  ;;  %6268 = vmatprep.subr.bf16.mxu0 %v8123_v1  ;;  %v8195_v0 = vld [vmem:[#allocation3 + $0xa54] ss:$28 sps:$4 sm:$0xff]  }
 0x5bf   :  { %6309 = vmatprep.subr.bf16.mxu1 %v8126_v2  ;;  %v8198_v1 = vld [vmem:[#allocation3 + $0xdd4] ss:$28 sps:$4 sm:$0xff]  }
 0x5c0   :  { %v8193_v2 = vld [vmem:[#allocation3 + $0xa50] ss:$28 sps:$4 sm:$0xff]  }
 0x5c1   :  { %6269 = vmatpush2.bf16.msra.mxu0 %v8121_v5  ;;  %v8196_v5 = vld [vmem:[#allocation3 + $0xdd0] ss:$28 sps:$4 sm:$0xff]  }
 0x5c2   :  { %6310 = vmatpush2.bf16.msra.mxu1 %v8124_v8  ;;  %6270 = vmatprep.subr.bf16.mxu0 %v8129_v9  ;;  %v8201_v8 = vld [vmem:[#allocation3 + $0xa1c] ss:$28 sps:$4 sm:$0xff]  }
 0x5c3   :  { %6311 = vmatprep.subr.bf16.mxu1 %v8132_v10  ;;  %v8204_v9 = vld [vmem:[#allocation3 + $0xd9c] ss:$28 sps:$4 sm:$0xff]  }
 0x5c4   :  { %v8199_v10 = vld [vmem:[#allocation3 + $0xa18] ss:$28 sps:$4 sm:$0xff]  }
 0x5c5   :  { %6271 = vmatpush2.bf16.msra.mxu0 %v8127_v11  ;;  %v8202_v11 = vld [vmem:[#allocation3 + $0xd98] ss:$28 sps:$4 sm:$0xff]  }
 0x5c6   :  { %6312 = vmatpush2.bf16.msra.mxu1 %v8130_v59  ;;  %6272 = vmatprep.subr.bf16.mxu0 %v8135_v46  ;;  %v8207_v59 = vld [vmem:[#allocation3 + $0x9e4] ss:$28 sps:$4 sm:$0xff]  }
 0x5c7   :  { %6313 = vmatprep.subr.bf16.mxu1 %v8138_v13  ;;  %v8210_v46 = vld [vmem:[#allocation3 + $0xd64] ss:$28 sps:$4 sm:$0xff]  }
 0x5c8   :  { %v8205_v13 = vld [vmem:[#allocation3 + $0x9e0] ss:$28 sps:$4 sm:$0xff]  }
 0x5c9   :  { %6273 = vmatpush2.bf16.msra.mxu0 %v8133_v50  ;;  %v8208_v50 = vld [vmem:[#allocation3 + $0xd60] ss:$28 sps:$4 sm:$0xff]  }
 0x5ca   :  { %6314 = vmatpush2.bf16.msra.mxu1 %v8136_v30  ;;  %6274 = vmatprep.subr.bf16.mxu0 %v8141_v61  ;;  %v8213_v30 = vld [vmem:[#allocation3 + $0x9ac] ss:$28 sps:$4 sm:$0xff]  }
 0x5cb   :  { %6315 = vmatprep.subr.bf16.mxu1 %v8144_v16  ;;  %v8216_v61 = vld [vmem:[#allocation3 + $0xd2c] ss:$28 sps:$4 sm:$0xff]  }
 0x5cc   :  { %v8211_v16 = vld [vmem:[#allocation3 + $0x9a8] ss:$28 sps:$4 sm:$0xff]  }
 0x5cd   :  { %6275 = vmatpush2.bf16.msra.mxu0 %v8139_v12  ;;  %v8214_v12 = vld [vmem:[#allocation3 + $0xd28] ss:$28 sps:$4 sm:$0xff]  }
 0x5ce   :  { %6316 = vmatpush2.bf16.msra.mxu1 %v8142_v24  ;;  %6326 = vmatprep.subr.bf16.mxu0 %v8147_v18  ;;  %v8219_v24 = vld [vmem:[#allocation3 + $0x974] ss:$28 sps:$4 sm:$0xff]  }
 0x5cf   :  { %6367 = vmatprep.subr.bf16.mxu1 %v8150_v22  ;;  %v8222_v18 = vld [vmem:[#allocation3 + $0xcf4] ss:$28 sps:$4 sm:$0xff]  }
 0x5d0   :  { %6277 = vmatmul.mubr.bf16.vlgmr.msra.gmra.mxu0 %v8954_v43  ;;  %v8217_v22 = vld [vmem:[#allocation3 + $0x970] ss:$28 sps:$4 sm:$0xff]  }
 0x5d1   :  { %6318 = vmatmul.mubr.bf16.vlgmr.msra.gmra.mxu1 %v8959_v45  ;;  %6327 = vmatpush1.bf16.msra.mxu0 %v8145_v23  ;;  %v8220_v23 = vld [vmem:[#allocation3 + $0xcf0] ss:$28 sps:$4 sm:$0xff]  }
 0x5d2   :  { %6368 = vmatpush1.bf16.msra.mxu1 %v8148_v28  ;;  %6328 = vmatprep.subr.bf16.mxu0 %v8153_v41  ;;  %v8225_v28 = vld [vmem:[#allocation3 + $0x93c] ss:$28 sps:$4 sm:$0xff]  }
 0x5d3   :  { %6369 = vmatprep.subr.bf16.mxu1 %v8156_v27  ;;  %6358 = vmatprep.mubr.bf16.mxu0 %v8964_v19  ;;  %v8228_v41 = vld [vmem:[#allocation3 + $0xcbc] ss:$28 sps:$4 sm:$0xff]  }
 0x5d4   :  { %6399 = vmatprep.mubr.bf16.mxu1 %v8969_v20  ;;  %v8223_v27 = vld [vmem:[#allocation3 + $0x938] ss:$28 sps:$4 sm:$0xff]  }
 0x5d5   :  { %6329 = vmatpush1.bf16.msra.mxu0 %v8151_v29  ;;  %v8226_v29 = vld [vmem:[#allocation3 + $0xcb8] ss:$28 sps:$4 sm:$0xff]  }
 0x5d6   :  { %6370 = vmatpush1.bf16.msra.mxu1 %v8154_v32  ;;  %6330 = vmatprep.subr.bf16.mxu0 %v8159_v53  ;;  %v8231_v32 = vld [vmem:[#allocation3 + $0x904] ss:$28 sps:$4 sm:$0xff]  }
 0x5d7   :  { %6371 = vmatprep.subr.bf16.mxu1 %v8162_v25  ;;  %v8234_v53 = vld [vmem:[#allocation3 + $0xc84] ss:$28 sps:$4 sm:$0xff]  }
 0x5d8   :  { %v8229_v25 = vld [vmem:[#allocation3 + $0x900] ss:$28 sps:$4 sm:$0xff]  }
 0x5d9   :  { %6331 = vmatpush1.bf16.msra.mxu0 %v8157_v52  ;;  %v8232_v52 = vld [vmem:[#allocation3 + $0xc80] ss:$28 sps:$4 sm:$0xff]  }
 0x5da   :  { %6372 = vmatpush1.bf16.msra.mxu1 %v8160_v36  ;;  %6332 = vmatprep.subr.bf16.mxu0 %v8165_v44  ;;  %v8237_v36 = vld [vmem:[#allocation3 + $0x8cc] ss:$28 sps:$4 sm:$0xff]  }
 0x5db   :  { %6373 = vmatprep.subr.bf16.mxu1 %v8168_v60  ;;  %v8240_v44 = vld [vmem:[#allocation3 + $0xc4c] ss:$28 sps:$4 sm:$0xff]  }
 0x5dc   :  { %v8235_v60 = vld [vmem:[#allocation3 + $0x8c8] ss:$28 sps:$4 sm:$0xff]  }
 0x5dd   :  { %6333 = vmatpush1.bf16.msra.mxu0 %v8163_v54  ;;  %v8238_v54 = vld [vmem:[#allocation3 + $0xc48] ss:$28 sps:$4 sm:$0xff]  }
 0x5de   :  { %6374 = vmatpush1.bf16.msra.mxu1 %v8166_v38  ;;  %6334 = vmatprep.subr.bf16.mxu0 %v8171_v39  ;;  %v8243_v38 = vld [vmem:[#allocation3 + $0x19c] ss:$28 sps:$4 sm:$0xff]  }
 0x5df   :  { %6375 = vmatprep.subr.bf16.mxu1 %v8174_v40  ;;  %v8246_v39 = vld [vmem:[#allocation3 + $0x51c] ss:$28 sps:$4 sm:$0xff]  }
 0x5e0   :  { %v8241_v40 = vld [vmem:[#allocation3 + $0x198] ss:$28 sps:$4 sm:$0xff]  }
 0x5e1   :  { %6335 = vmatpush1.bf16.msra.mxu0 %v8169_v42  ;;  %v8244_v42 = vld [vmem:[#allocation3 + $0x518] ss:$28 sps:$4 sm:$0xff]  }
 0x5e2   :  { %6376 = vmatpush1.bf16.msra.mxu1 %v8172_v49  ;;  %6336 = vmatprep.subr.bf16.mxu0 %v8177_v37  ;;  %v8249_v49 = vld [vmem:[#allocation3 + $0x164] ss:$28 sps:$4 sm:$0xff]  }
 0x5e3   :  { %6377 = vmatprep.subr.bf16.mxu1 %v8180_v55  ;;  %v8252_v37 = vld [vmem:[#allocation3 + $0x4e4] ss:$28 sps:$4 sm:$0xff]  }
 0x5e4   :  { %v8247_v55 = vld [vmem:[#allocation3 + $0x160] ss:$28 sps:$4 sm:$0xff]  }
 0x5e5   :  { %6337 = vmatpush1.bf16.msra.mxu0 %v8175_v56 }
 0x5e6   :  { %6378 = vmatpush1.bf16.msra.mxu1 %v8178_v33  ;;  %6338 = vmatprep.subr.bf16.mxu0 %v8183_v35  ;;  %v8250_v35 = vld [vmem:[#allocation3 + $0x4e0] ss:$28 sps:$4 sm:$0xff]  }
 0x5e7   :  { %6379 = vmatprep.subr.bf16.mxu1 %v8186_v57  ;;  %v8255_v57 = vld [vmem:[#allocation3 + $0x12c] ss:$28 sps:$4 sm:$0xff]  }
 0x5e9   :  { %6339 = vmatpush1.bf16.msra.mxu0 %v8181_v47 }
 0x5ea   :  { %6380 = vmatpush1.bf16.msra.mxu1 %v8184_v48  ;;  %6340 = vmatprep.subr.bf16.mxu0 %v8189_v14  ;;  %v8258_v14 = vld [vmem:[#allocation3 + $0x4ac] ss:$28 sps:$4 sm:$0xff]  }
 0x5eb   :  { %6381 = vmatprep.subr.bf16.mxu1 %v8192_v15  ;;  %v8253_v15 = vld [vmem:[#allocation3 + $0x128] ss:$28 sps:$4 sm:$0xff]  }
 0x5ed   :  { %6341 = vmatpush1.bf16.msra.mxu0 %v8187_v62 }
 0x5ee   :  { %6382 = vmatpush1.bf16.msra.mxu1 %v8190_v63  ;;  %6342 = vmatprep.subr.bf16.mxu0 %v8195_v0  ;;  %v8256_v0 = vld [vmem:[#allocation3 + $0x4a8] ss:$28 sps:$4 sm:$0xff]  }
 0x5ef   :  { %6383 = vmatprep.subr.bf16.mxu1 %v8198_v1  ;;  %v8261_v1 = vld [vmem:[#allocation3 + $0xf4] ss:$28 sps:$4 sm:$0xff]  }
 0x5f1   :  { %6343 = vmatpush2.bf16.msra.mxu0 %v8193_v2 }
 0x5f2   :  { %6384 = vmatpush2.bf16.msra.mxu1 %v8196_v5  ;;  %6344 = vmatprep.subr.bf16.mxu0 %v8201_v8  ;;  %v8264_v8 = vld [vmem:[#allocation3 + $0x474] ss:$28 sps:$4 sm:$0xff]  }
 0x5f3   :  { %6385 = vmatprep.subr.bf16.mxu1 %v8204_v9  ;;  %v8259_v9 = vld [vmem:[#allocation3 + $0xf0] ss:$28 sps:$4 sm:$0xff]  }
 0x5f5   :  { %6345 = vmatpush2.bf16.msra.mxu0 %v8199_v10  ;;  %v8262_v10 = vld [vmem:[#allocation3 + $0x470] ss:$28 sps:$4 sm:$0xff]  }
 0x5f6   :  { %6386 = vmatpush2.bf16.msra.mxu1 %v8202_v11  ;;  %6346 = vmatprep.subr.bf16.mxu0 %v8207_v59  ;;  %v8267_v11 = vld [vmem:[#allocation3 + $0xbc] ss:$28 sps:$4 sm:$0xff]  }
 0x5f7   :  { %6387 = vmatprep.subr.bf16.mxu1 %v8210_v46  ;;  %v8270_v59 = vld [vmem:[#allocation3 + $0x43c] ss:$28 sps:$4 sm:$0xff]  }
 0x5f8   :  { %v8265_v46 = vld [vmem:[#allocation3 + $0xb8] ss:$28 sps:$4 sm:$0xff]  }
 0x5f9   :  { %6347 = vmatpush2.bf16.msra.mxu0 %v8205_v13  ;;  %v8268_v13 = vld [vmem:[#allocation3 + $0x438] ss:$28 sps:$4 sm:$0xff]  }
 0x5fa   :  { %6388 = vmatpush2.bf16.msra.mxu1 %v8208_v50  ;;  %6348 = vmatprep.subr.bf16.mxu0 %v8213_v30  ;;  %v8273_v50 = vld [vmem:[#allocation3 + $0x84] ss:$28 sps:$4 sm:$0xff]  }
 0x5fb   :  { %6389 = vmatprep.subr.bf16.mxu1 %v8216_v61  ;;  %v8276_v30 = vld [vmem:[#allocation3 + $0x404] ss:$28 sps:$4 sm:$0xff]  }
 0x5fc   :  { %v8271_v61 = vld [vmem:[#allocation3 + $0x80] ss:$28 sps:$4 sm:$0xff]  }
 0x5fd   :  { %6349 = vmatpush2.bf16.msra.mxu0 %v8211_v16  ;;  %v8274_v16 = vld [vmem:[#allocation3 + $0x400] ss:$28 sps:$4 sm:$0xff]  }
 0x5fe   :  { %6390 = vmatpush2.bf16.msra.mxu1 %v8214_v12  ;;  %6350 = vmatprep.subr.bf16.mxu0 %v8219_v24  ;;  %v8279_v12 = vld [vmem:[#allocation3 + $0x4c] ss:$28 sps:$4 sm:$0xff]  }
 0x5ff   :  { %6391 = vmatprep.subr.bf16.mxu1 %v8222_v18  ;;  %v8282_v24 = vld [vmem:[#allocation3 + $0x3cc] ss:$28 sps:$4 sm:$0xff]  }
 0x600   :  { %v8277_v18 = vld [vmem:[#allocation3 + $0x48] ss:$28 sps:$4 sm:$0xff]  }
 0x601   :  { %6351 = vmatpush2.bf16.msra.mxu0 %v8217_v22  ;;  %v8280_v22 = vld [vmem:[#allocation3 + $0x3c8] ss:$28 sps:$4 sm:$0xff]  }
 0x602   :  { %6392 = vmatpush2.bf16.msra.mxu1 %v8220_v23  ;;  %6352 = vmatprep.subr.bf16.mxu0 %v8225_v28  ;;  %v8285_v23 = vld [vmem:[#allocation3 + $0x14] ss:$28 sps:$4 sm:$0xff]  }
 0x603   :  { %6393 = vmatprep.subr.bf16.mxu1 %v8228_v41  ;;  %v8288_v28 = vld [vmem:[#allocation3 + $0x394] ss:$28 sps:$4 sm:$0xff]  }
 0x604   :  { %v8283_v41 = vld [vmem:[#allocation3 + $0x10] ss:$28 sps:$4 sm:$0xff]  }
 0x605   :  { %6353 = vmatpush2.bf16.msra.mxu0 %v8223_v27  ;;  %v8286_v27 = vld [vmem:[#allocation3 + $0x390] ss:$28 sps:$4 sm:$0xff]  }
 0x606   :  { %6394 = vmatpush2.bf16.msra.mxu1 %v8226_v29  ;;  %6354 = vmatprep.subr.bf16.mxu0 %v8231_v32  ;;  %v8291_v29 = vld [vmem:[#allocation3 + $0x35c] ss:$28 sps:$4 sm:$0xff]  }
 0x607   :  { %6395 = vmatprep.subr.bf16.mxu1 %v8234_v53  ;;  %v8294_v32 = vld [vmem:[#allocation3 + $0x6dc] ss:$28 sps:$4 sm:$0xff]  }
 0x608   :  { %v8289_v53 = vld [vmem:[#allocation3 + $0x358] ss:$28 sps:$4 sm:$0xff]  }
 0x609   :  { %6355 = vmatpush2.bf16.msra.mxu0 %v8229_v25  ;;  %v8292_v25 = vld [vmem:[#allocation3 + $0x6d8] ss:$28 sps:$4 sm:$0xff]  }
 0x60a   :  { %6396 = vmatpush2.bf16.msra.mxu1 %v8232_v52  ;;  %6356 = vmatprep.subr.bf16.mxu0 %v8237_v36  ;;  %v8297_v52 = vld [vmem:[#allocation3 + $0x324] ss:$28 sps:$4 sm:$0xff]  }
 0x60b   :  { %6397 = vmatprep.subr.bf16.mxu1 %v8240_v44  ;;  %v8300_v36 = vld [vmem:[#allocation3 + $0x6a4] ss:$28 sps:$4 sm:$0xff]  }
 0x60c   :  { %v8295_v44 = vld [vmem:[#allocation3 + $0x320] ss:$28 sps:$4 sm:$0xff]  }
 0x60d   :  { %6357 = vmatpush2.bf16.msra.mxu0 %v8235_v60  ;;  %v8298_v60 = vld [vmem:[#allocation3 + $0x6a0] ss:$28 sps:$4 sm:$0xff]  }
 0x60e   :  { %6398 = vmatpush2.bf16.msra.mxu1 %v8238_v54  ;;  %6408 = vmatprep.subr.bf16.mxu0 %v8243_v38  ;;  %v8303_v54 = vld [vmem:[#allocation3 + $0x2ec] ss:$28 sps:$4 sm:$0xff]  }
 0x60f   :  { %6449 = vmatprep.subr.bf16.mxu1 %v8246_v39  ;;  %v8306_v38 = vld [vmem:[#allocation3 + $0x66c] ss:$28 sps:$4 sm:$0xff]  }
 0x610   :  { %v8993_v56 = vpop.f32.mrf.mxu0  ;;  %6359 = vmatmul.mubr.bf16.vlgmr.msra.gmra.mxu0 %v8978_v6  ;;  %v8301_v39 = vld [vmem:[#allocation3 + $0x2e8] ss:$28 sps:$4 sm:$0xff]  }
 0x611   :  { %v8995_v33 = vpop.f32.mrf.mxu1  ;;  %6400 = vmatmul.mubr.bf16.vlgmr.msra.gmra.mxu1 %v8983_v7  ;;  %6409 = vmatpush1.bf16.msra.mxu0 %v8241_v40  ;;  %v8304_v40 = vld [vmem:[#allocation3 + $0x668] ss:$28 sps:$4 sm:$0xff]  }
 0x612   :  { %6450 = vmatpush1.bf16.msra.mxu1 %v8244_v42  ;;  %v8999_v47 = vpop.f32.mrf.mxu0  ;;  %6410 = vmatprep.subr.bf16.mxu0 %v8249_v49  ;;  %v8309_v42 = vld [vmem:[#allocation3 + $0x2b4] ss:$28 sps:$4 sm:$0xff]  }
 0x613   :  { %v9001_v48 = vpop.f32.mrf.mxu1  ;;  %6451 = vmatprep.subr.bf16.mxu1 %v8252_v37  ;;  %6440 = vmatprep.mubr.bf16.mxu0 %v8942_v3  ;;  %v8312_v49 = vld [vmem:[#allocation3 + $0x634] ss:$28 sps:$4 sm:$0xff]  }
 0x614   :  { %6481 = vmatprep.mubr.bf16.mxu1 %v8947_v4  ;;  %v6118_v62 = vpop.f32.mrf.mxu0  ;;  %v8307_v37 = vld [vmem:[#allocation3 + $0x2b0] ss:$28 sps:$4 sm:$0xff]  }
 0x615   :  { %v6159_v63 = vpop.f32.mrf.mxu1  ;;  %6411 = vmatpush1.bf16.msra.mxu0 %v8247_v55  ;;  %v8310_v55 = vld [vmem:[#allocation3 + $0x630] ss:$28 sps:$4 sm:$0xff]   ;;  %v8321_v62 = vld [vmem:[#allocation3 + $0x244] ss:$28 sps:$4 sm:$0xff]  }
 0x616   :  { %6452 = vmatpush1.bf16.msra.mxu1 %v8250_v35  ;;  %v6119_v2 = vpop.f32.mrf.mxu0  ;;  %6412 = vmatprep.subr.bf16.mxu0 %v8255_v57  ;;  %v8315_v35 = vld [vmem:[#allocation3 + $0x27c] ss:$28 sps:$4 sm:$0xff]  }
 0x617   :  { %v6160_v5 = vpop.f32.mrf.mxu1  ;;  %6453 = vmatprep.subr.bf16.mxu1 %v8258_v14  ;;  %v8318_v57 = vld [vmem:[#allocation3 + $0x5fc] ss:$28 sps:$4 sm:$0xff]  }
 0x618   :  { %v8313_v14 = vld [vmem:[#allocation3 + $0x278] ss:$28 sps:$4 sm:$0xff]   ;;  %v8319_v2 = vld [vmem:[#allocation3 + $0x240] ss:$28 sps:$4 sm:$0xff]  }
 0x619   :  { %6413 = vmatpush1.bf16.msra.mxu0 %v8253_v15  ;;  %v8316_v15 = vld [vmem:[#allocation3 + $0x5f8] ss:$28 sps:$4 sm:$0xff]   ;;  %v8322_v5 = vld [vmem:[#allocation3 + $0x5c0] ss:$28 sps:$4 sm:$0xff]  }
 0x61a   :  { %6454 = vmatpush1.bf16.msra.mxu1 %v8256_v0  ;;  %6414 = vmatprep.subr.bf16.mxu0 %v8261_v1  ;;  %v3737_v63 = vld [vmem:[#allocation13 + $0x40] ss:$8 sm:$0xf] }
 0x61b   :  { %6455 = vmatprep.subr.bf16.mxu1 %v8264_v8  ;;  %v3738_v0 = vld [vmem:[#allocation13 + $0x40] ss:$8 sm:$0xf0] }
 0x61c   :  { %v8324_v1 = vld [vmem:[#allocation3 + $0x5c4] ss:$28 sps:$4 sm:$0xff]   ;;  %v8327_v8 = vld [vmem:[#allocation3 + $0x20c] ss:$28 sps:$4 sm:$0xff]  }
 0x61d   :  { %6415 = vmatpush1.bf16.msra.mxu0 %v8259_v9  ;;  %v8330_v9 = vld [vmem:[#allocation3 + $0x58c] ss:$28 sps:$4 sm:$0xff]  }
 0x61e   :  { %6456 = vmatpush1.bf16.msra.mxu1 %v8262_v10  ;;  %6416 = vmatprep.subr.bf16.mxu0 %v8267_v11  ;;  %v9005_v10 = vor.u32 %v3738_v0, %v3737_v63  ;;  %v8325_v11 = vld [vmem:[#allocation3 + $0x208] ss:$28 sps:$4 sm:$0xff]   ;;  %v8358_v63 = vld [vmem:[#allocation3 + $0xb70] ss:$28 sps:$4 sm:$0xff]   ;;  %v8363_v0 = vld [vmem:[#allocation3 + $0x7bc] ss:$28 sps:$4 sm:$0xff]  }
 0x61f   :  { %6457 = vmatprep.subr.bf16.mxu1 %v8270_v59  ;;  %v8328_v59 = vld [vmem:[#allocation3 + $0x588] ss:$28 sps:$4 sm:$0xff]  }
 0x621   :  { %6417 = vmatpush1.bf16.msra.mxu0 %v8265_v46  ;;  %v8333_v46 = vld [vmem:[#allocation3 + $0x1d4] ss:$28 sps:$4 sm:$0xff]  }
 0x622   :  { %6458 = vmatpush1.bf16.msra.mxu1 %v8268_v13  ;;  %6418 = vmatprep.subr.bf16.mxu0 %v8273_v50  ;;  %v8336_v13 = vld [vmem:[#allocation3 + $0x554] ss:$28 sps:$4 sm:$0xff]   ;;  %v3744_v50 = vrot.slane %v9005_v10, %v8778_v31  ;;  %v8345_v31 = vld [vmem:[#allocation3 + $0x864] ss:$28 sps:$4 sm:$0xff]  }
 0x623   :  { %6459 = vmatprep.subr.bf16.mxu1 %v8276_v30  ;;  %v8331_v30 = vld [vmem:[#allocation3 + $0x1d0] ss:$28 sps:$4 sm:$0xff]  }
 0x625   :  { %6419 = vmatpush1.bf16.msra.mxu0 %v8271_v61  ;;  %v8334_v61 = vld [vmem:[#allocation3 + $0x550] ss:$28 sps:$4 sm:$0xff]  }
 0x626   :  { %6460 = vmatpush1.bf16.msra.mxu1 %v8274_v16  ;;  %6420 = vmatprep.subr.bf16.mxu0 %v8279_v12  ;;  %v3748_v16 = vrot.slane %v9005_v10, %v8781_v34  ;;  %v8339_v12 = vld [vmem:[#allocation3 + $0x89c] ss:$28 sps:$4 sm:$0xff]  }
 0x627   :  { %6461 = vmatprep.subr.bf16.mxu1 %v8282_v24  ;;  %v8342_v24 = vld [vmem:[#allocation3 + $0xc1c] ss:$28 sps:$4 sm:$0xff]  }
 0x629   :  { %6421 = vmatpush1.bf16.msra.mxu0 %v8277_v18  ;;  %v6115_v18 = vadd.f32 %v8993_v56, %v3744_v50  ;;  %v8373_v50 = vld [vmem:[#allocation3 + $0x748] ss:$28 sps:$4 sm:$0xff]  }
 0x62a   :  { %6462 = vmatpush1.bf16.msra.mxu1 %v8280_v22  ;;  %6422 = vmatprep.subr.bf16.mxu0 %v8285_v23  ;;  %v8337_v22 = vld [vmem:[#allocation3 + $0x898] ss:$28 sps:$4 sm:$0xff]   ;;  %v6117_v23 = vadd.f32 %v8999_v47, %v3748_v16  ;;  %v8343_v47 = vld [vmem:[#allocation3 + $0x860] ss:$28 sps:$4 sm:$0xff]  }
 0x62b   :  { %6463 = vmatprep.subr.bf16.mxu1 %v8288_v28  ;;  %v8340_v28 = vld [vmem:[#allocation3 + $0xc18] ss:$28 sps:$4 sm:$0xff]   ;;  %v6156_v34 = vadd.f32 %v8995_v33, %v6115_v18 }
 0x62c   :  { %v6158_v56 = vadd.f32 %v9001_v48, %v6117_v23  ;;  %v8381_v16 = vld [vmem:[#allocation3 + $0x714] ss:$28 sps:$4 sm:$0xff]  }
 0x62d   :  { %6423 = vmatpush1.bf16.msra.mxu0 %v8283_v41  ;;  %v8348_v41 = vld [vmem:[#allocation3 + $0xbe4] ss:$28 sps:$4 sm:$0xff]   ;;  %v8379_v23 = vld [vmem:[#allocation3 + $0x710] ss:$28 sps:$4 sm:$0xff]  }
 0x62e   :  { %6464 = vmatpush1.bf16.msra.mxu1 %v8286_v27  ;;  %6424 = vmatprep.subr.bf16.mxu0 %v8291_v29 }
 0x62f   :  { %6465 = vmatprep.subr.bf16.mxu1 %v8294_v32 }
 0x631   :  { %6425 = vmatpush2.bf16.msra.mxu0 %v8289_v53  ;;  %v8346_v53 = vld [vmem:[#allocation3 + $0xbe0] ss:$28 sps:$4 sm:$0xff]  }
 0x632   :  { %6466 = vmatpush2.bf16.msra.mxu1 %v8292_v25  ;;  %6426 = vmatprep.subr.bf16.mxu0 %v8297_v52 }
 0x633   :  { %6467 = vmatprep.subr.bf16.mxu1 %v8300_v36  ;;  %v8351_v36 = vld [vmem:[#allocation3 + $0x82c] ss:$28 sps:$4 sm:$0xff]  }
 0x635   :  { %6427 = vmatpush2.bf16.msra.mxu0 %v8295_v44  ;;  %v8354_v44 = vld [vmem:[#allocation3 + $0xbac] ss:$28 sps:$4 sm:$0xff]  }
 0x636   :  { %6468 = vmatpush2.bf16.msra.mxu1 %v8298_v60  ;;  %6428 = vmatprep.subr.bf16.mxu0 %v8303_v54 }
 0x637   :  { %6469 = vmatprep.subr.bf16.mxu1 %v8306_v38 }
 0x639   :  { %6429 = vmatpush2.bf16.msra.mxu0 %v8301_v39 }
 0x63a   :  { %6470 = vmatpush2.bf16.msra.mxu1 %v8304_v40  ;;  %6430 = vmatprep.subr.bf16.mxu0 %v8309_v42  ;;  %v8349_v40 = vld [vmem:[#allocation3 + $0x828] ss:$28 sps:$4 sm:$0xff]  }
 0x63b   :  { %6471 = vmatprep.subr.bf16.mxu1 %v8312_v49  ;;  %v8352_v42 = vld [vmem:[#allocation3 + $0xba8] ss:$28 sps:$4 sm:$0xff]  }
 0x63d   :  { %6431 = vmatpush2.bf16.msra.mxu0 %v8307_v37 }
 0x63e   :  { %6472 = vmatpush2.bf16.msra.mxu1 %v8310_v55  ;;  %6432 = vmatprep.subr.bf16.mxu0 %v8315_v35  ;;  %v8357_v55 = vld [vmem:[#allocation3 + $0x7f4] ss:$28 sps:$4 sm:$0xff]  }
 0x63f   :  { %6473 = vmatprep.subr.bf16.mxu1 %v8318_v57  ;;  %v8360_v35 = vld [vmem:[#allocation3 + $0xb74] ss:$28 sps:$4 sm:$0xff]  }
 0x641   :  { %6433 = vmatpush2.bf16.msra.mxu0 %v8313_v14 }
 0x642   :  { %6474 = vmatpush2.bf16.msra.mxu1 %v8316_v15  ;;  %6434 = vmatprep.subr.bf16.mxu0 %v8321_v62  ;;  %v8355_v62 = vld [vmem:[#allocation3 + $0x7f0] ss:$28 sps:$4 sm:$0xff]  }
 0x643   :  { %6475 = vmatprep.subr.bf16.mxu1 %v8324_v1  ;;  %v8366_v1 = vld [vmem:[#allocation3 + $0xb3c] ss:$28 sps:$4 sm:$0xff]  }
 0x645   :  { %6435 = vmatpush2.bf16.msra.mxu0 %v8319_v2  ;;  %v8361_v2 = vld [vmem:[#allocation3 + $0x7b8] ss:$28 sps:$4 sm:$0xff]  }
 0x646   :  { %6476 = vmatpush2.bf16.msra.mxu1 %v8322_v5  ;;  %6436 = vmatprep.subr.bf16.mxu0 %v8327_v8  ;;  %v8364_v5 = vld [vmem:[#allocation3 + $0xb38] ss:$28 sps:$4 sm:$0xff]   ;;  %v8369_v8 = vld [vmem:[#allocation3 + $0x784] ss:$28 sps:$4 sm:$0xff]  }
 0x647   :  { %6477 = vmatprep.subr.bf16.mxu1 %v8330_v9  ;;  %v8372_v9 = vld [vmem:[#allocation3 + $0xb04] ss:$28 sps:$4 sm:$0xff]  }
 0x649   :  { %6437 = vmatpush2.bf16.msra.mxu0 %v8325_v11  ;;  %v8367_v11 = vld [vmem:[#allocation3 + $0x780] ss:$28 sps:$4 sm:$0xff]  }
 0x64a   :  { %6478 = vmatpush2.bf16.msra.mxu1 %v8328_v59  ;;  %6438 = vmatprep.subr.bf16.mxu0 %v8333_v46  ;;  %v8370_v59 = vld [vmem:[#allocation3 + $0xb00] ss:$28 sps:$4 sm:$0xff]   ;;  %v8375_v46 = vld [vmem:[#allocation3 + $0x74c] ss:$28 sps:$4 sm:$0xff]  }
 0x64b   :  { %6479 = vmatprep.subr.bf16.mxu1 %v8336_v13  ;;  %v8378_v13 = vld [vmem:[#allocation3 + $0xacc] ss:$28 sps:$4 sm:$0xff]  }
 0x64d   :  { %6439 = vmatpush2.bf16.msra.mxu0 %v8331_v30  ;;  %v8376_v30 = vld [vmem:[#allocation3 + $0xac8] ss:$28 sps:$4 sm:$0xff]  }
 0x64e   :  { %6480 = vmatpush2.bf16.msra.mxu1 %v8334_v61  ;;  %6490 = vmatprep.subr.bf16.mxu0 %v8339_v12  ;;  %v8384_v12 = vld [vmem:[#allocation3 + $0xa94] ss:$28 sps:$4 sm:$0xff]  }
 0x64f   :  { %6531 = vmatprep.subr.bf16.mxu1 %v8342_v24 }
 0x650   :  { %v6196_v27 = vpop.f32.mrf.mxu0  ;;  %6441 = vmatmul.mubr.bf16.vlgmr.msra.gmra.mxu0 %v8954_v43 }
 0x651   :  { %v6237_v29 = vpop.f32.mrf.mxu1  ;;  %6482 = vmatmul.mubr.bf16.vlgmr.msra.gmra.mxu1 %v8959_v45  ;;  %v6197_v32 = vadd.f32 %v6196_v27, %v6156_v34  ;;  %6491 = vmatpush1.bf16.msra.mxu0 %v8337_v22  ;;  %v8385_v34 = vld [vmem:[#allocation3 + $0xa58] ss:$28 sps:$4 sm:$0xff]  }
 0x652   :  { %6532 = vmatpush1.bf16.msra.mxu1 %v8340_v28  ;;  %v6198_v25 = vpop.f32.mrf.mxu0  ;;  %6492 = vmatprep.subr.bf16.mxu0 %v8345_v31  ;;  %v8382_v28 = vld [vmem:[#allocation3 + $0xa90] ss:$28 sps:$4 sm:$0xff]   ;;  %v8387_v31 = vld [vmem:[#allocation3 + $0xa5c] ss:$28 sps:$4 sm:$0xff]  }
 0x653   :  { %v6239_v52 = vpop.f32.mrf.mxu1  ;;  %6533 = vmatprep.subr.bf16.mxu1 %v8348_v41  ;;  %v6238_v33 = vadd.f32 %v6237_v29, %v6197_v32  ;;  %v6199_v60 = vadd.f32 %v6198_v25, %v6158_v56  ;;  %6522 = vmatprep.mubr.bf16.mxu0 %v8964_v19  ;;  %v8390_v41 = vld [vmem:[#allocation3 + $0xddc] ss:$28 sps:$4 sm:$0xff]   ;;  %v8393_v29 = vld [vmem:[#allocation3 + $0xa24] ss:$28 sps:$4 sm:$0xff]   ;;  %v8402_v25 = vld [vmem:[#allocation3 + $0xd6c] ss:$28 sps:$4 sm:$0xff]  }
 0x654   :  { %6563 = vmatprep.mubr.bf16.mxu1 %v8969_v20  ;;  %v6200_v54 = vpop.f32.mrf.mxu0  ;;  %v8388_v27 = vld [vmem:[#allocation3 + $0xdd8] ss:$28 sps:$4 sm:$0xff]   ;;  %v8396_v56 = vld [vmem:[#allocation3 + $0xda4] ss:$28 sps:$4 sm:$0xff]  }
 0x655   :  { %v6241_v38 = vpop.f32.mrf.mxu1  ;;  %v6732_v48 = vsub.f32 0.0, %v6238_v33  ;;  %v6240_v39 = vadd.f32 %v6239_v52, %v6199_v60  ;;  %6493 = vmatpush1.bf16.msra.mxu0 %v8343_v47  ;;  %v8391_v32 = vld [vmem:[#allocation3 + $0xa20] ss:$28 sps:$4 sm:$0xff]   ;;  %v8397_v52 = vld [vmem:[#allocation3 + $0x9e8] ss:$28 sps:$4 sm:$0xff]  }
 0x656   :  { %6534 = vmatpush1.bf16.msra.mxu1 %v8346_v53  ;;  %v6201_v49 = vpop.f32.mrf.mxu0  ;;  %6494 = vmatprep.subr.bf16.mxu0 %v8351_v36  ;;  %v8394_v47 = vld [vmem:[#allocation3 + $0xda0] ss:$28 sps:$4 sm:$0xff]   ;;  %v8399_v53 = vld [vmem:[#allocation3 + $0x9ec] ss:$28 sps:$4 sm:$0xff]   ;;  %v8405_v33 = vld [vmem:[#allocation3 + $0x9b4] ss:$28 sps:$4 sm:$0xff]  }
 0x657   :  { %v6242_v37 = vpop.f32.mrf.mxu1  ;;  %6535 = vmatprep.subr.bf16.mxu1 %v8354_v44  ;;  %v6739_v57 = vmul.f32 1.442695, %v6732_v48  ;;  %v6733_v14 = vsub.f32 0.0, %v6240_v39  ;;  %v8400_v36 = vld [vmem:[#allocation3 + $0xd68] ss:$28 sps:$4 sm:$0xff]  }
 0x658   :  { %v8408_v60 = vld [vmem:[#allocation3 + $0xd34] ss:$28 sps:$4 sm:$0xff]   ;;  %v8411_v39 = vld [vmem:[#allocation3 + $0x97c] ss:$28 sps:$4 sm:$0xff]   ;;  %v8417_v37 = vld [vmem:[#allocation3 + $0x944] ss:$28 sps:$4 sm:$0xff]  }
 0x659   :  { %8497 = vpow2.f32 %v6739_v57  ;;  %v6741_v15 = vmul.f32 1.442695, %v6733_v14  ;;  %6495 = vmatpush1.bf16.msra.mxu0 %v8349_v40  ;;  %v8403_v38 = vld [vmem:[#allocation3 + $0x9b0] ss:$28 sps:$4 sm:$0xff]   ;;  %v8414_v40 = vld [vmem:[#allocation3 + $0xcfc] ss:$28 sps:$4 sm:$0xff]  }
 0x65a   :  { %6536 = vmatpush1.bf16.msra.mxu1 %v8352_v42  ;;  %6496 = vmatprep.subr.bf16.mxu0 %v8357_v55  ;;  %v8406_v48 = vld [vmem:[#allocation3 + $0xd30] ss:$28 sps:$4 sm:$0xff]   ;;  %v8409_v42 = vld [vmem:[#allocation3 + $0x978] ss:$28 sps:$4 sm:$0xff]   ;;  %v8420_v55 = vld [vmem:[#allocation3 + $0xcc4] ss:$28 sps:$4 sm:$0xff]  }
 0x65b   :  { %6537 = vmatprep.subr.bf16.mxu1 %v8360_v35  ;;  %8499 = vpow2.f32 %v6741_v15  ;;  %v8412_v49 = vld [vmem:[#allocation3 + $0xcf8] ss:$28 sps:$4 sm:$0xff]   ;;  %v8415_v35 = vld [vmem:[#allocation3 + $0x940] ss:$28 sps:$4 sm:$0xff]   ;;  %v8423_v14 = vld [vmem:[#allocation3 + $0x90c] ss:$28 sps:$4 sm:$0xff]  }
 0x65c   :  { %v8418_v57 = vld [vmem:[#allocation3 + $0xcc0] ss:$28 sps:$4 sm:$0xff]   ;;  %v8426_v15 = vld [vmem:[#allocation3 + $0xc8c] ss:$28 sps:$4 sm:$0xff]  }
 0x65d   :  { %6497 = vmatpush1.bf16.msra.mxu0 %v8355_v62  ;;  %v8421_v62 = vld [vmem:[#allocation3 + $0x908] ss:$28 sps:$4 sm:$0xff]  }
 0x65e   :  { %6538 = vmatpush1.bf16.msra.mxu1 %v8358_v63  ;;  %6498 = vmatprep.subr.bf16.mxu0 %v8363_v0  ;;  %v8424_v63 = vld [vmem:[#allocation3 + $0xc88] ss:$28 sps:$4 sm:$0xff]   ;;  %v8429_v0 = vld [vmem:[#allocation3 + $0x8d4] ss:$28 sps:$4 sm:$0xff]  }
 0x65f   :  { %6539 = vmatprep.subr.bf16.mxu1 %v8366_v1  ;;  %v8432_v1 = vld [vmem:[#allocation3 + $0xc54] ss:$28 sps:$4 sm:$0xff]  }
 0x661   :  { %6499 = vmatpush1.bf16.msra.mxu0 %v8361_v2  ;;  %v8427_v2 = vld [vmem:[#allocation3 + $0x8d0] ss:$28 sps:$4 sm:$0xff]  }
 0x662   :  { %6540 = vmatpush1.bf16.msra.mxu1 %v8364_v5  ;;  %6500 = vmatprep.subr.bf16.mxu0 %v8369_v8  ;;  %v8430_v5 = vld [vmem:[#allocation3 + $0xc50] ss:$28 sps:$4 sm:$0xff]   ;;  %v8433_v8 = vld [vmem:[#allocation3 + $0x360] ss:$28 sps:$4 sm:$0xff]  }
 0x663   :  { %6541 = vmatprep.subr.bf16.mxu1 %v8372_v9  ;;  %v8434_v9 = vld [vmem:[#allocation3 + $0x6e0] ss:$28 sps:$4 sm:$0xff]  }
 0x665   :  { %6501 = vmatpush1.bf16.msra.mxu0 %v8367_v11  ;;  %v8435_v11 = vld [vmem:[#allocation3 + $0x1a0] ss:$28 sps:$4 sm:$0xff]  }
 0x666   :  { %6542 = vmatpush1.bf16.msra.mxu1 %v8370_v59  ;;  %v8498_v61 = vpop.eup %8497  ;;  %6502 = vmatprep.subr.bf16.mxu0 %v8375_v46  ;;  %v8436_v59 = vld [vmem:[#allocation3 + $0x520] ss:$28 sps:$4 sm:$0xff]   ;;  %v8437_v46 = vld [vmem:[#allocation3 + $0x328] ss:$28 sps:$4 sm:$0xff]  }
 0x667   :  { %6543 = vmatprep.subr.bf16.mxu1 %v8378_v13  ;;  %v6753_v24 = vadd.f32 1.0, %v8498_v61  ;;  %v8438_v13 = vld [vmem:[#allocation3 + $0x6a8] ss:$28 sps:$4 sm:$0xff]  }
 0x668   :  { %v8500_v18 = vpop.eup %8499  ;;  %v8439_v61 = vld [vmem:[#allocation3 + $0x168] ss:$28 sps:$4 sm:$0xff]  }
 0x669   :  { %8501 = vrcp.f32 %v6753_v24  ;;  %v6754_v22 = vadd.f32 1.0, %v8500_v18  ;;  %6503 = vmatpush1.bf16.msra.mxu0 %v8373_v50  ;;  %v8441_v18 = vld [vmem:[#allocation3 + $0x2f0] ss:$28 sps:$4 sm:$0xff]  }
 0x66a   :  { %6544 = vmatpush1.bf16.msra.mxu1 %v8376_v30  ;;  %6504 = vmatprep.subr.bf16.mxu0 %v8381_v16  ;;  %v8440_v16 = vld [vmem:[#allocation3 + $0x4e8] ss:$28 sps:$4 sm:$0xff]  }
 0x66b   :  { %6545 = vmatprep.subr.bf16.mxu1 %v8384_v12  ;;  %8503 = vrcp.f32 %v6754_v22  ;;  %v8442_v22 = vld [vmem:[#allocation3 + $0x670] ss:$28 sps:$4 sm:$0xff]  }
 0x66d   :  { %6505 = vmatpush1.bf16.msra.mxu0 %v8379_v23 }
 0x66e   :  { %6546 = vmatpush1.bf16.msra.mxu1 %v8382_v28  ;;  %6506 = vmatprep.subr.bf16.mxu0 %v8387_v31  ;;  %v8443_v31 = vld [vmem:[#allocation3 + $0x130] ss:$28 sps:$4 sm:$0xff]  }
 0x66f   :  { %6547 = vmatprep.subr.bf16.mxu1 %v8390_v41  ;;  %v8444_v41 = vld [vmem:[#allocation3 + $0x4b0] ss:$28 sps:$4 sm:$0xff]  }
 0x671   :  { %6507 = vmatpush2.bf16.msra.mxu0 %v8385_v34 }
 0x672   :  { %6548 = vmatpush2.bf16.msra.mxu1 %v8388_v27  ;;  %6508 = vmatprep.subr.bf16.mxu0 %v8393_v29  ;;  %v8445_v29 = vld [vmem:[#allocation3 + $0x2b8] ss:$28 sps:$4 sm:$0xff]  }
 0x673   :  { %6549 = vmatprep.subr.bf16.mxu1 %v8396_v56  ;;  %v8446_v56 = vld [vmem:[#allocation3 + $0x638] ss:$28 sps:$4 sm:$0xff]  }
 0x675   :  { %6509 = vmatpush2.bf16.msra.mxu0 %v8391_v32  ;;  %v8447_v32 = vld [vmem:[#allocation3 + $0xf8] ss:$28 sps:$4 sm:$0xff]  }
 0x676   :  { %6550 = vmatpush2.bf16.msra.mxu1 %v8394_v47  ;;  %v8502_v44 = vpop.eup %8501  ;;  %6510 = vmatprep.subr.bf16.mxu0 %v8399_v53  ;;  %v8448_v47 = vld [vmem:[#allocation3 + $0x478] ss:$28 sps:$4 sm:$0xff]   ;;  %v8451_v53 = vld [vmem:[#allocation3 + $0xc0] ss:$28 sps:$4 sm:$0xff]  }
 0x677   :  { %6551 = vmatprep.subr.bf16.mxu1 %v8402_v25  ;;  %6767 = vst [vmem:[#allocation14] sm:$0xff] %v8502_v44  ;;  %v8452_v25 = vld [vmem:[#allocation3 + $0x440] ss:$28 sps:$4 sm:$0xff]   ;;  %v8455_v44 = vld [vmem:[#allocation3 + $0x88] ss:$28 sps:$4 sm:$0xff]  }
 0x678   :  { %v8504_v54 = vpop.eup %8503 }
 0x679   :  { %6768 = vst [vmem:[#allocation14 + $0x8] sm:$0xff] %v8504_v54  ;;  %6511 = vmatpush2.bf16.msra.mxu0 %v8397_v52  ;;  %v8453_v52 = vld [vmem:[#allocation3 + $0x248] ss:$28 sps:$4 sm:$0xff]   ;;  %v8458_v54 = vld [vmem:[#allocation3 + $0x590] ss:$28 sps:$4 sm:$0xff]  }
 0x67a   :  { %6552 = vmatpush2.bf16.msra.mxu1 %v8400_v36  ;;  %6512 = vmatprep.subr.bf16.mxu0 %v8405_v33  ;;  %v8454_v36 = vld [vmem:[#allocation3 + $0x5c8] ss:$28 sps:$4 sm:$0xff]  }
 0x67b   :  { %6553 = vmatprep.subr.bf16.mxu1 %v8408_v60  ;;  %v8456_v33 = vld [vmem:[#allocation3 + $0x408] ss:$28 sps:$4 sm:$0xff]   ;;  %v8457_v60 = vld [vmem:[#allocation3 + $0x210] ss:$28 sps:$4 sm:$0xff]  }
 0x67d   :  { %6513 = vmatpush2.bf16.msra.mxu0 %v8403_v38  ;;  %v8459_v38 = vld [vmem:[#allocation3 + $0x50] ss:$28 sps:$4 sm:$0xff]  }
 0x67e   :  { %6554 = vmatpush2.bf16.msra.mxu1 %v8406_v48  ;;  %6514 = vmatprep.subr.bf16.mxu0 %v8411_v39  ;;  %v8460_v48 = vld [vmem:[#allocation3 + $0x3d0] ss:$28 sps:$4 sm:$0xff]   ;;  %v8461_v39 = vld [vmem:[#allocation3 + $0x1d8] ss:$28 sps:$4 sm:$0xff]  }
 0x67f   :  { %6555 = vmatprep.subr.bf16.mxu1 %v8414_v40  ;;  %v8462_v40 = vld [vmem:[#allocation3 + $0x558] ss:$28 sps:$4 sm:$0xff]  }
 0x681   :  { %6515 = vmatpush2.bf16.msra.mxu0 %v8409_v42  ;;  %v8463_v42 = vld [vmem:[#allocation3 + $0x18] ss:$28 sps:$4 sm:$0xff]  }
 0x682   :  { %6556 = vmatpush2.bf16.msra.mxu1 %v8412_v49  ;;  %6516 = vmatprep.subr.bf16.mxu0 %v8417_v37  ;;  %v8464_v49 = vld [vmem:[#allocation3 + $0x398] ss:$28 sps:$4 sm:$0xff]   ;;  %v8465_v37 = vld [vmem:[#allocation3 + $0xa60] ss:$28 sps:$4 sm:$0xff]  }
 0x683   :  { %6557 = vmatprep.subr.bf16.mxu1 %v8420_v55  ;;  %v8466_v55 = vld [vmem:[#allocation3 + $0xde0] ss:$28 sps:$4 sm:$0xff]  }
 0x685   :  { %6517 = vmatpush2.bf16.msra.mxu0 %v8415_v35  ;;  %v8467_v35 = vld [vmem:[#allocation3 + $0x8a0] ss:$28 sps:$4 sm:$0xff]  }
 0x686   :  { %6558 = vmatpush2.bf16.msra.mxu1 %v8418_v57  ;;  %6518 = vmatprep.subr.bf16.mxu0 %v8423_v14  ;;  %v8468_v57 = vld [vmem:[#allocation3 + $0xc20] ss:$28 sps:$4 sm:$0xff]   ;;  %v8469_v14 = vld [vmem:[#allocation3 + $0xa28] ss:$28 sps:$4 sm:$0xff]  }
 0x687   :  { %6559 = vmatprep.subr.bf16.mxu1 %v8426_v15  ;;  %v8470_v15 = vld [vmem:[#allocation3 + $0xda8] ss:$28 sps:$4 sm:$0xff]  }
 0x689   :  { %6519 = vmatpush2.bf16.msra.mxu0 %v8421_v62  ;;  %v8471_v62 = vld [vmem:[#allocation3 + $0x868] ss:$28 sps:$4 sm:$0xff]  }
 0x68a   :  { %6560 = vmatpush2.bf16.msra.mxu1 %v8424_v63  ;;  %6520 = vmatprep.subr.bf16.mxu0 %v8429_v0  ;;  %v8472_v63 = vld [vmem:[#allocation3 + $0xbe8] ss:$28 sps:$4 sm:$0xff]   ;;  %v8473_v0 = vld [vmem:[#allocation3 + $0x9f0] ss:$28 sps:$4 sm:$0xff]  }
 0x68b   :  { %6561 = vmatprep.subr.bf16.mxu1 %v8432_v1  ;;  %v8474_v1 = vld [vmem:[#allocation3 + $0xd70] ss:$28 sps:$4 sm:$0xff]  }
 0x68d   :  { %6521 = vmatpush2.bf16.msra.mxu0 %v8427_v2  ;;  %v8475_v2 = vld [vmem:[#allocation3 + $0x830] ss:$28 sps:$4 sm:$0xff]  }
 0x68e   :  { %6562 = vmatpush2.bf16.msra.mxu1 %v8430_v5  ;;  %7595 = vmatprep.subr.bf16.mxu0 %v8433_v8  ;;  %v8476_v5 = vld [vmem:[#allocation3 + $0xbb0] ss:$28 sps:$4 sm:$0xff]   ;;  %v8479_v8 = vld [vmem:[#allocation3 + $0x7f8] ss:$28 sps:$4 sm:$0xff]  }
 0x68f   :  { %7617 = vmatprep.subr.bf16.mxu1 %v8434_v9  ;;  %v8480_v9 = vld [vmem:[#allocation3 + $0xb78] ss:$28 sps:$4 sm:$0xff]  }
 0x690   :  { %v9019_v50 = vpop.f32.mrf.mxu0  ;;  %6523 = vmatmul.mubr.bf16.vlgmr.msra.gmra.mxu0 %v8978_v6 }
 0x691   :  { %v9021_v30 = vpop.f32.mrf.mxu1  ;;  %6564 = vmatmul.mubr.bf16.vlgmr.msra.gmra.mxu1 %v8983_v7  ;;  %7596 = vmatpush3.bf16.msra.mxu0 %v8435_v11  ;;  %v8481_v11 = vld [vmem:[#allocation3 + $0x980] ss:$28 sps:$4 sm:$0xff]  }
 0x692   :  { %7618 = vmatpush3.bf16.msra.mxu1 %v8436_v59  ;;  %v9025_v12 = vpop.f32.mrf.mxu0  ;;  %7597 = vmatprep.subr.bf16.mxu0 %v8437_v46  ;;  %v8482_v59 = vld [vmem:[#allocation3 + $0xd00] ss:$28 sps:$4 sm:$0xff]   ;;  %v8485_v46 = vld [vmem:[#allocation3 + $0x948] ss:$28 sps:$4 sm:$0xff]  }
 0x693   :  { %v9027_v24 = vpop.f32.mrf.mxu1  ;;  %7619 = vmatprep.subr.bf16.mxu1 %v8438_v13  ;;  %6604 = vmatprep.mubr.bf16.mxu0 %v8942_v3  ;;  %v8449_v3 = vld [vmem:[#allocation3 + $0x280] ss:$28 sps:$4 sm:$0xff]   ;;  %v8486_v13 = vld [vmem:[#allocation3 + $0xcc8] ss:$28 sps:$4 sm:$0xff]  }
 0x694   :  { %6644 = vmatprep.mubr.bf16.mxu1 %v8947_v4  ;;  %v6282_v23 = vpop.f32.mrf.mxu0  ;;  %v8450_v4 = vld [vmem:[#allocation3 + $0x600] ss:$28 sps:$4 sm:$0xff]  }
 0x695   :  { %v6323_v28 = vpop.f32.mrf.mxu1  ;;  %7598 = vmatpush3.bf16.msra.mxu0 %v8439_v61  ;;  %v8487_v61 = vld [vmem:[#allocation3 + $0x788] ss:$28 sps:$4 sm:$0xff]   ;;  %v8491_v23 = vld [vmem:[#allocation3 + $0x750] ss:$28 sps:$4 sm:$0xff]  }
 0x696   :  { %7620 = vmatpush3.bf16.msra.mxu1 %v8440_v16  ;;  %v6283_v34 = vpop.f32.mrf.mxu0  ;;  %7599 = vmatprep.subr.bf16.mxu0 %v8441_v18  ;;  %v8488_v16 = vld [vmem:[#allocation3 + $0xb08] ss:$28 sps:$4 sm:$0xff]   ;;  %v8489_v18 = vld [vmem:[#allocation3 + $0x910] ss:$28 sps:$4 sm:$0xff]  }
 0x697   :  { %v6324_v27 = vpop.f32.mrf.mxu1  ;;  %7621 = vmatprep.subr.bf16.mxu1 %v8442_v22  ;;  %v8490_v22 = vld [vmem:[#allocation3 + $0xc90] ss:$28 sps:$4 sm:$0xff]   ;;  %v3752_v34 = vrot.slane %v9005_v10, %v8818_v17 }
 0x698   :  { %v8492_v28 = vld [vmem:[#allocation3 + $0xad0] ss:$28 sps:$4 sm:$0xff]   ;;  %v3756_v27 = vrot.slane %v9005_v10, %v8823_v21 }
 0x699   :  { %7600 = vmatpush3.bf16.msra.mxu0 %v8443_v31  ;;  %v8493_v31 = vld [vmem:[#allocation3 + $0x8d8] ss:$28 sps:$4 sm:$0xff]  }
 0x69a   :  { %7622 = vmatpush3.bf16.msra.mxu1 %v8444_v41  ;;  %7601 = vmatprep.subr.bf16.mxu0 %v8445_v29  ;;  %v8494_v41 = vld [vmem:[#allocation3 + $0xc58] ss:$28 sps:$4 sm:$0xff]  }
 0x69b   :  { %7623 = vmatprep.subr.bf16.mxu1 %v8446_v56  ;;  %v8495_v29 = vld [vmem:[#allocation3 + $0x718] ss:$28 sps:$4 sm:$0xff]  }
 0x69c   :  { %v8496_v56 = vld [vmem:[#allocation3 + $0xa98] ss:$28 sps:$4 sm:$0xff]  }
 0x69d   :  { %7602 = vmatpush3.bf16.msra.mxu0 %v8447_v32  ;;  %v6279_v32 = vadd.f32 %v9019_v50, %v3752_v34 }
 0x69e   :  { %7624 = vmatpush3.bf16.msra.mxu1 %v8448_v47  ;;  %7603 = vmatprep.subr.bf16.mxu0 %v8449_v3  ;;  %v6281_v47 = vadd.f32 %v9025_v12, %v3756_v27 }
 0x69f   :  { %7625 = vmatprep.subr.bf16.mxu1 %v8450_v4  ;;  %v6320_v3 = vadd.f32 %v9021_v30, %v6279_v32 }
 0x6a0   :  { %v6322_v17 = vadd.f32 %v9027_v24, %v6281_v47 }
 0x6a1   :  { %7604 = vmatpush3.bf16.msra.mxu0 %v8451_v53 }
 0x6a2   :  { %7626 = vmatpush3.bf16.msra.mxu1 %v8452_v25  ;;  %7605 = vmatprep.subr.bf16.mxu0 %v8453_v52 }
 0x6a3   :  { %7627 = vmatprep.subr.bf16.mxu1 %v8454_v36 }
 0x6a5   :  { %7606 = vmatpush3.bf16.msra.mxu0 %v8455_v44 }
 0x6a6   :  { %7628 = vmatpush3.bf16.msra.mxu1 %v8456_v33  ;;  %7607 = vmatprep.subr.bf16.mxu0 %v8457_v60 }
 0x6a7   :  { %7629 = vmatprep.subr.bf16.mxu1 %v8458_v54 }
 0x6a9   :  { %7608 = vmatpush3.bf16.msra.mxu0 %v8459_v38 }
 0x6aa   :  { %7630 = vmatpush3.bf16.msra.mxu1 %v8460_v48  ;;  %7609 = vmatprep.subr.bf16.mxu0 %v8461_v39 }
 0x6ab   :  { %7631 = vmatprep.subr.bf16.mxu1 %v8462_v40 }
 0x6ad   :  { %7610 = vmatpush3.bf16.msra.mxu0 %v8463_v42 }
 0x6ae   :  { %7632 = vmatpush3.bf16.msra.mxu1 %v8464_v49  ;;  %7639 = vmatprep.subr.bf16.mxu0 %v8465_v37 }
 0x6af   :  { %7661 = vmatprep.subr.bf16.mxu1 %v8466_v55 }
 0x6b0   :  { %6605 = vmatmul.mubr.bf16.vlgmr.msra.gmra.mxu0 %v8954_v43  ;;  %v8477_v43 = vld [vmem:[#allocation3 + $0x9b8] ss:$28 sps:$4 sm:$0xff]  }
 0x6b1   :  { %6645 = vmatmul.mubr.bf16.vlgmr.msra.gmra.mxu1 %v8959_v45  ;;  %7640 = vmatpush3.bf16.msra.mxu0 %v8467_v35  ;;  %v8478_v45 = vld [vmem:[#allocation3 + $0xd38] ss:$28 sps:$4 sm:$0xff]  }
 0x6b2   :  { %7662 = vmatpush3.bf16.msra.mxu1 %v8468_v57  ;;  %7641 = vmatprep.subr.bf16.mxu0 %v8469_v14 }
 0x6b3   :  { %7663 = vmatprep.subr.bf16.mxu1 %v8470_v15  ;;  %6684 = vmatprep.mubr.bf16.mxu0 %v8964_v19  ;;  %v8483_v19 = vld [vmem:[#allocation3 + $0x7c0] ss:$28 sps:$4 sm:$0xff]  }
 0x6b4   :  { %6724 = vmatprep.mubr.bf16.mxu1 %v8969_v20  ;;  %v8484_v20 = vld [vmem:[#allocation3 + $0xb40] ss:$28 sps:$4 sm:$0xff]  }
 0x6b5   :  { %7642 = vmatpush3.bf16.msra.mxu0 %v8471_v62 }
 0x6b6   :  { %7664 = vmatpush3.bf16.msra.mxu1 %v8472_v63  ;;  %7643 = vmatprep.subr.bf16.mxu0 %v8473_v0  ;;  %v3760_v0 = vrot.slane %v9005_v10, %v8904_v26 }
 0x6b7   :  { %7665 = vmatprep.subr.bf16.mxu1 %v8474_v1  ;;  %v3764_v1 = vrot.slane %v9005_v10, %v8907_v51 }
 0x6b9   :  { %7644 = vmatpush3.bf16.msra.mxu0 %v8475_v2 }
 0x6ba   :  { %7666 = vmatpush3.bf16.msra.mxu1 %v8476_v5  ;;  %7645 = vmatprep.subr.bf16.mxu0 %v8477_v43 }
 0x6bb   :  { %7667 = vmatprep.subr.bf16.mxu1 %v8478_v45 }
 0x6bd   :  { %7646 = vmatpush3.bf16.msra.mxu0 %v8479_v8 }
 0x6be   :  { %7668 = vmatpush3.bf16.msra.mxu1 %v8480_v9  ;;  %7647 = vmatprep.subr.bf16.mxu0 %v8481_v11 }
 0x6bf   :  { %7669 = vmatprep.subr.bf16.mxu1 %v8482_v59 }
 0x6c1   :  { %7648 = vmatpush3.bf16.msra.mxu0 %v8483_v19 }
 0x6c2   :  { %7670 = vmatpush3.bf16.msra.mxu1 %v8484_v20  ;;  %7649 = vmatprep.subr.bf16.mxu0 %v8485_v46 }
 0x6c3   :  { %7671 = vmatprep.subr.bf16.mxu1 %v8486_v13 }
 0x6c5   :  { %7650 = vmatpush3.bf16.msra.mxu0 %v8487_v61 }
 0x6c6   :  { %7672 = vmatpush3.bf16.msra.mxu1 %v8488_v16  ;;  %7651 = vmatprep.subr.bf16.mxu0 %v8489_v18 }
 0x6c7   :  { %7673 = vmatprep.subr.bf16.mxu1 %v8490_v22 }
 0x6c9   :  { %7652 = vmatpush3.bf16.msra.mxu0 %v8491_v23 }
 0x6ca   :  { %7674 = vmatpush3.bf16.msra.mxu1 %v8492_v28  ;;  %7653 = vmatprep.subr.bf16.mxu0 %v8493_v31 }
 0x6cb   :  { %7675 = vmatprep.subr.bf16.mxu1 %v8494_v41 }
 0x6cd   :  { %7654 = vmatpush3.bf16.msra.mxu0 %v8495_v29 }
 0x6ce   :  { %7676 = vmatpush3.bf16.msra.mxu1 %v8496_v56 }
 0x6d0   :  { %v6360_v4 = vpop.f32.mrf.mxu0  ;;  %6685 = vmatmul.mubr.bf16.vlgmr.msra.gmra.mxu0 %v8978_v6 }
 0x6d1   :  { %v6401_v53 = vpop.f32.mrf.mxu1  ;;  %6725 = vmatmul.mubr.bf16.vlgmr.msra.gmra.mxu1 %v8983_v7  ;;  %v6361_v21 = vadd.f32 %v6360_v4, %v6320_v3 }
 0x6d2   :  { %v6362_v25 = vpop.f32.mrf.mxu0 }
 0x6d3   :  { %v6403_v52 = vpop.f32.mrf.mxu1  ;;  %v6402_v36 = vadd.f32 %v6401_v53, %v6361_v21  ;;  %v6363_v44 = vadd.f32 %v6362_v25, %v6322_v17 }
 0x6d4   :  { %v6364_v50 = vpop.f32.mrf.mxu0 }
 0x6d5   :  { %v6405_v33 = vpop.f32.mrf.mxu1  ;;  %v6734_v12 = vsub.f32 0.0, %v6402_v36  ;;  %v6404_v60 = vadd.f32 %v6403_v52, %v6363_v44  ;;  %v3768_v52 = vrot.slane %v9005_v10, %v8924_v58 }
 0x6d6   :  { %v6365_v54 = vpop.f32.mrf.mxu0 }
 0x6d7   :  { %v6406_v38 = vpop.f32.mrf.mxu1  ;;  %v6743_v30 = vmul.f32 1.442695, %v6734_v12  ;;  %v6735_v48 = vsub.f32 0.0, %v6404_v60 }
 0x6d9   :  { %8505 = vpow2.f32 %v6743_v30  ;;  %v6745_v39 = vmul.f32 1.442695, %v6735_v48 }
 0x6db   :  { %8507 = vpow2.f32 %v6745_v39 }
 0x6e6   :  { %v8506_v6 = vpop.eup %8505 }
 0x6e7   :  { %v6755_v7 = vadd.f32 1.0, %v8506_v6 }
 0x6e8   :  { %v8508_v40 = vpop.eup %8507 }
 0x6e9   :  { %8509 = vrcp.f32 %v6755_v7  ;;  %v6756_v24 = vadd.f32 1.0, %v8508_v40 }
 0x6eb   :  { %8511 = vrcp.f32 %v6756_v24 }
 0x6f6   :  { %v8510_v42 = vpop.eup %8509 }
 0x6f7   :  { %6769 = vst [vmem:[#allocation14 + $0x10] sm:$0xff] %v8510_v42 }
 0x6f8   :  { %v8512_v49 = vpop.eup %8511 }
 0x6f9   :  { %6770 = vst [vmem:[#allocation14 + $0x18] sm:$0xff] %v8512_v49 }
 0x710   :  { %v6442_v37 = vpop.f32.mrf.mxu0 }
 0x711   :  { %v6483_v55 = vpop.f32.mrf.mxu1  ;;  %v6443_v2 = vadd.f32 %v6442_v37, %v3760_v0 }
 0x712   :  { %v6444_v35 = vpop.f32.mrf.mxu0 }
 0x713   :  { %v6485_v57 = vpop.f32.mrf.mxu1  ;;  %v6445_v5 = vadd.f32 %v6444_v35, %v3764_v1  ;;  %v6484_v43 = vadd.f32 %v6483_v55, %v6443_v2 }
 0x714   :  { %v6446_v14 = vpop.f32.mrf.mxu0 }
 0x715   :  { %v6487_v15 = vpop.f32.mrf.mxu1  ;;  %v6486_v9 = vadd.f32 %v6485_v57, %v6445_v5 }
 0x716   :  { %v6447_v62 = vpop.f32.mrf.mxu0 }
 0x717   :  { %v6488_v63 = vpop.f32.mrf.mxu1 }
 0x750   :  { %v6524_v45 = vpop.f32.mrf.mxu0 }
 0x751   :  { %v6565_v8 = vpop.f32.mrf.mxu1  ;;  %v6525_v11 = vadd.f32 %v6524_v45, %v6484_v43 }
 0x752   :  { %v6526_v59 = vpop.f32.mrf.mxu0 }
 0x753   :  { %v6567_v19 = vpop.f32.mrf.mxu1  ;;  %v6566_v20 = vadd.f32 %v6565_v8, %v6525_v11  ;;  %v6527_v46 = vadd.f32 %v6526_v59, %v6486_v9 }
 0x754   :  { %v6528_v13 = vpop.f32.mrf.mxu0 }
 0x755   :  { %v6569_v61 = vpop.f32.mrf.mxu1  ;;  %v6736_v16 = vsub.f32 0.0, %v6566_v20  ;;  %v6568_v18 = vadd.f32 %v6567_v19, %v6527_v46 }
 0x756   :  { %v6529_v22 = vpop.f32.mrf.mxu0 }
 0x757   :  { %v6570_v26 = vpop.f32.mrf.mxu1  ;;  %v6747_v23 = vmul.f32 1.442695, %v6736_v16  ;;  %v6737_v28 = vsub.f32 0.0, %v6568_v18 }
 0x759   :  { %8513 = vpow2.f32 %v6747_v23  ;;  %v6749_v51 = vmul.f32 1.442695, %v6737_v28 }
 0x75b   :  { %8515 = vpow2.f32 %v6749_v51 }
 0x766   :  { %v8514_v31 = vpop.eup %8513 }
 0x767   :  { %v6757_v41 = vadd.f32 1.0, %v8514_v31 }
 0x768   :  { %v8516_v34 = vpop.eup %8515 }
 0x769   :  { %8517 = vrcp.f32 %v6757_v41  ;;  %v6758_v27 = vadd.f32 1.0, %v8516_v34 }
 0x76b   :  { %8519 = vrcp.f32 %v6758_v27 }
 0x770   :  { %v7611_v29 = vpop.f32.mrf.mxu0 }
 0x771   :  { %v7633_v56 = vpop.f32.mrf.mxu1 }
 0x772   :  { %v7612_v32 = vpop.f32.mrf.mxu0 }
 0x773   :  { %v7634_v47 = vpop.f32.mrf.mxu1  ;;  %v7613_v36 = vadd.f32 %v7612_v32, %v7611_v29 }
 0x774   :  { %v7614_v3 = vpop.f32.mrf.mxu0  ;;  %v7635_v50 = vadd.f32 %v7634_v47, %v7633_v56 }
 0x775   :  { %v7636_v4 = vpop.f32.mrf.mxu1  ;;  %v6607_v44 = vadd.f32 %v7613_v36, %v3768_v52 }
 0x776   :  { %v8518_v53 = vpop.eup %8517  ;;  %v7615_v17 = vpop.f32.mrf.mxu0 }
 0x777   :  { %v7637_v21 = vpop.f32.mrf.mxu1  ;;  %6771 = vst [vmem:[#allocation14 + $0x20] sm:$0xff] %v8518_v53  ;;  %v6647_v38 = vadd.f32 %v7635_v50, %v6607_v44 }
 0x778   :  { %v8520_v25 = vpop.eup %8519 }
 0x779   :  { %6772 = vst [vmem:[#allocation14 + $0x28] sm:$0xff] %v8520_v25 }
 0x790   :  { %v7655_v33 = vpop.f32.mrf.mxu0 }
 0x791   :  { %v7677_v12 = vpop.f32.mrf.mxu1 }
 0x792   :  { %v7656_v60 = vpop.f32.mrf.mxu0 }
 0x793   :  { %v7678_v54 = vpop.f32.mrf.mxu1  ;;  %v7657_v30 = vadd.f32 %v7656_v60, %v7655_v33 }
 0x794   :  { %v7658_v48 = vpop.f32.mrf.mxu0  ;;  %v7679_v7 = vadd.f32 %v7678_v54, %v7677_v12 }
 0x795   :  { %v7680_v39 = vpop.f32.mrf.mxu1  ;;  %v6687_v6 = vadd.f32 %v7657_v30, %v6647_v38 }
 0x796   :  { %v7659_v40 = vpop.f32.mrf.mxu0 }
 0x797   :  { %v7681_v24 = vpop.f32.mrf.mxu1  ;;  %v6727_v42 = vadd.f32 %v7679_v7, %v6687_v6 }
 0x799   :  { %v6738_v49 = vsub.f32 0.0, %v6727_v42 }
 0x79b   :  { %v6751_v37 = vmul.f32 1.442695, %v6738_v49 }
 0x79d   :  { %8521 = vpow2.f32 %v6751_v37 }
 0x7aa   :  { %v8522_v58 = vpop.eup %8521 }
 0x7ab   :  { %v6759_v10 = vadd.f32 1.0, %v8522_v58 }
 0x7ad   :  { %8523 = vrcp.f32 %v6759_v10 }
 0x7ba   :  { %v8524_v55 = vpop.eup %8523 }
 0x7bb   :  { %6773 = vst [vmem:[#allocation14 + $0x30] sm:$0xff] %v8524_v55 }
 0x7bc   :  { %8676 = shalt.err (!%p8673_p11)
}
 0x7bd   :  { %6783 = dma.vmem_to_hbm [thread:$0]  %s6781_s5, 896, %s9061_s7, [#allocation7]  }
 0x7be   :  { %8695 = dma.done.wait [#allocation7], 896  }
 0x7bf   :  { %8696 = vsyncadd [#allocation7], 4294966400 }
 0x7c0   :  { %6787 = vsyncpa [#allocation6], 1 }
 0x7c1   :  { %6788 = vsyncpa [#allocation9], 1 }
 0x7c2   :  { %6789 = vsyncpa [#allocation12], 1 }
 0x7c3   :  { %6790 = vsyncpa [#allocation7], 1 }
 0x7c4   :  { %6791 = vsyncmov [#allocation4] }
 0x7c7   :  { %s6792_s17 = vpop.sfrf %6791 }
 0x7c8   :  { %p7590_p12 = scmp.ne.s32.totalorder %s6792_s17, 0 }
 0x7ca   :  { %6796 = shalt.err (%p7590_p12)  }
 0x7cb   :  { %6798 = vsyncmov [#allocation4 + $0x1] }
 0x7ce   :  { %s6799_s1 = vpop.sfrf %6798 }
 0x7cf   :  { %p7591_p13 = scmp.ne.s32.totalorder %s6799_s1, 0 }
 0x7d1   :  { %6803 = shalt.err (%p7591_p13)  }

</bundles_post_ra>
